<compile_context>
chip_gen: v6e
topology: v6e:2x2x1
jax: 0.10.0
libtpu: 0.0.40
codegen_flags: <defaults>
</compile_context>

<pallas_src>
import functools

import jax
import jax.numpy as jnp
from jax.experimental import pallas as pl
from jax.experimental.pallas import tpu as pltpu

# ---------------- configuration (mirrors the module defaults) ----------------
IN_CHANNEL = 3      # xyz
LOCAL_CH = (64, 128)
EMB_DIM = 128       # emb_dim
OUT_CHANNEL = 128   # out_channel  (n_output_channels)
_N_CHUNK = 1024     # stream the point axis in chunks of this size for large N


# --------------------------------- kernel -----------------------------------
def _gpnet_kernel(pts_ref, w1_ref, w2_ref, w34_ref, b_ref, out_ref, *, nc):
    tb, n, c = pts_ref.shape                      # (TB, N, 3) float32

    # Resident (constant-index) operands; loaded once, hoisted out of the loop.
    w1 = w1_ref[...]                              # (3, 64)    f32
    w2 = w2_ref[...]                              # (64, 128)  bf16
    w3 = w34_ref[0]                               # (128, 128) bf16
    w4 = w34_ref[1]                               # (128, 128) bf16
    b1 = b_ref[0:1, 0:LOCAL_CH[0]]                # (1, 64)    f32
    b2 = b_ref[1:2, :]                            # (1, 128)   f32
    b3 = b_ref[2:3, :]
    b4 = b_ref[3:4, :]

    def chunk_max(x):                             # x: (TB*nc, 3) f32
        # Layer 1: tiny-K dot straight on the MXU (Mosaic masks the K=3 pad);
        # points stay f32 — no bf16 round-trip before the MXU needs it.
        h = jnp.dot(x, w1, preferred_element_type=jnp.float32) + b1
        h = jnp.maximum(h, 0.0).astype(jnp.bfloat16)           # (M, 64)
        # Layers 2 & 3: bf16 operands, f32 accumulate / bias / ReLU.
        h = jnp.dot(h, w2, preferred_element_type=jnp.float32) + b2
        h = jnp.maximum(h, 0.0).astype(jnp.bfloat16)           # (M, 128)
        h = jnp.dot(h, w3, preferred_element_type=jnp.float32) + b3
        h = jnp.maximum(h, 0.0)                                 # (M, EMB) f32
        # Symmetric max over the chunk's points.
        return jnp.max(h.reshape(tb, nc, EMB_DIM), axis=1)      # (TB, EMB)

    n_chunks = n // nc
    if n_chunks == 1:
        # (TB, N, 3) -> (TB*N, 3): layout-preserving collapse (N % 8 == 0).
        g = chunk_max(pts_ref[...].reshape(tb * n, c))
    else:
        def body(s, g):
            start = pl.multiple_of(s * nc, nc)
            x = pts_ref[:, pl.ds(start, nc), :].reshape(tb * nc, c)
            return jnp.maximum(g, chunk_max(x))
        # ReLU outputs are >= 0, so a zero init is the identity for the max.
        g = jax.lax.fori_loop(0, n_chunks, body,
                              jnp.zeros((tb, EMB_DIM), jnp.float32))

    # Head MLP: (TB, EMB) @ (EMB, OUT), bf16 operands, f32 accumulate.
    o = jnp.dot(g.astype(jnp.bfloat16), w4,
                preferred_element_type=jnp.float32) + b4
    out_ref[...] = jnp.maximum(o, 0.0).astype(out_ref.dtype)    # (TB, OUT)


# ------------------------------ tile selection -------------------------------
def _choose_nc(N):
    """Point-axis chunk size (multiple of the f32 sublane tile)."""
    if N <= _N_CHUNK:
        return N
    for nc in range(_N_CHUNK, 7, -8):
        if N % nc == 0:
            return nc
    return N


def _choose_tb(B, N, nc):
    """Batch-tile size and batch padding.

    Budget: lane-padded, double-buffered points block (N * 128 lanes * 4 B * 2)
    plus ~1.7 KiB of live f32/bf16 activations per chunk row; keep the step
    under ~20 MiB so we stay within the 32 MiB default scoped VMEM limit
    (v7x: 64 MiB physical per TC) without a vmem_limit override.
    """
    row_bytes = N * 128 * 4 * 2 + nc * 1700
    cap = max(1, (20 << 20) // row_bytes)
    try:
        kind = jax.devices()[0].device_kind.lower()
    except Exception:  # pragma: no cover - defensive
        kind = ""
    want_steps = 2 if "v7" in kind else 1        # one grid step per TensorCore

    if B <= 8 or (want_steps == 1 and B <= cap):
        return B, 0                              # single grid step, no padding

    tb = min(cap, -(-B // want_steps))
    tb = max(8, (tb // 8) * 8)                   # multiple of 8 -> unmasked stores
    for t in range(tb, 7, -8):                   # prefer a divisor of B (no pad)
        if B % t == 0:
            return t, 0
    return tb, (-B) % tb                         # rare fallback: pad the batch


# --------------------------------- wrapper -----------------------------------
def pointnet_extractor_gp(points, params, *, tb=None):
    """points: (B, N, 3) float32.  Returns (B, OUT_CHANNEL) float32."""
    B, N, C = points.shape
    assert C == IN_CHANNEL
    assert N % 8 == 0, "N must be a multiple of the f32 sublane tile (8)"
    w1, b1, w2, b2, w3, b3, w4, b4 = params

    # Pack the small resident operands (cuts 9 operand pipelines down to 5).
    w1f = w1.astype(jnp.float32)                              # (3, 64)  f32
    w2b = w2.astype(jnp.bfloat16)                             # (64, 128)
    w34 = jnp.stack([w3, w4]).astype(jnp.bfloat16)            # (2, 128, 128)
    biases = jnp.concatenate(
        [jnp.pad(b1, ((0, 0), (0, OUT_CHANNEL - b1.shape[1]))), b2, b3, b4],
        axis=0).astype(jnp.float32)                           # (4, 128)

    nc = _choose_nc(N)
    if tb is None:
        tb, pad = _choose_tb(B, N, nc)
    else:
        tb = max(1, min(tb, B))
        pad = (-B) % tb

    # f32 points DMA'd straight from HBM — no wrapper-side bf16 pre-pass.
    pts = points
    if pad:  # rare fallback (a tb dividing B is preferred above)
        pts = jnp.concatenate([pts, jnp.zeros((pad, N, C), pts.dtype)], axis=0)
    Bp = B + pad

    def _resident(arr):
        nd = arr.ndim
        return pl.BlockSpec(arr.shape, lambda b, _nd=nd: (0,) * _nd)

    grid_spec = pltpu.PrefetchScalarGridSpec(
        num_scalar_prefetch=0,
        grid=(Bp // tb,),
        in_specs=[
            pl.BlockSpec((tb, N, C), lambda b: (b, 0, 0)),    # TB examples/step
            _resident(w1f),
            _resident(w2b),
            _resident(w34),
            _resident(biases),
        ],
        out_specs=pl.BlockSpec((tb, OUT_CHANNEL), lambda b: (b, 0)),
    )

    out = pl.pallas_call(
        functools.partial(_gpnet_kernel, nc=nc),
        out_shape=jax.ShapeDtypeStruct((Bp, OUT_CHANNEL), jnp.float32),
        grid_spec=grid_spec,
        compiler_params=pltpu.CompilerParams(
            dimension_semantics=("parallel",)),               # v7x: 2 TCs share grid
    )(pts, w1f, w2b, w34, biases)

    return out[:B]


# ------------------------- synthetic params / reference ----------------------
def init_params(key):
    """Deterministic synthetic weights (shapes implied by GPNet(in=3, emb=128, out=128))."""
    dims = [IN_CHANNEL, LOCAL_CH[0], LOCAL_CH[1], EMB_DIM, OUT_CHANNEL]
    params = []
    keys = jax.random.split(key, len(dims) - 1)
    for k, (din, dout) in zip(keys, zip(dims[:-1], dims[1:])):
        scale = 1.0 / jnp.sqrt(jnp.float32(din))
        w = jax.random.uniform(k, (din, dout), jnp.float32, -scale, scale)
        b = jnp.zeros((1, dout), jnp.float32)
        params.extend([w, b])
    return tuple(params)


def reference_forward(points, params):
    """Pure-JAX reference mirroring the kernel's mixed precision
    (f32 layer-1, bf16 MXU operands for layers 2/3/head, f32 accumulate)."""
    w1, b1, w2, b2, w3, b3, w4, b4 = params
    B, N, C = points.shape
    bf = jnp.bfloat16

    x = points.reshape(B * N, C).astype(jnp.float32)
    h = jnp.maximum(jnp.dot(x, w1, preferred_element_type=jnp.float32) + b1, 0.0)
    h = jnp.maximum(jnp.dot(h.astype(bf), w2.astype(bf),
                            preferred_element_type=jnp.float32) + b2, 0.0)
    h = jnp.maximum(jnp.dot(h.astype(bf), w3.astype(bf),
                            preferred_element_type=jnp.float32) + b3, 0.0)
    g = jnp.max(h.reshape(B, N, EMB_DIM), axis=1)             # (B, EMB)
    o = jnp.dot(g.astype(bf), w4.astype(bf),
                preferred_element_type=jnp.float32) + b4
    return jnp.maximum(o, 0.0)                                # (B, OUT)


if __name__ == "__main__":
    key = jax.random.PRNGKey(0)
    k_pts, k_par = jax.random.split(key)

    B, N = 16, 128                               # small: 16 clouds of 128 points
    points = jax.random.normal(k_pts, (B, N, IN_CHANNEL), jnp.float32)
    params = init_params(k_par)

    out = pointnet_extractor_gp(points, params)  # tb auto-sized per TPU generation
    out = jax.block_until_ready(out)

    ref = reference_forward(points, params)
    assert out.shape == (B, OUT_CHANNEL), out.shape
    assert jnp.allclose(out, ref, atol=2e-2, rtol=2e-2), "mismatch vs JAX reference"

    print("KERNEL_OK")
</pallas_src>

<mosaic_0001>
module attributes {stable_mosaic.version = 11 : i64} {
  func.func @_gpnet_kernel(%arg0: i32, %arg1: memref<16x128x3xf32, #tpu.memory_space<vmem>>, %arg2: memref<3x64xf32, #tpu.memory_space<vmem>>, %arg3: memref<64x128xbf16, #tpu.memory_space<vmem>>, %arg4: memref<2x128x128xbf16, #tpu.memory_space<vmem>>, %arg5: memref<4x128xf32, #tpu.memory_space<vmem>>, %arg6: memref<16x128xf32, #tpu.memory_space<vmem>>) attributes {dimension_semantics = [#tpu.dimension_semantics<parallel>], iteration_bounds = array<i64: 1>, scalar_prefetch = 0 : i64, scratch_operands = 0 : i64, tpu.core_type = #tpu.core_type<tc>, window_params = [{transform_indices = @transform_0, window_bounds = array<i64: 16, 128, 3>}, {pipeline_mode = #tpu.pipeline_mode<synchronous>, transform_indices = @transform_1, window_bounds = array<i64: 3, 64>}, {pipeline_mode = #tpu.pipeline_mode<synchronous>, transform_indices = @transform_2, window_bounds = array<i64: 64, 128>}, {pipeline_mode = #tpu.pipeline_mode<synchronous>, transform_indices = @transform_3, window_bounds = array<i64: 2, 128, 128>}, {pipeline_mode = #tpu.pipeline_mode<synchronous>, transform_indices = @transform_4, window_bounds = array<i64: 4, 128>}, {transform_indices = @transform_5, window_bounds = array<i64: 16, 128>}]} {
    %c0 = arith.constant 0 : index
    %c0_0 = arith.constant 0 : index
    %0 = vector.load %arg2[%c0, %c0_0] : memref<3x64xf32, #tpu.memory_space<vmem>>, vector<3x64xf32>
    %c0_1 = arith.constant 0 : index
    %c0_2 = arith.constant 0 : index
    %1 = vector.load %arg3[%c0_1, %c0_2] : memref<64x128xbf16, #tpu.memory_space<vmem>>, vector<64x128xbf16>
    %c0_3 = arith.constant 0 : index
    %c0_4 = arith.constant 0 : index
    %c0_5 = arith.constant 0 : index
    %2 = vector.load %arg4[%c0_3, %c0_4, %c0_5] : memref<2x128x128xbf16, #tpu.memory_space<vmem>>, vector<1x128x128xbf16>
    %3 = vector.shape_cast %2 : vector<1x128x128xbf16> to vector<128x128xbf16>
    %c1 = arith.constant 1 : index
    %c0_6 = arith.constant 0 : index
    %c0_7 = arith.constant 0 : index
    %4 = vector.load %arg4[%c1, %c0_6, %c0_7] : memref<2x128x128xbf16, #tpu.memory_space<vmem>>, vector<1x128x128xbf16>
    %5 = vector.shape_cast %4 : vector<1x128x128xbf16> to vector<128x128xbf16>
    %c0_8 = arith.constant 0 : index
    %c0_9 = arith.constant 0 : index
    %6 = vector.load %arg5[%c0_8, %c0_9] : memref<4x128xf32, #tpu.memory_space<vmem>>, vector<1x64xf32>
    %c1_10 = arith.constant 1 : index
    %c0_11 = arith.constant 0 : index
    %7 = vector.load %arg5[%c1_10, %c0_11] : memref<4x128xf32, #tpu.memory_space<vmem>>, vector<1x128xf32>
    %c2 = arith.constant 2 : index
    %c0_12 = arith.constant 0 : index
    %8 = vector.load %arg5[%c2, %c0_12] : memref<4x128xf32, #tpu.memory_space<vmem>>, vector<1x128xf32>
    %c3 = arith.constant 3 : index
    %c0_13 = arith.constant 0 : index
    %9 = vector.load %arg5[%c3, %c0_13] : memref<4x128xf32, #tpu.memory_space<vmem>>, vector<1x128xf32>
    %c0_14 = arith.constant 0 : index
    %c0_15 = arith.constant 0 : index
    %c0_16 = arith.constant 0 : index
    %10 = vector.load %arg1[%c0_14, %c0_15, %c0_16] : memref<16x128x3xf32, #tpu.memory_space<vmem>>, vector<16x128x3xf32>
    %11 = vector.shape_cast %10 : vector<16x128x3xf32> to vector<2048x3xf32>
    %cst = arith.constant dense<0.000000e+00> : vector<2048x64xf32>
    %12 = tpu.matmul %11, %0, %cst {dimension_numbers = #tpu.dot_dimension_numbers<[1], [0], [0], [1], [0, 0, 1, 1], [], []>} : vector<2048x3xf32>, vector<3x64xf32>, vector<2048x64xf32> -> vector<2048x64xf32>
    %13 = vector.broadcast %6 : vector<1x64xf32> to vector<2048x64xf32>
    %14 = arith.addf %12, %13 : vector<2048x64xf32>
    %cst_17 = arith.constant 0.000000e+00 : f32
    %15 = vector.broadcast %cst_17 : f32 to vector<2048x64xf32>
    %16 = arith.maximumf %14, %15 : vector<2048x64xf32>
    %17 = arith.truncf %16 : vector<2048x64xf32> to vector<2048x64xbf16>
    %cst_18 = arith.constant dense<0.000000e+00> : vector<2048x128xf32>
    %18 = tpu.matmul %17, %1, %cst_18 {dimension_numbers = #tpu.dot_dimension_numbers<[1], [0], [0], [1], [0, 0, 1, 1], [], []>} : vector<2048x64xbf16>, vector<64x128xbf16>, vector<2048x128xf32> -> vector<2048x128xf32>
    %19 = vector.broadcast %7 : vector<1x128xf32> to vector<2048x128xf32>
    %20 = arith.addf %18, %19 : vector<2048x128xf32>
    %cst_19 = arith.constant 0.000000e+00 : f32
    %21 = vector.broadcast %cst_19 : f32 to vector<2048x128xf32>
    %22 = arith.maximumf %20, %21 : vector<2048x128xf32>
    %23 = arith.truncf %22 : vector<2048x128xf32> to vector<2048x128xbf16>
    %cst_20 = arith.constant dense<0.000000e+00> : vector<2048x128xf32>
    %24 = tpu.matmul %23, %3, %cst_20 {dimension_numbers = #tpu.dot_dimension_numbers<[1], [0], [0], [1], [0, 0, 1, 1], [], []>} : vector<2048x128xbf16>, vector<128x128xbf16>, vector<2048x128xf32> -> vector<2048x128xf32>
    %25 = vector.broadcast %8 : vector<1x128xf32> to vector<2048x128xf32>
    %26 = arith.addf %24, %25 : vector<2048x128xf32>
    %cst_21 = arith.constant 0.000000e+00 : f32
    %27 = vector.broadcast %cst_21 : f32 to vector<2048x128xf32>
    %28 = arith.maximumf %26, %27 : vector<2048x128xf32>
    %29 = vector.shape_cast %28 : vector<2048x128xf32> to vector<16x128x128xf32>
    %cst_22 = arith.constant dense<0xFF800000> : vector<16x128xf32>
    %30 = vector.multi_reduction <maximumf>, %29, %cst_22 [1] : vector<16x128x128xf32> to vector<16x128xf32>
    %31 = arith.truncf %30 : vector<16x128xf32> to vector<16x128xbf16>
    %cst_23 = arith.constant dense<0.000000e+00> : vector<16x128xf32>
    %32 = tpu.matmul %31, %5, %cst_23 {dimension_numbers = #tpu.dot_dimension_numbers<[1], [0], [0], [1], [0, 0, 1, 1], [], []>} : vector<16x128xbf16>, vector<128x128xbf16>, vector<16x128xf32> -> vector<16x128xf32>
    %33 = vector.broadcast %9 : vector<1x128xf32> to vector<16x128xf32>
    %34 = arith.addf %32, %33 : vector<16x128xf32>
    %cst_24 = arith.constant 0.000000e+00 : f32
    %35 = vector.broadcast %cst_24 : f32 to vector<16x128xf32>
    %36 = arith.maximumf %34, %35 : vector<16x128xf32>
    %c0_25 = arith.constant 0 : index
    %c0_26 = arith.constant 0 : index
    %37 = vector.load %arg6[%c0_25, %c0_26] : memref<16x128xf32, #tpu.memory_space<vmem>>, vector<16x128xf32>
    tpu.vector_store %arg6[%c0_25, %c0_26], %36 {strides = array<i32>} : memref<16x128xf32, #tpu.memory_space<vmem>>, vector<16x128xf32>,
    return
  }
  func.func @transform_0(%arg0: i32) -> (i32, i32, i32) {
    %c0_i32 = arith.constant 0 : i32
    %c0_i32_0 = arith.constant 0 : i32
    %c0_i32_1 = arith.constant 0 : i32
    return %arg0, %c0_i32, %c0_i32_0 : i32, i32, i32
  }
  func.func @transform_1(%arg0: i32) -> (i32, i32) {
    %c0_i32 = arith.constant 0 : i32
    %c0_i32_0 = arith.constant 0 : i32
    %c0_i32_1 = arith.constant 0 : i32
    return %c0_i32, %c0_i32_0 : i32, i32
  }
  func.func @transform_2(%arg0: i32) -> (i32, i32) {
    %c0_i32 = arith.constant 0 : i32
    %c0_i32_0 = arith.constant 0 : i32
    %c0_i32_1 = arith.constant 0 : i32
    return %c0_i32, %c0_i32_0 : i32, i32
  }
  func.func @transform_3(%arg0: i32) -> (i32, i32, i32) {
    %c0_i32 = arith.constant 0 : i32
    %c0_i32_0 = arith.constant 0 : i32
    %c0_i32_1 = arith.constant 0 : i32
    %c0_i32_2 = arith.constant 0 : i32
    return %c0_i32, %c0_i32_0, %c0_i32_1 : i32, i32, i32
  }
  func.func @transform_4(%arg0: i32) -> (i32, i32) {
    %c0_i32 = arith.constant 0 : i32
    %c0_i32_0 = arith.constant 0 : i32
    %c0_i32_1 = arith.constant 0 : i32
    return %c0_i32, %c0_i32_0 : i32, i32
  }
  func.func @transform_5(%arg0: i32) -> (i32, i32) {
    %c0_i32 = arith.constant 0 : i32
    %c0_i32_0 = arith.constant 0 : i32
    return %arg0, %c0_i32 : i32, i32
  }
}

</mosaic_0001>

<bundles_post_ra>
// kernel: tpu_custom_call.1
= control target key start
LH: loop header
LB: loop body
LE: loop exit
PB: predicated region body
PF: predicated region fallthrough
CT: control target
= control target key end

     0   :  { %vm1097_vm0 = vcmask 1042432   ;;  %vm328_vm1 = vcmask 23552   ;;  %s11238_s0 = inlined_call_operand.vmem [shape: f32[16,128,3], index: 0, kind: input, shape index: {}]   ;;  %s11239_s1 = inlined_call_operand.vmem [shape: f32[3,64], index: 1, kind: input, shape index: {}]   ;;  %s11240_s2 = inlined_call_operand.vmem [shape: bf16[64,128], index: 2, kind: input, shape index: {}]   ;;  %s11241_s3 = inlined_call_operand.vmem [shape: bf16[2,128,128], index: 3, kind: input, shape index: {}]   ;;  %s11242_s4 = inlined_call_operand.vmem [shape: f32[4,128], index: 4, kind: input, shape index: {}]   ;;  %s11243_s5 = inlined_call_operand.hbm [shape: f32[16,128], index: 5, kind: output, shape index: {}]  }
   0x1   :  { %v22_v0 = vld [vmem:[%s11239_s1] sm:$0x7]  ;;  %v198_v1 = vld [vmem:[%s11238_s0 + $0x410] sm:$0xff]  ;;  %v199_v2 = vld [vmem:[%s11238_s0 + $0x418] sm:$0xff] }
   0x2   :  { %8470 = vmatprep.subr.msk.mxu1 %vm1097_vm0, %v22_v0  ;;  %7725 = vmatprep.mubr.msk.f32.mxu1 %vm328_vm1, %v198_v1  ;;  %v8477_v3 = vld [vmem:[%s11240_s2 + $0x18] sm:$0xff]   ;;  %v200_v4 = vld [vmem:[%s11238_s0 + $0x420] sm:$0xff]  ;;  %v201_v5 = vld [vmem:[%s11238_s0 + $0x428] sm:$0xff] }
   0x3   :  { %8471 = vmatpush3.msk.msra.mxu1 %vm1097_vm0, %v22_v0  ;;  %7528 = vmatprep.subr.msk.mxu0 %vm1097_vm0, %v22_v0  ;;  %v202_v6 = vld [vmem:[%s11238_s0 + $0x430] sm:$0xff]  ;;  %v203_v7 = vld [vmem:[%s11238_s0 + $0x438] sm:$0xff]  ;;  %v204_v8 = vld [vmem:[%s11238_s0 + $0x440] sm:$0xff] }
   0x4   :  { %7726 = vmatmul.mubr.msk.f32.vlgmr.msra.gmra.mxu1 %vm328_vm1, %v199_v2  ;;  %7914 = vmatprep.subr.bf16.mxu1 %v8477_v3  ;;  %v68_v9 = vld [vmem:[%s11238_s0] sm:$0xff]  ;;  %v69_v10 = vld [vmem:[%s11238_s0 + $0x8] sm:$0xff]  ;;  %v70_v11 = vld [vmem:[%s11238_s0 + $0x10] sm:$0xff] }
   0x5   :  { %7915 = vmatpush3.bf16.msra.mxu1 %v8477_v3  ;;  %7728 = vmatprep.mubr.msk.f32.mxu1 %vm328_vm1, %v200_v4  ;;  %v205_v12 = vld [vmem:[%s11238_s0 + $0x448] sm:$0xff]  ;;  %v71_v13 = vld [vmem:[%s11238_s0 + $0x18] sm:$0xff]  ;;  %v206_v14 = vld [vmem:[%s11238_s0 + $0x450] sm:$0xff] }
   0x6   :  { %7529 = vmatpush3.msk.msra.mxu0 %vm1097_vm0, %v22_v0  ;;  %7530 = vmatprep.mubr.msk.f32.mxu0 %vm328_vm1, %v68_v9  ;;  %v72_v15 = vld [vmem:[%s11238_s0 + $0x20] sm:$0xff]  ;;  %v207_v16 = vld [vmem:[%s11238_s0 + $0x458] sm:$0xff]  ;;  %v73_v17 = vld [vmem:[%s11238_s0 + $0x28] sm:$0xff] }
   0x7   :  { %7531 = vmatmul.mubr.msk.f32.vlgmr.msra.gmra.mxu0 %vm328_vm1, %v69_v10  ;;  %v8478_v18 = vld [vmem:[%s11240_s2 + $0x10] sm:$0xff]   ;;  %v208_v19 = vld [vmem:[%s11238_s0 + $0x460] sm:$0xff]  ;;  %v209_v21 = vld [vmem:[%s11238_s0 + $0x468] sm:$0xff] }
   0x8   :  { %7729 = vmatmul.mubr.msk.f32.gmra.mxu1 %vm328_vm1, %v201_v5  ;;  %7533 = vmatprep.mubr.msk.f32.mxu0 %vm328_vm1, %v70_v11  ;;  %v74_v20 = vld [vmem:[%s11238_s0 + $0x30] sm:$0xff]  ;;  %v75_v22 = vld [vmem:[%s11238_s0 + $0x38] sm:$0xff]  ;;  %v76_v24 = vld [vmem:[%s11238_s0 + $0x40] sm:$0xff] }
   0x9   :  { %7731 = vmatprep.mubr.msk.f32.mxu1 %vm328_vm1, %v202_v6  ;;  %7916 = vmatprep.subr.bf16.mxu1 %v8478_v18  ;;  %v210_v23 = vld [vmem:[%s11238_s0 + $0x470] sm:$0xff]  ;;  %v211_v25 = vld [vmem:[%s11238_s0 + $0x478] sm:$0xff]  ;;  %v77_v26 = vld [vmem:[%s11238_s0 + $0x48] sm:$0xff] }
   0xa   :  { %7917 = vmatpush3.bf16.msra.mxu1 %v8478_v18  ;;  %v212_v27 = vld [vmem:[%s11238_s0 + $0x480] sm:$0xff]  ;;  %v78_v28 = vld [vmem:[%s11238_s0 + $0x50] sm:$0xff]  ;;  %v213_v29 = vld [vmem:[%s11238_s0 + $0x488] sm:$0xff] }
   0xb   :  { %7534 = vmatmul.mubr.msk.f32.gmra.mxu0 %vm328_vm1, %v71_v13  ;;  %v79_v30 = vld [vmem:[%s11238_s0 + $0x58] sm:$0xff]  ;;  %v214_v31 = vld [vmem:[%s11238_s0 + $0x490] sm:$0xff]  ;;  %v80_v32 = vld [vmem:[%s11238_s0 + $0x60] sm:$0xff] }
   0xc   :  { %7732 = vmatmul.mubr.msk.f32.gmra.mxu1 %vm328_vm1, %v203_v7  ;;  %7536 = vmatprep.mubr.msk.f32.mxu0 %vm328_vm1, %v72_v15  ;;  %v215_v33 = vld [vmem:[%s11238_s0 + $0x498] sm:$0xff]  ;;  %v81_v34 = vld [vmem:[%s11238_s0 + $0x68] sm:$0xff]  ;;  %v216_v35 = vld [vmem:[%s11238_s0 + $0x4a0] sm:$0xff] }
   0xd   :  { %7734 = vmatprep.mubr.msk.f32.mxu1 %vm328_vm1, %v204_v8  ;;  %v82_v36 = vld [vmem:[%s11238_s0 + $0x70] sm:$0xff]  ;;  %v217_v37 = vld [vmem:[%s11238_s0 + $0x4a8] sm:$0xff]  ;;  %v83_v38 = vld [vmem:[%s11238_s0 + $0x78] sm:$0xff] }
   0xe   :  { %v218_v39 = vld [vmem:[%s11238_s0 + $0x4b0] sm:$0xff]  ;;  %v84_v40 = vld [vmem:[%s11238_s0 + $0x80] sm:$0xff]  ;;  %v8479_v41 = vld [vmem:[%s11240_s2 + $0x8] sm:$0xff]  }
   0xf   :  { %7537 = vmatmul.mubr.msk.f32.gmra.mxu0 %vm328_vm1, %v73_v17  ;;  %v219_v42 = vld [vmem:[%s11238_s0 + $0x4b8] sm:$0xff]  ;;  %v85_v43 = vld [vmem:[%s11238_s0 + $0x88] sm:$0xff]  ;;  %v220_v44 = vld [vmem:[%s11238_s0 + $0x4c0] sm:$0xff]  ;;  %7918 = vmatprep.subr.bf16.mxu1 %v8479_v41 }
  0x10   :  { %7735 = vmatmul.mubr.msk.f32.gmra.mxu1 %vm328_vm1, %v205_v12  ;;  %7539 = vmatprep.mubr.msk.f32.mxu0 %vm328_vm1, %v74_v20  ;;  %v86_v45 = vld [vmem:[%s11238_s0 + $0x90] sm:$0xff]  ;;  %v221_v46 = vld [vmem:[%s11238_s0 + $0x4c8] sm:$0xff]  ;;  %v87_v47 = vld [vmem:[%s11238_s0 + $0x98] sm:$0xff] }
  0x11   :  { %7737 = vmatprep.mubr.msk.f32.mxu1 %vm328_vm1, %v206_v14  ;;  %7919 = vmatpush3.bf16.msra.mxu1 %v8479_v41  ;;  %v222_v48 = vld [vmem:[%s11238_s0 + $0x4d0] sm:$0xff]  ;;  %v88_v49 = vld [vmem:[%s11238_s0 + $0xa0] sm:$0xff]  ;;  %v223_v50 = vld [vmem:[%s11238_s0 + $0x4d8] sm:$0xff] }
  0x12   :  { %v89_v51 = vld [vmem:[%s11238_s0 + $0xa8] sm:$0xff]  ;;  %v224_v52 = vld [vmem:[%s11238_s0 + $0x4e0] sm:$0xff]  ;;  %v90_v53 = vld [vmem:[%s11238_s0 + $0xb0] sm:$0xff] }
  0x13   :  { %7540 = vmatmul.mubr.msk.f32.gmra.mxu0 %vm328_vm1, %v75_v22  ;;  %v225_v54 = vld [vmem:[%s11238_s0 + $0x4e8] sm:$0xff]  ;;  %v91_v55 = vld [vmem:[%s11238_s0 + $0xb8] sm:$0xff]  ;;  %v226_v56 = vld [vmem:[%s11238_s0 + $0x4f0] sm:$0xff] }
  0x14   :  { %7738 = vmatmul.mubr.msk.f32.gmra.mxu1 %vm328_vm1, %v207_v16  ;;  %7542 = vmatprep.mubr.msk.f32.mxu0 %vm328_vm1, %v76_v24  ;;  %v92_v57 = vld [vmem:[%s11238_s0 + $0xc0] sm:$0xff]  ;;  %v227_v58 = vld [vmem:[%s11238_s0 + $0x4f8] sm:$0xff]  ;;  %v93_v59 = vld [vmem:[%s11238_s0 + $0xc8] sm:$0xff] }
  0x15   :  { %7740 = vmatprep.mubr.msk.f32.mxu1 %vm328_vm1, %v208_v19  ;;  %v228_v60 = vld [vmem:[%s11238_s0 + $0x500] sm:$0xff]  ;;  %v94_v61 = vld [vmem:[%s11238_s0 + $0xd0] sm:$0xff]  ;;  %v229_v62 = vld [vmem:[%s11238_s0 + $0x508] sm:$0xff] }
  0x16   :  { %v230_v63 = vld [vmem:[%s11238_s0 + $0x510] sm:$0xff]  ;;  %v95_v0 = vld [vmem:[%s11238_s0 + $0xd8] sm:$0xff]  ;;  %v96_v1 = vld [vmem:[%s11238_s0 + $0xe0] sm:$0xff] }
  0x17   :  { %7543 = vmatmul.mubr.msk.f32.gmra.mxu0 %vm328_vm1, %v77_v26  ;;  %v231_v2 = vld [vmem:[%s11238_s0 + $0x518] sm:$0xff]  ;;  %v232_v3 = vld [vmem:[%s11238_s0 + $0x520] sm:$0xff]  ;;  %v97_v4 = vld [vmem:[%s11238_s0 + $0xe8] sm:$0xff] }
  0x18   :  { %7741 = vmatmul.mubr.msk.f32.gmra.mxu1 %vm328_vm1, %v209_v21  ;;  %7545 = vmatprep.mubr.msk.f32.mxu0 %vm328_vm1, %v78_v28  ;;  %v8480_v5 = vld [vmem:[%s11240_s2] sm:$0xff]   ;;  %v98_v6 = vld [vmem:[%s11238_s0 + $0xf0] sm:$0xff]  ;;  %v233_v7 = vld [vmem:[%s11238_s0 + $0x528] sm:$0xff] }
  0x19   :  { %7743 = vmatprep.mubr.msk.f32.mxu1 %vm328_vm1, %v210_v23  ;;  %7920 = vmatprep.subr.bf16.mxu1 %v8480_v5  ;;  %v234_v8 = vld [vmem:[%s11238_s0 + $0x530] sm:$0xff]  ;;  %v99_v9 = vld [vmem:[%s11238_s0 + $0xf8] sm:$0xff]  ;;  %v100_v10 = vld [vmem:[%s11238_s0 + $0x100] sm:$0xff] }
  0x1a   :  { %7921 = vmatpush3.bf16.msra.mxu1 %v8480_v5  ;;  %v235_v11 = vld [vmem:[%s11238_s0 + $0x538] sm:$0xff]  ;;  %v236_v12 = vld [vmem:[%s11238_s0 + $0x540] sm:$0xff]  ;;  %v101_v13 = vld [vmem:[%s11238_s0 + $0x108] sm:$0xff] }
  0x1b   :  { %7546 = vmatmul.mubr.msk.f32.gmra.mxu0 %vm328_vm1, %v79_v30  ;;  %v102_v14 = vld [vmem:[%s11238_s0 + $0x110] sm:$0xff]  ;;  %v237_v15 = vld [vmem:[%s11238_s0 + $0x548] sm:$0xff]  ;;  %v103_v16 = vld [vmem:[%s11238_s0 + $0x118] sm:$0xff] }
  0x1c   :  { %7744 = vmatmul.mubr.msk.f32.gmra.mxu1 %vm328_vm1, %v211_v25  ;;  %7548 = vmatprep.mubr.msk.f32.mxu0 %vm328_vm1, %v80_v32 }
  0x1d   :  { %7746 = vmatprep.mubr.msk.f32.mxu1 %vm328_vm1, %v212_v27 }
  0x1f   :  { %7549 = vmatmul.mubr.msk.f32.gmra.mxu0 %vm328_vm1, %v81_v34 }
  0x20   :  { %7747 = vmatmul.mubr.msk.f32.gmra.mxu1 %vm328_vm1, %v213_v29  ;;  %7551 = vmatprep.mubr.msk.f32.mxu0 %vm328_vm1, %v82_v36 }
  0x21   :  { %7749 = vmatprep.mubr.msk.f32.mxu1 %vm328_vm1, %v214_v31 }
  0x23   :  { %7552 = vmatmul.mubr.msk.f32.gmra.mxu0 %vm328_vm1, %v83_v38 }
  0x24   :  { %7750 = vmatmul.mubr.msk.f32.gmra.mxu1 %vm328_vm1, %v215_v33  ;;  %7554 = vmatprep.mubr.msk.f32.mxu0 %vm328_vm1, %v84_v40 }
  0x25   :  { %7752 = vmatprep.mubr.msk.f32.mxu1 %vm328_vm1, %v216_v35 }
  0x27   :  { %7555 = vmatmul.mubr.msk.f32.gmra.mxu0 %vm328_vm1, %v85_v43 }
  0x28   :  { %7753 = vmatmul.mubr.msk.f32.gmra.mxu1 %vm328_vm1, %v217_v37  ;;  %7557 = vmatprep.mubr.msk.f32.mxu0 %vm328_vm1, %v86_v45 }
  0x29   :  { %7755 = vmatprep.mubr.msk.f32.mxu1 %vm328_vm1, %v218_v39 }
  0x2b   :  { %7558 = vmatmul.mubr.msk.f32.gmra.mxu0 %vm328_vm1, %v87_v47 }
  0x2c   :  { %7756 = vmatmul.mubr.msk.f32.gmra.mxu1 %vm328_vm1, %v219_v42  ;;  %7560 = vmatprep.mubr.msk.f32.mxu0 %vm328_vm1, %v88_v49 }
  0x2d   :  { %7758 = vmatprep.mubr.msk.f32.mxu1 %vm328_vm1, %v220_v44 }
  0x2f   :  { %7561 = vmatmul.mubr.msk.f32.gmra.mxu0 %vm328_vm1, %v89_v51 }
  0x30   :  { %7759 = vmatmul.mubr.msk.f32.gmra.mxu1 %vm328_vm1, %v221_v46  ;;  %7563 = vmatprep.mubr.msk.f32.mxu0 %vm328_vm1, %v90_v53 }
  0x31   :  { %7761 = vmatprep.mubr.msk.f32.mxu1 %vm328_vm1, %v222_v48 }
  0x33   :  { %7564 = vmatmul.mubr.msk.f32.gmra.mxu0 %vm328_vm1, %v91_v55 }
  0x34   :  { %7762 = vmatmul.mubr.msk.f32.gmra.mxu1 %vm328_vm1, %v223_v50  ;;  %7566 = vmatprep.mubr.msk.f32.mxu0 %vm328_vm1, %v92_v57 }
  0x35   :  { %7764 = vmatprep.mubr.msk.f32.mxu1 %vm328_vm1, %v224_v52 }
  0x37   :  { %7567 = vmatmul.mubr.msk.f32.gmra.mxu0 %vm328_vm1, %v93_v59 }
  0x38   :  { %7765 = vmatmul.mubr.msk.f32.gmra.mxu1 %vm328_vm1, %v225_v54  ;;  %7569 = vmatprep.mubr.msk.f32.mxu0 %vm328_vm1, %v94_v61 }
  0x39   :  { %7767 = vmatprep.mubr.msk.f32.mxu1 %vm328_vm1, %v226_v56 }
  0x3b   :  { %7570 = vmatmul.mubr.msk.f32.gmra.mxu0 %vm328_vm1, %v95_v0 }
  0x3c   :  { %7768 = vmatmul.mubr.msk.f32.gmra.mxu1 %vm328_vm1, %v227_v58  ;;  %7572 = vmatprep.mubr.msk.f32.mxu0 %vm328_vm1, %v96_v1 }
  0x3d   :  { %7770 = vmatprep.mubr.msk.f32.mxu1 %vm328_vm1, %v228_v60 }
  0x3f   :  { %7573 = vmatmul.mubr.msk.f32.gmra.mxu0 %vm328_vm1, %v97_v4 }
  0x40   :  { %7771 = vmatmul.mubr.msk.f32.gmra.mxu1 %vm328_vm1, %v229_v62  ;;  %7575 = vmatprep.mubr.msk.f32.mxu0 %vm328_vm1, %v98_v6 }
  0x41   :  { %7773 = vmatprep.mubr.msk.f32.mxu1 %vm328_vm1, %v230_v63 }
  0x43   :  { %7576 = vmatmul.mubr.msk.f32.gmra.mxu0 %vm328_vm1, %v99_v9 }
  0x44   :  { %7774 = vmatmul.mubr.msk.f32.gmra.mxu1 %vm328_vm1, %v231_v2  ;;  %7578 = vmatprep.mubr.msk.f32.mxu0 %vm328_vm1, %v100_v10 }
  0x45   :  { %7776 = vmatprep.mubr.msk.f32.mxu1 %vm328_vm1, %v232_v3 }
  0x47   :  { %7579 = vmatmul.mubr.msk.f32.gmra.mxu0 %vm328_vm1, %v101_v13 }
  0x48   :  { %7777 = vmatmul.mubr.msk.f32.gmra.mxu1 %vm328_vm1, %v233_v7  ;;  %7581 = vmatprep.mubr.msk.f32.mxu0 %vm328_vm1, %v102_v14 }
  0x49   :  { %7779 = vmatprep.mubr.msk.f32.mxu1 %vm328_vm1, %v234_v8 }
  0x4c   :  { %7780 = vmatmul.mubr.msk.f32.gmra.mxu1 %vm328_vm1, %v235_v11 }
  0x4d   :  { %7782 = vmatprep.mubr.msk.f32.mxu1 %vm328_vm1, %v236_v12 }
  0x4e   :  { %10 = vsyncpa [#allocation3], 0  ;;  %v238_v17 = vld [vmem:[%s11238_s0 + $0x550] sm:$0xff]  ;;  %v104_v18 = vld [vmem:[%s11238_s0 + $0x120] sm:$0xff]  ;;  %7582 = vmatmul.mubr.msk.f32.gmra.mxu0 %vm328_vm1, %v103_v16  ;;  %vm2858_vm2 = vcmask 523264   ;;  %vm6437_vm3 = vcmask 1041409  }
  0x4f   :  { %v8481_v19 = vld [vmem:[%s11241_s3 + $0x38] sm:$0xff]   ;;  %7584 = vmatprep.mubr.msk.f32.mxu0 %vm328_vm1, %v104_v18  ;;  %v105_v21 = vld [vmem:[%s11238_s0 + $0x128] sm:$0xff]  ;;  %v240_v22 = vld [vmem:[%s11238_s0 + $0x560] sm:$0xff]  ;;  %vm6439_vm4 = vcmask 1042434   ;;  %vm6441_vm5 = vcmask 1043459   ;;  %vm6443_vm6 = vcmask 1044484  }
  0x50   :  { %7783 = vmatmul.mubr.msk.f32.gmra.mxu1 %vm328_vm1, %v237_v15  ;;  %v239_v20 = vld [vmem:[%s11238_s0 + $0x558] sm:$0xff]  ;;  %v106_v23 = vld [vmem:[%s11238_s0 + $0x130] sm:$0xff]  ;;  %8178 = vmatprep.subr.bf16.mxu0 %v8481_v19  ;;  %v241_v24 = vld [vmem:[%s11238_s0 + $0x568] sm:$0xff]  ;;  %vm6445_vm7 = vcmask 1045509   ;;  %vm6447_vm8 = vcmask 1046534   ;;  %vm6449_vm9 = vcmask 1047559  }
  0x51   :  { %7785 = vmatprep.mubr.msk.f32.mxu1 %vm328_vm1, %v238_v17  ;;  %8179 = vmatpush3.bf16.msra.mxu0 %v8481_v19  ;;  %v107_v25 = vld [vmem:[%s11238_s0 + $0x138] sm:$0xff]  ;;  %v242_v26 = vld [vmem:[%s11238_s0 + $0x570] sm:$0xff]  ;;  %v108_v27 = vld [vmem:[%s11238_s0 + $0x140] sm:$0xff]  ;;  %vm8528_vm10 = vmmov 0   ;;  %s8529_s30 = smov [#allocation2]  }
  0x52   :  { %7585 = vmatmul.mubr.msk.f32.gmra.mxu0 %vm328_vm1, %v105_v21  ;;  %v243_v28 = vld [vmem:[%s11238_s0 + $0x578] sm:$0xff]  ;;  %v109_v29 = vld [vmem:[%s11238_s0 + $0x148] sm:$0xff]  ;;  %v244_v30 = vld [vmem:[%s11238_s0 + $0x580] sm:$0xff]  ;;  %s6558_s6 = sshll.u32 %s8529_s30, 4  ;;  %s6559_s6 = int_to_ptr.vmem [resolvable:$true] %s6558_s6 }
  0x53   :  { %7587 = vmatprep.mubr.msk.f32.mxu0 %vm328_vm1, %v106_v23  ;;  %v110_v31 = vld [vmem:[%s11238_s0 + $0x150] sm:$0xff]  ;;  %v245_v32 = vld [vmem:[%s11238_s0 + $0x588] sm:$0xff]  ;;  %v111_v33 = vld [vmem:[%s11238_s0 + $0x158] sm:$0xff]  ;;  %s8505_s7 = scalar_lea.vmem %s6559_s6, 256  ;;  %p8510_p1 = scmp.lt.s32.totalorder %s6559_s6, %s6559_s6 }
  0x54   :  { %7786 = vmatmul.mubr.msk.f32.gmra.mxu1 %vm328_vm1, %v239_v20  ;;  %v246_v34 = vld [vmem:[%s11238_s0 + $0x590] sm:$0xff]  ;;  %v112_v35 = vld [vmem:[%s11238_s0 + $0x160] sm:$0xff]  ;;  %v247_v36 = vld [vmem:[%s11238_s0 + $0x598] sm:$0xff]  ;;  %p8506_p0 = scmp.ne.s32.totalorder %s6559_s6, %s8505_s7  ;;  %p8511_p2 = scmp.lt.s32.totalorder %s8505_s7, %s8505_s7 }
  0x55   :  { %7788 = vmatprep.mubr.msk.f32.mxu1 %vm328_vm1, %v240_v22  ;;  %v113_v37 = vld [vmem:[%s11238_s0 + $0x168] sm:$0xff]  ;;  %v248_v38 = vld [vmem:[%s11238_s0 + $0x5a0] sm:$0xff]  ;;  %v114_v39 = vld [vmem:[%s11238_s0 + $0x170] sm:$0xff] }
  0x56   :  { %7588 = vmatmul.mubr.msk.f32.gmra.mxu0 %vm328_vm1, %v107_v25  ;;  %v249_v40 = vld [vmem:[%s11238_s0 + $0x5a8] sm:$0xff]  ;;  %v115_v41 = vld [vmem:[%s11238_s0 + $0x178] sm:$0xff]  ;;  %v250_v42 = vld [vmem:[%s11238_s0 + $0x5b0] sm:$0xff]  ;;  %p8512_p3 = por %p8511_p2, %p8510_p1 }
  0x57   :  { %7590 = vmatprep.mubr.msk.f32.mxu0 %vm328_vm1, %v108_v27  ;;  %v116_v43 = vld [vmem:[%s11238_s0 + $0x180] sm:$0xff]  ;;  %v251_v44 = vld [vmem:[%s11238_s0 + $0x5b8] sm:$0xff]  ;;  %v117_v45 = vld [vmem:[%s11238_s0 + $0x188] sm:$0xff] }
  0x58   :  { %7789 = vmatmul.mubr.msk.f32.gmra.mxu1 %vm328_vm1, %v241_v24  ;;  %v252_v46 = vld [vmem:[%s11238_s0 + $0x5c0] sm:$0xff]  ;;  %v118_v47 = vld [vmem:[%s11238_s0 + $0x190] sm:$0xff]  ;;  %v253_v48 = vld [vmem:[%s11238_s0 + $0x5c8] sm:$0xff]  ;;  %p8513_p4 = pnand %p8512_p3, %p8506_p0 }
  0x59   :  { %7791 = vmatprep.mubr.msk.f32.mxu1 %vm328_vm1, %v242_v26  ;;  %v119_v49 = vld [vmem:[%s11238_s0 + $0x198] sm:$0xff]  ;;  %v254_v50 = vld [vmem:[%s11238_s0 + $0x5d0] sm:$0xff]  ;;  %v120_v51 = vld [vmem:[%s11238_s0 + $0x1a0] sm:$0xff] }
  0x5a   :  { %7591 = vmatmul.mubr.msk.f32.gmra.mxu0 %vm328_vm1, %v109_v29  ;;  %v8482_v52 = vld [vmem:[%s11241_s3 + $0x30] sm:$0xff]   ;;  %v255_v53 = vld [vmem:[%s11238_s0 + $0x5d8] sm:$0xff]  ;;  %v121_v54 = vld [vmem:[%s11238_s0 + $0x1a8] sm:$0xff] }
  0x5b   :  { %7593 = vmatprep.mubr.msk.f32.mxu0 %vm328_vm1, %v110_v31  ;;  %v256_v55 = vld [vmem:[%s11238_s0 + $0x5e0] sm:$0xff]  ;;  %v122_v56 = vld [vmem:[%s11238_s0 + $0x1b0] sm:$0xff]  ;;  %8180 = vmatprep.subr.bf16.mxu0 %v8482_v52  ;;  %v257_v57 = vld [vmem:[%s11238_s0 + $0x5e8] sm:$0xff] }
  0x5c   :  { %7792 = vmatmul.mubr.msk.f32.gmra.mxu1 %vm328_vm1, %v243_v28  ;;  %8181 = vmatpush3.bf16.msra.mxu0 %v8482_v52  ;;  %v123_v58 = vld [vmem:[%s11238_s0 + $0x1b8] sm:$0xff]  ;;  %v258_v59 = vld [vmem:[%s11238_s0 + $0x5f0] sm:$0xff]  ;;  %v124_v60 = vld [vmem:[%s11238_s0 + $0x1c0] sm:$0xff] }
  0x5d   :  { %7794 = vmatprep.mubr.msk.f32.mxu1 %vm328_vm1, %v244_v30  ;;  %v259_v61 = vld [vmem:[%s11238_s0 + $0x5f8] sm:$0xff]  ;;  %v125_v62 = vld [vmem:[%s11238_s0 + $0x1c8] sm:$0xff]  ;;  %v260_v63 = vld [vmem:[%s11238_s0 + $0x600] sm:$0xff] }
  0x5e   :  { %7594 = vmatmul.mubr.msk.f32.gmra.mxu0 %vm328_vm1, %v111_v33  ;;  %v126_v0 = vld [vmem:[%s11238_s0 + $0x1d0] sm:$0xff]  ;;  %v261_v1 = vld [vmem:[%s11238_s0 + $0x608] sm:$0xff]  ;;  %v127_v2 = vld [vmem:[%s11238_s0 + $0x1d8] sm:$0xff] }
  0x5f   :  { %7596 = vmatprep.mubr.msk.f32.mxu0 %vm328_vm1, %v112_v35  ;;  %v262_v3 = vld [vmem:[%s11238_s0 + $0x610] sm:$0xff]  ;;  %v128_v4 = vld [vmem:[%s11238_s0 + $0x1e0] sm:$0xff]  ;;  %v263_v5 = vld [vmem:[%s11238_s0 + $0x618] sm:$0xff] }
  0x60   :  { %7795 = vmatmul.mubr.msk.f32.gmra.mxu1 %vm328_vm1, %v245_v32  ;;  %v129_v6 = vld [vmem:[%s11238_s0 + $0x1e8] sm:$0xff]  ;;  %v264_v7 = vld [vmem:[%s11238_s0 + $0x620] sm:$0xff]  ;;  %v130_v8 = vld [vmem:[%s11238_s0 + $0x1f0] sm:$0xff] }
  0x61   :  { %7797 = vmatprep.mubr.msk.f32.mxu1 %vm328_vm1, %v246_v34  ;;  %v265_v9 = vld [vmem:[%s11238_s0 + $0x628] sm:$0xff]  ;;  %v131_v10 = vld [vmem:[%s11238_s0 + $0x1f8] sm:$0xff]  ;;  %v266_v11 = vld [vmem:[%s11238_s0 + $0x630] sm:$0xff] }
  0x62   :  { %7597 = vmatmul.mubr.msk.f32.gmra.mxu0 %vm328_vm1, %v113_v37  ;;  %v132_v12 = vld [vmem:[%s11238_s0 + $0x200] sm:$0xff]  ;;  %v267_v13 = vld [vmem:[%s11238_s0 + $0x638] sm:$0xff]  ;;  %v133_v14 = vld [vmem:[%s11238_s0 + $0x208] sm:$0xff] }
  0x63   :  { %7599 = vmatprep.mubr.msk.f32.mxu0 %vm328_vm1, %v114_v39  ;;  %v268_v15 = vld [vmem:[%s11238_s0 + $0x640] sm:$0xff]  ;;  %v134_v16 = vld [vmem:[%s11238_s0 + $0x210] sm:$0xff]  ;;  %v269_v17 = vld [vmem:[%s11238_s0 + $0x648] sm:$0xff] }
  0x64   :  { %7798 = vmatmul.mubr.msk.f32.gmra.mxu1 %vm328_vm1, %v247_v36  ;;  %v135_v18 = vld [vmem:[%s11238_s0 + $0x218] sm:$0xff]  ;;  %v270_v19 = vld [vmem:[%s11238_s0 + $0x650] sm:$0xff]  ;;  %v136_v20 = vld [vmem:[%s11238_s0 + $0x220] sm:$0xff] }
  0x65   :  { %7800 = vmatprep.mubr.msk.f32.mxu1 %vm328_vm1, %v248_v38  ;;  %v8483_v21 = vld [vmem:[%s11241_s3 + $0x28] sm:$0xff]   ;;  %v271_v22 = vld [vmem:[%s11238_s0 + $0x658] sm:$0xff]  ;;  %v272_v24 = vld [vmem:[%s11238_s0 + $0x660] sm:$0xff] }
  0x66   :  { %7600 = vmatmul.mubr.msk.f32.gmra.mxu0 %vm328_vm1, %v115_v41  ;;  %v137_v23 = vld [vmem:[%s11238_s0 + $0x228] sm:$0xff]  ;;  %v138_v25 = vld [vmem:[%s11238_s0 + $0x230] sm:$0xff]  ;;  %8182 = vmatprep.subr.bf16.mxu0 %v8483_v21  ;;  %v139_v27 = vld [vmem:[%s11238_s0 + $0x238] sm:$0xff] }
  0x67   :  { %7602 = vmatprep.mubr.msk.f32.mxu0 %vm328_vm1, %v116_v43  ;;  %8183 = vmatpush3.bf16.msra.mxu0 %v8483_v21  ;;  %v273_v26 = vld [vmem:[%s11238_s0 + $0x668] sm:$0xff]  ;;  %v274_v28 = vld [vmem:[%s11238_s0 + $0x670] sm:$0xff]  ;;  %v140_v29 = vld [vmem:[%s11238_s0 + $0x240] sm:$0xff] }
  0x68   :  { %7801 = vmatmul.mubr.msk.f32.gmra.mxu1 %vm328_vm1, %v249_v40  ;;  %v275_v30 = vld [vmem:[%s11238_s0 + $0x678] sm:$0xff]  ;;  %v141_v31 = vld [vmem:[%s11238_s0 + $0x248] sm:$0xff]  ;;  %v276_v32 = vld [vmem:[%s11238_s0 + $0x680] sm:$0xff] }
  0x69   :  { %7803 = vmatprep.mubr.msk.f32.mxu1 %vm328_vm1, %v250_v42  ;;  %v142_v33 = vld [vmem:[%s11238_s0 + $0x250] sm:$0xff]  ;;  %v277_v34 = vld [vmem:[%s11238_s0 + $0x688] sm:$0xff]  ;;  %v143_v35 = vld [vmem:[%s11238_s0 + $0x258] sm:$0xff] }
  0x6a   :  { %7603 = vmatmul.mubr.msk.f32.gmra.mxu0 %vm328_vm1, %v117_v45  ;;  %v278_v36 = vld [vmem:[%s11238_s0 + $0x690] sm:$0xff]  ;;  %v144_v37 = vld [vmem:[%s11238_s0 + $0x260] sm:$0xff]  ;;  %v279_v38 = vld [vmem:[%s11238_s0 + $0x698] sm:$0xff] }
  0x6b   :  { %7605 = vmatprep.mubr.msk.f32.mxu0 %vm328_vm1, %v118_v47  ;;  %v145_v39 = vld [vmem:[%s11238_s0 + $0x268] sm:$0xff]  ;;  %v280_v40 = vld [vmem:[%s11238_s0 + $0x6a0] sm:$0xff]  ;;  %v146_v41 = vld [vmem:[%s11238_s0 + $0x270] sm:$0xff] }
  0x6c   :  { %7804 = vmatmul.mubr.msk.f32.gmra.mxu1 %vm328_vm1, %v251_v44  ;;  %v281_v42 = vld [vmem:[%s11238_s0 + $0x6a8] sm:$0xff]  ;;  %v147_v43 = vld [vmem:[%s11238_s0 + $0x278] sm:$0xff]  ;;  %v282_v44 = vld [vmem:[%s11238_s0 + $0x6b0] sm:$0xff] }
  0x6d   :  { %7806 = vmatprep.mubr.msk.f32.mxu1 %vm328_vm1, %v252_v46  ;;  %v148_v45 = vld [vmem:[%s11238_s0 + $0x280] sm:$0xff]  ;;  %v283_v46 = vld [vmem:[%s11238_s0 + $0x6b8] sm:$0xff]  ;;  %v149_v47 = vld [vmem:[%s11238_s0 + $0x288] sm:$0xff] }
  0x6e   :  { %7606 = vmatmul.mubr.msk.f32.gmra.mxu0 %vm328_vm1, %v119_v49  ;;  %v150_v49 = vld [vmem:[%s11238_s0 + $0x290] sm:$0xff] }
  0x6f   :  { %7608 = vmatprep.mubr.msk.f32.mxu0 %vm328_vm1, %v120_v51  ;;  %v151_v51 = vld [vmem:[%s11238_s0 + $0x298] sm:$0xff]  ;;  %v286_v52 = vld [vmem:[%s11238_s0 + $0x6d0] sm:$0xff] }
  0x70   :  { %7807 = vmatmul.mubr.msk.f32.gmra.mxu1 %vm328_vm1, %v253_v48  ;;  %v284_v48 = vld [vmem:[%s11238_s0 + $0x6c0] sm:$0xff] }
  0x71   :  { %7809 = vmatprep.mubr.msk.f32.mxu1 %vm328_vm1, %v254_v50  ;;  %v285_v50 = vld [vmem:[%s11238_s0 + $0x6c8] sm:$0xff] }
  0x72   :  { %7609 = vmatmul.mubr.msk.f32.gmra.mxu0 %vm328_vm1, %v121_v54  ;;  %v8484_v54 = vld [vmem:[%s11241_s3 + $0x20] sm:$0xff]  }
  0x73   :  { %7611 = vmatprep.mubr.msk.f32.mxu0 %vm328_vm1, %v122_v56  ;;  %v153_v56 = vld [vmem:[%s11238_s0 + $0x2a8] sm:$0xff]  ;;  %8184 = vmatprep.subr.bf16.mxu0 %v8484_v54 }
  0x74   :  { %7810 = vmatmul.mubr.msk.f32.gmra.mxu1 %vm328_vm1, %v255_v53  ;;  %v152_v53 = vld [vmem:[%s11238_s0 + $0x2a0] sm:$0xff]  ;;  %8185 = vmatpush3.bf16.msra.mxu0 %v8484_v54 }
  0x75   :  { %7812 = vmatprep.mubr.msk.f32.mxu1 %vm328_vm1, %v256_v55  ;;  %v287_v55 = vld [vmem:[%s11238_s0 + $0x6d8] sm:$0xff] }
  0x76   :  { %7612 = vmatmul.mubr.msk.f32.gmra.mxu0 %vm328_vm1, %v123_v58  ;;  %v154_v58 = vld [vmem:[%s11238_s0 + $0x2b0] sm:$0xff] }
  0x77   :  { %7614 = vmatprep.mubr.msk.f32.mxu0 %vm328_vm1, %v124_v60  ;;  %v155_v60 = vld [vmem:[%s11238_s0 + $0x2b8] sm:$0xff] }
  0x78   :  { %7813 = vmatmul.mubr.msk.f32.gmra.mxu1 %vm328_vm1, %v257_v57  ;;  %v288_v57 = vld [vmem:[%s11238_s0 + $0x6e0] sm:$0xff] }
  0x79   :  { %7815 = vmatprep.mubr.msk.f32.mxu1 %vm328_vm1, %v258_v59  ;;  %v289_v59 = vld [vmem:[%s11238_s0 + $0x6e8] sm:$0xff] }
  0x7a   :  { %7615 = vmatmul.mubr.msk.f32.gmra.mxu0 %vm328_vm1, %v125_v62  ;;  %v156_v62 = vld [vmem:[%s11238_s0 + $0x2c0] sm:$0xff] }
  0x7b   :  { %7617 = vmatprep.mubr.msk.f32.mxu0 %vm328_vm1, %v126_v0  ;;  %v157_v0 = vld [vmem:[%s11238_s0 + $0x2c8] sm:$0xff] }
  0x7c   :  { %7816 = vmatmul.mubr.msk.f32.gmra.mxu1 %vm328_vm1, %v259_v61  ;;  %v290_v61 = vld [vmem:[%s11238_s0 + $0x6f0] sm:$0xff] }
  0x7d   :  { %7818 = vmatprep.mubr.msk.f32.mxu1 %vm328_vm1, %v260_v63  ;;  %v291_v63 = vld [vmem:[%s11238_s0 + $0x6f8] sm:$0xff] }
  0x7e   :  { %7618 = vmatmul.mubr.msk.f32.gmra.mxu0 %vm328_vm1, %v127_v2  ;;  %v158_v2 = vld [vmem:[%s11238_s0 + $0x2d0] sm:$0xff] }
  0x7f   :  { %7620 = vmatprep.mubr.msk.f32.mxu0 %vm328_vm1, %v128_v4  ;;  %v159_v4 = vld [vmem:[%s11238_s0 + $0x2d8] sm:$0xff] }
  0x80   :  { %7819 = vmatmul.mubr.msk.f32.gmra.mxu1 %vm328_vm1, %v261_v1  ;;  %v292_v1 = vld [vmem:[%s11238_s0 + $0x700] sm:$0xff] }
  0x81   :  { %7821 = vmatprep.mubr.msk.f32.mxu1 %vm328_vm1, %v262_v3  ;;  %v293_v3 = vld [vmem:[%s11238_s0 + $0x708] sm:$0xff] }
  0x82   :  { %7621 = vmatmul.mubr.msk.f32.gmra.mxu0 %vm328_vm1, %v129_v6  ;;  %v160_v6 = vld [vmem:[%s11238_s0 + $0x2e0] sm:$0xff] }
  0x83   :  { %7623 = vmatprep.mubr.msk.f32.mxu0 %vm328_vm1, %v130_v8  ;;  %v161_v8 = vld [vmem:[%s11238_s0 + $0x2e8] sm:$0xff] }
  0x84   :  { %7822 = vmatmul.mubr.msk.f32.gmra.mxu1 %vm328_vm1, %v263_v5  ;;  %v294_v5 = vld [vmem:[%s11238_s0 + $0x710] sm:$0xff] }
  0x85   :  { %7824 = vmatprep.mubr.msk.f32.mxu1 %vm328_vm1, %v264_v7  ;;  %v295_v7 = vld [vmem:[%s11238_s0 + $0x718] sm:$0xff] }
  0x86   :  { %7624 = vmatmul.mubr.msk.f32.gmra.mxu0 %vm328_vm1, %v131_v10  ;;  %v296_v10 = vld [vmem:[%s11238_s0 + $0x720] sm:$0xff] }
  0x87   :  { %7626 = vmatprep.mubr.msk.f32.mxu0 %vm328_vm1, %v132_v12 }
  0x88   :  { %7825 = vmatmul.mubr.msk.f32.gmra.mxu1 %vm328_vm1, %v265_v9  ;;  %v9362_v9 = vld [vmem:[%s11242_s4] ss:$0 sm:$0xff] }
  0x89   :  { %7827 = vmatprep.mubr.msk.f32.mxu1 %vm328_vm1, %v266_v11  ;;  %v162_v11 = vld [vmem:[%s11238_s0 + $0x2f0] sm:$0xff] }
  0x8a   :  { %7627 = vmatmul.mubr.msk.f32.gmra.mxu0 %vm328_vm1, %v133_v14  ;;  %v297_v14 = vld [vmem:[%s11238_s0 + $0x728] sm:$0xff] }
  0x8b   :  { %7629 = vmatprep.mubr.msk.f32.mxu0 %vm328_vm1, %v134_v16 }
  0x8c   :  { %7828 = vmatmul.mubr.msk.f32.gmra.mxu1 %vm328_vm1, %v267_v13 }
  0x8d   :  { %7830 = vmatprep.mubr.msk.f32.mxu1 %vm328_vm1, %v268_v15  ;;  %v163_v15 = vld [vmem:[%s11238_s0 + $0x2f8] sm:$0xff] }
  0x8e   :  { %7630 = vmatmul.mubr.msk.f32.gmra.mxu0 %vm328_vm1, %v135_v18  ;;  %v164_v18 = vld [vmem:[%s11238_s0 + $0x300] sm:$0xff] }
  0x8f   :  { %7632 = vmatprep.mubr.msk.f32.mxu0 %vm328_vm1, %v136_v20 }
  0x90   :  { %7831 = vmatmul.mubr.msk.f32.gmra.mxu1 %vm328_vm1, %v269_v17  ;;  %v298_v17 = vld [vmem:[%s11238_s0 + $0x730] sm:$0xff] }
  0x91   :  { %7833 = vmatprep.mubr.msk.f32.mxu1 %vm328_vm1, %v270_v19 }
  0x92   :  { %7633 = vmatmul.mubr.msk.f32.gmra.mxu0 %vm328_vm1, %v137_v23 }
  0x93   :  { %7635 = vmatprep.mubr.msk.f32.mxu0 %vm328_vm1, %v138_v25  ;;  %v165_v25 = vld [vmem:[%s11238_s0 + $0x308] sm:$0xff] }
  0x94   :  { %7834 = vmatmul.mubr.msk.f32.gmra.mxu1 %vm328_vm1, %v271_v22 }
  0x95   :  { %7836 = vmatprep.mubr.msk.f32.mxu1 %vm328_vm1, %v272_v24  ;;  %v299_v24 = vld [vmem:[%s11238_s0 + $0x738] sm:$0xff] }
  0x96   :  { %7636 = vmatmul.mubr.msk.f32.gmra.mxu0 %vm328_vm1, %v139_v27  ;;  %v300_v27 = vld [vmem:[%s11238_s0 + $0x740] sm:$0xff] }
  0x97   :  { %7638 = vmatprep.mubr.msk.f32.mxu0 %vm328_vm1, %v140_v29 }
  0x98   :  { %7837 = vmatmul.mubr.msk.f32.gmra.mxu1 %vm328_vm1, %v273_v26 }
  0x99   :  { %7839 = vmatprep.mubr.msk.f32.mxu1 %vm328_vm1, %v274_v28  ;;  %v166_v28 = vld [vmem:[%s11238_s0 + $0x310] sm:$0xff] }
  0x9a   :  { %7639 = vmatmul.mubr.msk.f32.gmra.mxu0 %vm328_vm1, %v141_v31 }
  0x9b   :  { %7641 = vmatprep.mubr.msk.f32.mxu0 %vm328_vm1, %v142_v33 }
  0x9c   :  { %7840 = vmatmul.mubr.msk.f32.gmra.mxu1 %vm328_vm1, %v275_v30 }
  0x9d   :  { %7842 = vmatprep.mubr.msk.f32.mxu1 %vm328_vm1, %v276_v32 }
  0x9e   :  { %7642 = vmatmul.mubr.msk.f32.gmra.mxu0 %vm328_vm1, %v143_v35 }
  0x9f   :  { %7644 = vmatprep.mubr.msk.f32.mxu0 %vm328_vm1, %v144_v37  ;;  %v167_v37 = vld [vmem:[%s11238_s0 + $0x318] sm:$0xff] }
  0xa0   :  { %7843 = vmatmul.mubr.msk.f32.gmra.mxu1 %vm328_vm1, %v277_v34 }
  0xa1   :  { %7845 = vmatprep.mubr.msk.f32.mxu1 %vm328_vm1, %v278_v36  ;;  %v301_v36 = vld [vmem:[%s11238_s0 + $0x748] sm:$0xff] }
  0xa2   :  { %7645 = vmatmul.mubr.msk.f32.gmra.mxu0 %vm328_vm1, %v145_v39  ;;  %v302_v39 = vld [vmem:[%s11238_s0 + $0x750] sm:$0xff] }
  0xa3   :  { %7647 = vmatprep.mubr.msk.f32.mxu0 %vm328_vm1, %v146_v41  ;;  %v168_v41 = vld [vmem:[%s11238_s0 + $0x320] sm:$0xff] }
  0xa4   :  { %7846 = vmatmul.mubr.msk.f32.gmra.mxu1 %vm328_vm1, %v279_v38 }
  0xa5   :  { %7848 = vmatprep.mubr.msk.f32.mxu1 %vm328_vm1, %v280_v40 }
  0xa6   :  { %7648 = vmatmul.mubr.msk.f32.gmra.mxu0 %vm328_vm1, %v147_v43 }
  0xa7   :  { %7650 = vmatprep.mubr.msk.f32.mxu0 %vm328_vm1, %v148_v45 }
  0xa8   :  { %7849 = vmatmul.mubr.msk.f32.gmra.mxu1 %vm328_vm1, %v281_v42 }
  0xa9   :  { %7851 = vmatprep.mubr.msk.f32.mxu1 %vm328_vm1, %v282_v44  ;;  %v8485_v44 = vld [vmem:[%s11241_s3 + $0x18] sm:$0xff]  }
  0xaa   :  { %7651 = vmatmul.mubr.msk.f32.gmra.mxu0 %vm328_vm1, %v149_v47  ;;  %8186 = vmatprep.subr.bf16.mxu0 %v8485_v44 }
  0xab   :  { %7653 = vmatprep.mubr.msk.f32.mxu0 %vm328_vm1, %v150_v49  ;;  %8187 = vmatpush3.bf16.msra.mxu0 %v8485_v44  ;;  %v177_v44 = vld [vmem:[%s11238_s0 + $0x368] sm:$0xff] }
  0xac   :  { %7852 = vmatmul.mubr.msk.f32.gmra.mxu1 %vm328_vm1, %v283_v46 }
  0xad   :  { %7854 = vmatprep.mubr.msk.f32.mxu1 %vm328_vm1, %v284_v48 }
  0xae   :  { %7654 = vmatmul.mubr.msk.f32.gmra.mxu0 %vm328_vm1, %v151_v51  ;;  %v169_v51 = vld [vmem:[%s11238_s0 + $0x328] sm:$0xff] }
  0xaf   :  { %7656 = vmatprep.mubr.msk.f32.mxu0 %vm328_vm1, %v152_v53  ;;  %v304_v53 = vld [vmem:[%s11238_s0 + $0x760] sm:$0xff] }
  0xb0   :  { %7855 = vmatmul.mubr.msk.f32.gmra.mxu1 %vm328_vm1, %v285_v50  ;;  %v303_v50 = vld [vmem:[%s11238_s0 + $0x758] sm:$0xff] }
  0xb1   :  { %7857 = vmatprep.mubr.msk.f32.mxu1 %vm328_vm1, %v286_v52 }
  0xb2   :  { %7657 = vmatmul.mubr.msk.f32.gmra.mxu0 %vm328_vm1, %v153_v56 }
  0xb3   :  { %7659 = vmatprep.mubr.msk.f32.mxu0 %vm328_vm1, %v154_v58 }
  0xb4   :  { %7858 = vmatmul.mubr.msk.f32.gmra.mxu1 %vm328_vm1, %v287_v55  ;;  %v170_v55 = vld [vmem:[%s11238_s0 + $0x330] sm:$0xff] }
  0xb5   :  { %7860 = vmatprep.mubr.msk.f32.mxu1 %vm328_vm1, %v288_v57 }
  0xb6   :  { %7660 = vmatmul.mubr.msk.f32.gmra.mxu0 %vm328_vm1, %v155_v60 }
  0xb7   :  { %7662 = vmatprep.mubr.msk.f32.mxu0 %vm328_vm1, %v156_v62 }
  0xb8   :  { %7861 = vmatmul.mubr.msk.f32.gmra.mxu1 %vm328_vm1, %v289_v59 }
  0xb9   :  { %7863 = vmatprep.mubr.msk.f32.mxu1 %vm328_vm1, %v290_v61 }
  0xba   :  { %7663 = vmatmul.mubr.msk.f32.gmra.mxu0 %vm328_vm1, %v157_v0  ;;  %v171_v0 = vld [vmem:[%s11238_s0 + $0x338] sm:$0xff] }
  0xbb   :  { %7665 = vmatprep.mubr.msk.f32.mxu0 %vm328_vm1, %v158_v2  ;;  %v306_v2 = vld [vmem:[%s11238_s0 + $0x770] sm:$0xff] }
  0xbc   :  { %7864 = vmatmul.mubr.msk.f32.gmra.mxu1 %vm328_vm1, %v291_v63  ;;  %v305_v63 = vld [vmem:[%s11238_s0 + $0x768] sm:$0xff] }
  0xbd   :  { %7866 = vmatprep.mubr.msk.f32.mxu1 %vm328_vm1, %v292_v1 }
  0xbe   :  { %7666 = vmatmul.mubr.msk.f32.gmra.mxu0 %vm328_vm1, %v159_v4  ;;  %v172_v4 = vld [vmem:[%s11238_s0 + $0x340] sm:$0xff] }
  0xbf   :  { %7668 = vmatprep.mubr.msk.f32.mxu0 %vm328_vm1, %v160_v6 }
  0xc0   :  { %7867 = vmatmul.mubr.msk.f32.gmra.mxu1 %vm328_vm1, %v293_v3 }
  0xc1   :  { %7869 = vmatprep.mubr.msk.f32.mxu1 %vm328_vm1, %v294_v5 }
  0xc2   :  { %7669 = vmatmul.mubr.msk.f32.gmra.mxu0 %vm328_vm1, %v161_v8 }
  0xc3   :  { %7671 = vmatprep.mubr.msk.f32.mxu0 %vm328_vm1, %v162_v11 }
  0xc4   :  { %v7727_v12 = vpop.f32.mrf.mxu1  ;;  %7870 = vmatmul.mubr.msk.f32.gmra.mxu1 %vm328_vm1, %v295_v7 }
  0xc5   :  { %v1823_v13 = vadd.f32 %v7727_v12, %v9362_v9  ;;  %7872 = vmatprep.mubr.msk.f32.mxu1 %vm328_vm1, %v296_v10 }
  0xc6   :  { %v1817_v16 = vpop.f32.mrf.mxu1  ;;  %7672 = vmatmul.mubr.msk.f32.gmra.mxu0 %vm328_vm1, %v163_v15 }
  0xc7   :  { %v1818_v19 = vadd.f32 %v9362_v9, %v1817_v16  ;;  %v2577_v21 = vmax.f32 %v1823_v13, 0.0  ;;  %7674 = vmatprep.mubr.msk.f32.mxu0 %vm328_vm1, %v164_v18  ;;  %v9409_v32 = vpop.f32.mrf.mxu0  ;;  %v307_v13 = vld [vmem:[%s11238_s0 + $0x778] sm:$0xff]  ;;  %v308_v16 = vld [vmem:[%s11238_s0 + $0x780] sm:$0xff]  ;;  %v174_v18 = vld [vmem:[%s11238_s0 + $0x350] sm:$0xff] }
  0xc8   :  { %v7730_v20 = vpop.f32.mrf.mxu1  ;;  %7873 = vmatmul.mubr.msk.f32.gmra.mxu1 %vm328_vm1, %v297_v14  ;;  %v173_v14 = vld [vmem:[%s11238_s0 + $0x348] sm:$0xff] }
  0xc9   :  { %v2576_v22 = vmax.f32 %v1818_v19, 0.0  ;;  %v1833_v23 = vadd.f32 %v7730_v20, %v9362_v9  ;;  %7875 = vmatprep.mubr.msk.f32.mxu1 %vm328_vm1, %v298_v17  ;;  %v9424_v40 = vpop.f32.mrf.mxu0 }
  0xca   :  { %v1827_v26 = vpop.f32.mrf.mxu1  ;;  %7675 = vmatmul.mubr.msk.f32.gmra.mxu0 %vm328_vm1, %v165_v25 }
  0xcb   :  { %v9405_v29 = vpack.c.bf16 %v2577_v21, %v2576_v22  ;;  %v1828_v30 = vadd.f32 %v9362_v9, %v1827_v26  ;;  %v2579_v33 = vmax.f32 %v1833_v23, 0.0  ;;  %7677 = vmatprep.mubr.msk.f32.mxu0 %vm328_vm1, %v166_v28  ;;  %v9436_v46 = vpop.f32.mrf.mxu0  ;;  %v309_v26 = vld [vmem:[%s11238_s0 + $0x788] sm:$0xff] }
  0xcc   :  { %v7733_v31 = vpop.f32.mrf.mxu1  ;;  %7876 = vmatmul.mubr.msk.f32.gmra.mxu1 %vm328_vm1, %v299_v24 }
  0xcd   :  { %v2578_v34 = vmax.f32 %v1828_v30, 0.0  ;;  %v1843_v35 = vadd.f32 %v7733_v31, %v9362_v9  ;;  %7878 = vmatprep.mubr.msk.f32.mxu1 %vm328_vm1, %v300_v27  ;;  %v9451_v54 = vpop.f32.mrf.mxu0  ;;  %v175_v27 = vld [vmem:[%s11238_s0 + $0x358] sm:$0xff]  ;;  %v310_v30 = vld [vmem:[%s11238_s0 + $0x790] sm:$0xff] }
  0xce   :  { %v1837_v38 = vpop.f32.mrf.mxu1  ;;  %7678 = vmatmul.mubr.msk.f32.gmra.mxu0 %vm328_vm1, %v167_v37 }
  0xcf   :  { %v9429_v42 = vpack.c.bf16 %v2579_v33, %v2578_v34  ;;  %v1838_v43 = vadd.f32 %v9362_v9, %v1837_v38  ;;  %v2581_v47 = vmax.f32 %v1843_v35, 0.0  ;;  %7680 = vmatprep.mubr.msk.f32.mxu0 %vm328_vm1, %v168_v41  ;;  %v9460_v59 = vpop.f32.mrf.mxu0  ;;  %v176_v33 = vld [vmem:[%s11238_s0 + $0x360] sm:$0xff] }
  0xd0   :  { %v7736_v45 = vpop.f32.mrf.mxu1  ;;  %7879 = vmatmul.mubr.msk.f32.gmra.mxu1 %vm328_vm1, %v301_v36 }
  0xd1   :  { %v2580_v48 = vmax.f32 %v1838_v43, 0.0  ;;  %v1853_v49 = vadd.f32 %v7736_v45, %v9362_v9  ;;  %7881 = vmatprep.mubr.msk.f32.mxu1 %vm328_vm1, %v302_v39  ;;  %v9475_v3 = vpop.f32.mrf.mxu0  ;;  %v311_v43 = vld [vmem:[%s11238_s0 + $0x798] sm:$0xff] }
  0xd2   :  { %v1847_v52 = vpop.f32.mrf.mxu1  ;;  %7681 = vmatmul.mubr.msk.f32.gmra.mxu0 %vm328_vm1, %v169_v51 }
  0xd3   :  { %v9456_v56 = vpack.c.bf16 %v2581_v47, %v2580_v48  ;;  %v1848_v57 = vadd.f32 %v9362_v9, %v1847_v52  ;;  %v2583_v60 = vmax.f32 %v1853_v49, 0.0  ;;  %7683 = vmatprep.mubr.msk.f32.mxu0 %vm328_vm1, %v170_v55  ;;  %v9484_v8 = vpop.f32.mrf.mxu0  ;;  %v312_v47 = vld [vmem:[%s11238_s0 + $0x7a0] sm:$0xff]  ;;  %v178_v49 = vld [vmem:[%s11238_s0 + $0x370] sm:$0xff] }
  0xd4   :  { %v7739_v58 = vpop.f32.mrf.mxu1  ;;  %7882 = vmatmul.mubr.msk.f32.gmra.mxu1 %vm328_vm1, %v303_v50 }
  0xd5   :  { %v2582_v61 = vmax.f32 %v1848_v57, 0.0  ;;  %v1863_v62 = vadd.f32 %v7739_v58, %v9362_v9  ;;  %7884 = vmatprep.mubr.msk.f32.mxu1 %vm328_vm1, %v304_v53  ;;  %v9499_v17 = vpop.f32.mrf.mxu0 }
  0xd6   :  { %v1857_v1 = vpop.f32.mrf.mxu1  ;;  %7684 = vmatmul.mubr.msk.f32.gmra.mxu0 %vm328_vm1, %v171_v0 }
  0xd7   :  { %v9480_v5 = vpack.c.bf16 %v2583_v60, %v2582_v61  ;;  %v1858_v6 = vadd.f32 %v9362_v9, %v1857_v1  ;;  %v2585_v10 = vmax.f32 %v1863_v62, 0.0  ;;  %7686 = vmatprep.mubr.msk.f32.mxu0 %vm328_vm1, %v172_v4  ;;  %v9508_v22 = vpop.f32.mrf.mxu0  ;;  %v313_v60 = vld [vmem:[%s11238_s0 + $0x7a8] sm:$0xff]  ;;  %v179_v61 = vld [vmem:[%s11238_s0 + $0x378] sm:$0xff]  ;;  %v180_v1 = vld [vmem:[%s11238_s0 + $0x380] sm:$0xff] }
  0xd8   :  { %v7742_v7 = vpop.f32.mrf.mxu1  ;;  %7885 = vmatmul.mubr.msk.f32.gmra.mxu1 %vm328_vm1, %v305_v63  ;;  %v314_v63 = vld [vmem:[%s11238_s0 + $0x7b0] sm:$0xff] }
  0xd9   :  { %v2584_v11 = vmax.f32 %v1858_v6, 0.0  ;;  %v1873_v12 = vadd.f32 %v7742_v7, %v9362_v9  ;;  %7887 = vmatprep.mubr.msk.f32.mxu1 %vm328_vm1, %v306_v2  ;;  %v9523_v31 = vpop.f32.mrf.mxu0 }
  0xda   :  { %v1867_v15 = vpop.f32.mrf.mxu1  ;;  %7687 = vmatmul.mubr.msk.f32.gmra.mxu0 %vm328_vm1, %v173_v14  ;;  %v181_v14 = vld [vmem:[%s11238_s0 + $0x388] sm:$0xff] }
  0xdb   :  { %v9504_v19 = vpack.c.bf16 %v2585_v10, %v2584_v11  ;;  %v1868_v20 = vadd.f32 %v9362_v9, %v1867_v15  ;;  %v2587_v23 = vmax.f32 %v1873_v12, 0.0  ;;  %7689 = vmatprep.mubr.msk.f32.mxu0 %vm328_vm1, %v174_v18  ;;  %v9532_v37 = vpop.f32.mrf.mxu0 }
  0xdc   :  { %v7745_v21 = vpop.f32.mrf.mxu1  ;;  %7888 = vmatmul.mubr.msk.f32.gmra.mxu1 %vm328_vm1, %v307_v13  ;;  %v315_v13 = vld [vmem:[%s11238_s0 + $0x7b8] sm:$0xff] }
  0xdd   :  { %v2586_v24 = vmax.f32 %v1868_v20, 0.0  ;;  %v1883_v25 = vadd.f32 %v7745_v21, %v9362_v9  ;;  %7890 = vmatprep.mubr.msk.f32.mxu1 %vm328_vm1, %v308_v16  ;;  %v9547_v48 = vpop.f32.mrf.mxu0  ;;  %v316_v16 = vld [vmem:[%s11238_s0 + $0x7c0] sm:$0xff]  ;;  %v182_v20 = vld [vmem:[%s11238_s0 + $0x390] sm:$0xff] }
  0xde   :  { %v1877_v28 = vpop.f32.mrf.mxu1  ;;  %7690 = vmatmul.mubr.msk.f32.gmra.mxu0 %vm328_vm1, %v175_v27 }
  0xdf   :  { %v9528_v34 = vpack.c.bf16 %v2587_v23, %v2586_v24  ;;  %v1878_v35 = vadd.f32 %v9362_v9, %v1877_v28  ;;  %v2589_v38 = vmax.f32 %v1883_v25, 0.0  ;;  %7692 = vmatprep.mubr.msk.f32.mxu0 %vm328_vm1, %v176_v33  ;;  %v9556_v53 = vpop.f32.mrf.mxu0  ;;  %v183_v33 = vld [vmem:[%s11238_s0 + $0x398] sm:$0xff] }
  0xe0   :  { %v7748_v36 = vpop.f32.mrf.mxu1  ;;  %7891 = vmatmul.mubr.msk.f32.gmra.mxu1 %vm328_vm1, %v309_v26 }
  0xe1   :  { %v2588_v39 = vmax.f32 %v1878_v35, 0.0  ;;  %v1893_v41 = vadd.f32 %v7748_v36, %v9362_v9  ;;  %7893 = vmatprep.mubr.msk.f32.mxu1 %vm328_vm1, %v310_v30  ;;  %v9571_v0 = vpop.f32.mrf.mxu0  ;;  %v317_v30 = vld [vmem:[%s11238_s0 + $0x7c8] sm:$0xff]  ;;  %v318_v36 = vld [vmem:[%s11238_s0 + $0x7d0] sm:$0xff] }
  0xe2   :  { %v1887_v45 = vpop.f32.mrf.mxu1  ;;  %7693 = vmatmul.mubr.msk.f32.gmra.mxu0 %vm328_vm1, %v177_v44  ;;  %v8486_v44 = vld [vmem:[%s11241_s3 + $0x10] sm:$0xff]  }
  0xe3   :  { %v9552_v50 = vpack.c.bf16 %v2589_v38, %v2588_v39  ;;  %v1888_v51 = vadd.f32 %v9362_v9, %v1887_v45  ;;  %v2591_v55 = vmax.f32 %v1893_v41, 0.0  ;;  %7695 = vmatprep.mubr.msk.f32.mxu0 %vm328_vm1, %v178_v49  ;;  %v9580_v7 = vpop.f32.mrf.mxu0  ;;  %v184_v39 = vld [vmem:[%s11238_s0 + $0x3a0] sm:$0xff]  ;;  %8188 = vmatprep.subr.bf16.mxu0 %v8486_v44 }
  0xe4   :  { %v7751_v52 = vpop.f32.mrf.mxu1  ;;  %7894 = vmatmul.mubr.msk.f32.gmra.mxu1 %vm328_vm1, %v311_v43  ;;  %8189 = vmatpush3.bf16.msra.mxu0 %v8486_v44 }
  0xe5   :  { %v2590_v57 = vmax.f32 %v1888_v51, 0.0  ;;  %v1903_v58 = vadd.f32 %v7751_v52, %v9362_v9  ;;  %7896 = vmatprep.mubr.msk.f32.mxu1 %vm328_vm1, %v312_v47  ;;  %v9595_v18 = vpop.f32.mrf.mxu0 }
  0xe6   :  { %v1897_v62 = vpop.f32.mrf.mxu1  ;;  %7696 = vmatmul.mubr.msk.f32.gmra.mxu0 %vm328_vm1, %v179_v61 }
  0xe7   :  { %v9576_v2 = vpack.c.bf16 %v2591_v55, %v2590_v57  ;;  %v1898_v4 = vadd.f32 %v9362_v9, %v1897_v62  ;;  %v2593_v10 = vmax.f32 %v1903_v58, 0.0  ;;  %7698 = vmatprep.mubr.msk.f32.mxu0 %vm328_vm1, %v180_v1  ;;  %v9604_v25 = vpop.f32.mrf.mxu0  ;;  %v319_v55 = vld [vmem:[%s11238_s0 + $0x7d8] sm:$0xff]  ;;  %v185_v57 = vld [vmem:[%s11238_s0 + $0x3a8] sm:$0xff]  ;;  %v186_v62 = vld [vmem:[%s11238_s0 + $0x3b0] sm:$0xff]  ;;  %v1173_v1 = vadd.f32 %v9409_v32, %v9362_v9 }
  0xe8   :  { %v7754_v6 = vpop.f32.mrf.mxu1  ;;  %7897 = vmatmul.mubr.msk.f32.gmra.mxu1 %vm328_vm1, %v313_v60  ;;  %v320_v60 = vld [vmem:[%s11238_s0 + $0x7e0] sm:$0xff] }
  0xe9   :  { %v2592_v11 = vmax.f32 %v1898_v4, 0.0  ;;  %v1913_v12 = vadd.f32 %v7754_v6, %v9362_v9  ;;  %7899 = vmatprep.mubr.msk.f32.mxu1 %vm328_vm1, %v314_v63  ;;  %v9619_v38 = vpop.f32.mrf.mxu0  ;;  %v1168_v6 = vadd.f32 %v9362_v9, %v9424_v40  ;;  %v321_v40 = vld [vmem:[%s11238_s0 + $0x7e8] sm:$0xff] }
  0xea   :  { %v1907_v15 = vpop.f32.mrf.mxu1  ;;  %7699 = vmatmul.mubr.msk.f32.gmra.mxu0 %vm328_vm1, %v181_v14 }
  0xeb   :  { %v9600_v21 = vpack.c.bf16 %v2593_v10, %v2592_v11  ;;  %v1908_v23 = vadd.f32 %v9362_v9, %v1907_v15  ;;  %v2595_v26 = vmax.f32 %v1913_v12, 0.0  ;;  %7701 = vmatprep.mubr.msk.f32.mxu0 %vm328_vm1, %v182_v20  ;;  %v9631_v47 = vpop.f32.mrf.mxu0  ;;  %v1193_v11 = vadd.f32 %v9460_v59, %v9362_v9  ;;  %v187_v59 = vld [vmem:[%s11238_s0 + $0x3b8] sm:$0xff] }
  0xec   :  { %v7757_v24 = vpop.f32.mrf.mxu1  ;;  %7900 = vmatmul.mubr.msk.f32.gmra.mxu1 %vm328_vm1, %v315_v13  ;;  %v1188_v12 = vadd.f32 %v9362_v9, %v9475_v3  ;;  %v1183_v3 = vadd.f32 %v9436_v46, %v9362_v9  ;;  %v1178_v20 = vadd.f32 %v9362_v9, %v9451_v54 }
  0xed   :  { %v2594_v27 = vmax.f32 %v1908_v23, 0.0  ;;  %v1923_v28 = vadd.f32 %v7757_v24, %v9362_v9  ;;  %7902 = vmatprep.mubr.msk.f32.mxu1 %vm328_vm1, %v316_v16  ;;  %v9646_v61 = vpop.f32.mrf.mxu0  ;;  %v322_v23 = vld [vmem:[%s11238_s0 + $0x7f0] sm:$0xff]  ;;  %v2451_v54 = vmax.f32 %v1193_v11, 0.0 }
  0xee   :  { %v1917_v35 = vpop.f32.mrf.mxu1  ;;  %7702 = vmatmul.mubr.msk.f32.gmra.mxu0 %vm328_vm1, %v183_v33 }
  0xef   :  { %v9624_v41 = vpack.c.bf16 %v2595_v26, %v2594_v27  ;;  %v1918_v43 = vadd.f32 %v9362_v9, %v1917_v35  ;;  %v2597_v49 = vmax.f32 %v1923_v28, 0.0  ;;  %7704 = vmatprep.mubr.msk.f32.mxu0 %vm328_vm1, %v184_v39  ;;  %v9663_v13 = vpop.f32.mrf.mxu0  ;;  %v188_v26 = vld [vmem:[%s11238_s0 + $0x3c0] sm:$0xff]  ;;  %v2447_v27 = vmax.f32 %v1173_v1, 0.0 }
  0xf0   :  { %v7760_v45 = vpop.f32.mrf.mxu1  ;;  %7903 = vmatmul.mubr.msk.f32.gmra.mxu1 %vm328_vm1, %v317_v30  ;;  %v2446_v30 = vmax.f32 %v1168_v6, 0.0  ;;  %v2450_v35 = vmax.f32 %v1188_v12, 0.0 }
  0xf1   :  { %v2596_v51 = vmax.f32 %v1918_v43, 0.0  ;;  %v1933_v52 = vadd.f32 %v7760_v45, %v9362_v9  ;;  %7905 = vmatprep.mubr.msk.f32.mxu1 %vm328_vm1, %v318_v36  ;;  %v9682_v24 = vpop.f32.mrf.mxu0  ;;  %v323_v45 = vld [vmem:[%s11238_s0 + $0x7f8] sm:$0xff] }
  0xf2   :  { %v1927_v58 = vpop.f32.mrf.mxu1  ;;  %7705 = vmatmul.mubr.msk.f32.gmra.mxu0 %vm328_vm1, %v185_v57 }
  0xf3   :  { %v9651_v63 = vpack.c.bf16 %v2597_v49, %v2596_v51  ;;  %v1928_v4 = vadd.f32 %v9362_v9, %v1927_v58  ;;  %v2599_v32 = vmax.f32 %v1933_v52, 0.0  ;;  %7707 = vmatprep.mubr.msk.f32.mxu0 %vm328_vm1, %v186_v62  ;;  %v9691_v36 = vpop.f32.mrf.mxu0  ;;  %v189_v49 = vld [vmem:[%s11238_s0 + $0x3c8] sm:$0xff]  ;;  %v2449_v51 = vmax.f32 %v1183_v3, 0.0  ;;  %v190_v58 = vld [vmem:[%s11238_s0 + $0x3d0] sm:$0xff] }
  0xf4   :  { %v7763_v10 = vpop.f32.mrf.mxu1  ;;  %7906 = vmatmul.mubr.msk.f32.gmra.mxu1 %vm328_vm1, %v319_v55  ;;  %v2448_v52 = vmax.f32 %v1178_v20, 0.0 }
  0xf5   :  { %v2598_v14 = vmax.f32 %v1928_v4, 0.0  ;;  %v1943_v15 = vadd.f32 %v7763_v10, %v9362_v9  ;;  %7908 = vmatprep.mubr.msk.f32.mxu1 %vm328_vm1, %v320_v60  ;;  %v9703_v57 = vpop.f32.mrf.mxu0  ;;  %v2702_v60 = vpack.c.bf16 %v2447_v27, %v2446_v30  ;;  %v2704_v4 = vpack.c.bf16 %v2451_v54, %v2450_v35  ;;  %v193_v35 = vld [vmem:[%s11238_s0 + $0x3e8] sm:$0xff] }
  0xf6   :  { %v1937_v16 = vpop.f32.mrf.mxu1  ;;  %7708 = vmatmul.mubr.msk.f32.gmra.mxu0 %vm328_vm1, %v187_v59  ;;  %v1213_v10 = vadd.f32 %v9508_v22, %v9362_v9  ;;  %v2703_v22 = vpack.c.bf16 %v2449_v51, %v2448_v52  ;;  %v1203_v59 = vadd.f32 %v9484_v8, %v9362_v9 }
  0xf7   :  { %v9687_v28 = vpack.c.bf16 %v2599_v32, %v2598_v14  ;;  %v1938_v46 = vadd.f32 %v9362_v9, %v1937_v16  ;;  %v2601_v39 = vmax.f32 %v1943_v15, 0.0  ;;  %7710 = vmatprep.mubr.msk.f32.mxu0 %vm328_vm1, %v188_v26  ;;  %v9714_v11 = vpop.f32.mrf.mxu0  ;;  %v1208_v15 = vadd.f32 %v9362_v9, %v9523_v31  ;;  %v192_v31 = vld [vmem:[%s11238_s0 + $0x3e0] sm:$0xff] }
  0xf8   :  { %v7766_v33 = vpop.f32.mrf.mxu1  ;;  %7909 = vmatmul.mubr.msk.f32.gmra.mxu1 %vm328_vm1, %v321_v40  ;;  %v191_v40 = vld [vmem:[%s11238_s0 + $0x3d8] sm:$0xff]  ;;  %v1198_v16 = vadd.f32 %v9362_v9, %v9499_v17  ;;  %v2455_v30 = vmax.f32 %v1213_v10, 0.0 }
  0xf9   :  { %v2600_v43 = vmax.f32 %v1938_v46, 0.0  ;;  %v1953_v44 = vadd.f32 %v7766_v33, %v9362_v9  ;;  %7911 = vmatprep.mubr.msk.f32.mxu1 %vm328_vm1, %v322_v23  ;;  %v9729_v20 = vpop.f32.mrf.mxu0  ;;  %v2454_v54 = vmax.f32 %v1208_v15, 0.0  ;;  %v1218_v15 = vadd.f32 %v9362_v9, %v9547_v48 }
  0xfa   :  { %v1947_v55 = vpop.f32.mrf.mxu1  ;;  %7711 = vmatmul.mubr.msk.f32.gmra.mxu0 %vm328_vm1, %v189_v49  ;;  %v194_v49 = vld [vmem:[%s11238_s0 + $0x3f0] sm:$0xff] }
  0xfb   :  { %v9708_v62 = vpack.c.bf16 %v2601_v39, %v2600_v43  ;;  %v1948_v1 = vadd.f32 %v9362_v9, %v1947_v55  ;;  %v2603_v12 = vmax.f32 %v1953_v44, 0.0  ;;  %7713 = vmatprep.mubr.msk.f32.mxu0 %vm328_vm1, %v190_v58  ;;  %v9738_v46 = vpop.f32.mrf.mxu0  ;;  %v2453_v39 = vmax.f32 %v1203_v59, 0.0 }
  0xfc   :  { %v7769_v6 = vpop.f32.mrf.mxu1  ;;  %7912 = vmatmul.mubr.msk.f32.gmra.mxu1 %vm328_vm1, %v323_v45  ;;  %v2452_v43 = vmax.f32 %v1198_v16, 0.0  ;;  %v1233_v58 = vadd.f32 %v9556_v53, %v9362_v9  ;;  %v2706_v10 = vpack.c.bf16 %v2455_v30, %v2454_v54  ;;  %v1223_v53 = vadd.f32 %v9532_v37, %v9362_v9 }
  0xfd   :  { %v2602_v32 = vmax.f32 %v1948_v1, 0.0  ;;  %v1963_v14 = vadd.f32 %v7769_v6, %v9362_v9  ;;  %7922 = vmatprep.mubr.msk.bf16.mxu1 %vm2858_vm2, %v2702_v60  ;;  %v9747_v45 = vpop.f32.mrf.mxu0  ;;  %v1228_v60 = vadd.f32 %v9362_v9, %v9571_v0 }
  0xfe   :  { %v1957_v3 = vpop.f32.mrf.mxu1  ;;  %7714 = vmatmul.mubr.msk.f32.gmra.mxu0 %vm328_vm1, %v191_v40 }
  0xff   :  { %v9734_v23 = vpack.c.bf16 %v2603_v12, %v2602_v32  ;;  %v1958_v26 = vadd.f32 %v9362_v9, %v1957_v3  ;;  %v2605_v8 = vmax.f32 %v1963_v14, 0.0  ;;  %7716 = vmatprep.mubr.msk.f32.mxu0 %vm328_vm1, %v192_v31  ;;  %v9759_v1 = vpop.f32.mrf.mxu0  ;;  %v195_v32 = vld [vmem:[%s11238_s0 + $0x3f8] sm:$0xff]  ;;  %v2705_v14 = vpack.c.bf16 %v2453_v39, %v2452_v43 }
 0x100   :  { %v7772_v27 = vpop.f32.mrf.mxu1  ;;  %7923 = vmatmul.mubr.msk.bf16.vlgmr.msra.gmra.mxu1 %vm2858_vm2, %v2703_v22  ;;  %v196_v22 = vld [vmem:[%s11238_s0 + $0x400] sm:$0xff]  ;;  %v2459_v31 = vmax.f32 %v1233_v58, 0.0 }
 0x101   :  { %v2604_v17 = vmax.f32 %v1958_v26, 0.0  ;;  %v1973_v33 = vadd.f32 %v7772_v27, %v9362_v9  ;;  %7926 = vmatprep.mubr.msk.bf16.mxu1 %vm2858_vm2, %v2704_v4  ;;  %v9771_v40 = vpop.f32.mrf.mxu0  ;;  %v2458_v26 = vmax.f32 %v1228_v60, 0.0 }
 0x102   :  { %v1967_v44 = vpop.f32.mrf.mxu1  ;;  %7717 = vmatmul.mubr.msk.f32.gmra.mxu0 %vm328_vm1, %v193_v35 }
 0x103   :  { %v9752_v51 = vpack.c.bf16 %v2605_v8, %v2604_v17  ;;  %v1968_v52 = vadd.f32 %v9362_v9, %v1967_v44  ;;  %v2607_v4 = vmax.f32 %v1973_v33, 0.0  ;;  %7719 = vmatprep.mubr.msk.f32.mxu0 %vm328_vm1, %v194_v49  ;;  %v9780_v37 = vpop.f32.mrf.mxu0  ;;  %v197_v8 = vld [vmem:[%s11238_s0 + $0x408] sm:$0xff]  ;;  %v2457_v17 = vmax.f32 %v1223_v53, 0.0 }
 0x104   :  { %v7775_v55 = vpop.f32.mrf.mxu1  ;;  %v2456_v33 = vmax.f32 %v1218_v15, 0.0  ;;  %v2708_v44 = vpack.c.bf16 %v2459_v31, %v2458_v26  ;;  %v8487_v15 = vld [vmem:[%s11241_s3 + $0x8] sm:$0xff]  }
 0x105   :  { %v2606_v6 = vmax.f32 %v1968_v52, 0.0  ;;  %v1983_v12 = vadd.f32 %v7775_v55, %v9362_v9  ;;  %v9789_v35 = vpop.f32.mrf.mxu0  ;;  %v1253_v52 = vadd.f32 %v9604_v25, %v9362_v9  ;;  %8190 = vmatprep.subr.bf16.mxu0 %v8487_v15 }
 0x106   :  { %v1977_v0 = vpop.f32.mrf.mxu1  ;;  %7720 = vmatmul.mubr.msk.f32.gmra.mxu0 %vm328_vm1, %v195_v32 }
 0x107   :  { %v9776_v59 = vpack.c.bf16 %v2607_v4, %v2606_v6  ;;  %v1978_v3 = vadd.f32 %v9362_v9, %v1977_v0  ;;  %v2609_v48 = vmax.f32 %v1983_v12, 0.0  ;;  %7722 = vmatprep.mubr.msk.f32.mxu0 %vm328_vm1, %v196_v22  ;;  %v9796_v55 = vpop.f32.mrf.mxu0  ;;  %v1248_v6 = vadd.f32 %v9362_v9, %v9619_v38  ;;  %8191 = vmatpush3.bf16.msra.mxu0 %v8487_v15 }
 0x108   :  { %v7778_v16 = vpop.f32.mrf.mxu1  ;;  %7927 = vmatmul.mubr.msk.bf16.gmra.mxu1 %vm2858_vm2, %v2705_v14  ;;  %v1243_v12 = vadd.f32 %v9580_v7, %v9362_v9  ;;  %v1238_v14 = vadd.f32 %v9362_v9, %v9595_v18  ;;  %v2463_v38 = vmax.f32 %v1253_v52, 0.0 }
 0x109   :  { %v2608_v27 = vmax.f32 %v1978_v3, 0.0  ;;  %v1993_v30 = vadd.f32 %v7778_v16, %v9362_v9  ;;  %7930 = vmatprep.mubr.msk.bf16.mxu1 %vm2858_vm2, %v2706_v10  ;;  %v2707_v10 = vpack.c.bf16 %v2457_v17, %v2456_v33  ;;  %v9806_v25 = vpop.f32.mrf.mxu0  ;;  %v2462_v31 = vmax.f32 %v1248_v6, 0.0 }
 0x10a   :  { %v1987_v54 = vpop.f32.mrf.mxu1  ;;  %7723 = vmatmul.mubr.msk.f32.gmra.mxu0 %vm328_vm1, %v197_v8  ;;  %v2461_v26 = vmax.f32 %v1243_v12, 0.0  ;;  %v1263_v6 = vadd.f32 %v9631_v47, %v9362_v9  ;;  %v1258_v12 = vadd.f32 %v9362_v9, %v9646_v61 }
 0x10b   :  { %v9791_v39 = vpack.c.bf16 %v2609_v48, %v2608_v27  ;;  %v1988_v43 = vadd.f32 %v9362_v9, %v1987_v54  ;;  %v2611_v58 = vmax.f32 %v1993_v30, 0.0  ;;  %v2460_v48 = vmax.f32 %v1238_v14, 0.0 }
 0x10c   :  { %v7781_v49 = vpop.f32.mrf.mxu1  ;;  %v1273_v54 = vadd.f32 %v9663_v13, %v9362_v9  ;;  %v2465_v61 = vmax.f32 %v1263_v6, 0.0 }
 0x10d   :  { %v2610_v60 = vmax.f32 %v1988_v43, 0.0  ;;  %v2003_v4 = vadd.f32 %v7781_v49, %v9362_v9  ;;  %v1268_v43 = vadd.f32 %v9362_v9, %v9682_v24 }
 0x10e   :  { %v1997_v32 = vpop.f32.mrf.mxu1  ;;  %v9815_v3 = vpop.f32.mrf.mxu0 }
 0x10f   :  { %v9808_v53 = vpack.c.bf16 %v2611_v58, %v2610_v60  ;;  %v1998_v0 = vadd.f32 %v9362_v9, %v1997_v32  ;;  %v2613_v7 = vmax.f32 %v2003_v4, 0.0  ;;  %v2710_v58 = vpack.c.bf16 %v2463_v38, %v2462_v31 }
 0x110   :  { %v7784_v22 = vpop.f32.mrf.mxu1  ;;  %7931 = vmatmul.mubr.msk.bf16.gmra.mxu1 %vm2858_vm2, %v2707_v10  ;;  %v9819_v30 = vpop.f32.mrf.mxu0  ;;  %v2709_v4 = vpack.c.bf16 %v2461_v26, %v2460_v48  ;;  %v2466_v15 = vmax.f32 %v1268_v43, 0.0 }
 0x111   :  { %v2612_v16 = vmax.f32 %v1998_v0, 0.0  ;;  %v2013_v18 = vadd.f32 %v7784_v22, %v9362_v9  ;;  %7934 = vmatprep.mubr.msk.bf16.mxu1 %vm2858_vm2, %v2708_v44  ;;  %v2467_v0 = vmax.f32 %v1273_v54, 0.0 }
 0x112   :  { %v2007_v27 = vpop.f32.mrf.mxu1  ;;  %v9828_v44 = vpop.f32.mrf.mxu0 }
 0x113   :  { %v9821_v8 = vpack.c.bf16 %v2613_v7, %v2612_v16  ;;  %v2008_v17 = vadd.f32 %v9362_v9, %v2007_v27  ;;  %v2615_v49 = vmax.f32 %v2013_v18, 0.0  ;;  %v2464_v16 = vmax.f32 %v1258_v12, 0.0 }
 0x114   :  { %v7787_v33 = vpop.f32.mrf.mxu1  ;;  %v9835_v32 = vpop.f32.mrf.mxu0  ;;  %v2712_v27 = vpack.c.bf16 %v2467_v0, %v2466_v15 }
 0x115   :  { %v2614_v52 = vmax.f32 %v2008_v17, 0.0  ;;  %v2023_v60 = vadd.f32 %v7787_v33, %v9362_v9  ;;  %v1293_v33 = vadd.f32 %v9714_v11, %v9362_v9 }
 0x116   :  { %v2017_v10 = vpop.f32.mrf.mxu1  ;;  %v9841_v22 = vpop.f32.mrf.mxu0 }
 0x117   :  { %v9837_v13 = vpack.c.bf16 %v2615_v49, %v2614_v52  ;;  %v2018_v24 = vadd.f32 %v9362_v9, %v2017_v10  ;;  %v2617_v38 = vmax.f32 %v2023_v60, 0.0  ;;  %v2711_v60 = vpack.c.bf16 %v2465_v61, %v2464_v16 }
 0x118   :  { %v7790_v14 = vpop.f32.mrf.mxu1  ;;  %7935 = vmatmul.mubr.msk.bf16.gmra.mxu1 %vm2858_vm2, %v2709_v4  ;;  %v9845_v31 = vpop.f32.mrf.mxu0  ;;  %v1283_v4 = vadd.f32 %v9691_v36, %v9362_v9  ;;  %v1278_v10 = vadd.f32 %v9362_v9, %v9703_v57  ;;  %v2471_v0 = vmax.f32 %v1293_v33, 0.0  ;;  %v1313_v33 = vadd.f32 %v9759_v1, %v9362_v9 }
 0x119   :  { %v2616_v7 = vmax.f32 %v2018_v24, 0.0  ;;  %v2033_v47 = vadd.f32 %v7790_v14, %v9362_v9  ;;  %7938 = vmatprep.mubr.msk.bf16.mxu1 %vm2858_vm2, %v2710_v58  ;;  %v1288_v58 = vadd.f32 %v9362_v9, %v9729_v20 }
 0x11a   :  { %v2027_v18 = vpop.f32.mrf.mxu1  ;;  %v9852_v54 = vpop.f32.mrf.mxu0  ;;  %v2469_v57 = vmax.f32 %v1283_v4, 0.0 }
 0x11b   :  { %v9847_v26 = vpack.c.bf16 %v2617_v38, %v2616_v7  ;;  %v2028_v48 = vadd.f32 %v9362_v9, %v2027_v18  ;;  %v2619_v43 = vmax.f32 %v2033_v47, 0.0  ;;  %v2470_v7 = vmax.f32 %v1288_v58, 0.0 }
 0x11c   :  { %v7793_v17 = vpop.f32.mrf.mxu1  ;;  %v9861_v12 = vpop.f32.mrf.mxu0  ;;  %v2468_v47 = vmax.f32 %v1278_v10, 0.0 }
 0x11d   :  { %v2618_v49 = vmax.f32 %v2028_v48, 0.0  ;;  %v2043_v52 = vadd.f32 %v7793_v17, %v9362_v9  ;;  %v2714_v58 = vpack.c.bf16 %v2471_v0, %v2470_v7  ;;  %v2475_v0 = vmax.f32 %v1313_v33, 0.0 }
 0x11e   :  { %v2037_v6 = vpop.f32.mrf.mxu1  ;;  %v9867_v15 = vpop.f32.mrf.mxu0  ;;  %v2713_v4 = vpack.c.bf16 %v2469_v57, %v2468_v47 }
 0x11f   :  { %v9863_v11 = vpack.c.bf16 %v2619_v43, %v2618_v49  ;;  %v2038_v24 = vadd.f32 %v9362_v9, %v2037_v6  ;;  %v2621_v20 = vmax.f32 %v2043_v52, 0.0  ;;  %v1308_v43 = vadd.f32 %v9362_v9, %v9771_v40 }
 0x120   :  { %v7796_v14 = vpop.f32.mrf.mxu1  ;;  %7939 = vmatmul.mubr.msk.bf16.gmra.mxu1 %vm2858_vm2, %v2711_v60  ;;  %v9871_v16 = vpop.f32.mrf.mxu0  ;;  %v1303_v6 = vadd.f32 %v9738_v46, %v9362_v9 }
 0x121   :  { %v2620_v38 = vmax.f32 %v2038_v24, 0.0  ;;  %v2053_v36 = vadd.f32 %v7796_v14, %v9362_v9  ;;  %7942 = vmatprep.mubr.msk.bf16.mxu1 %vm2858_vm2, %v2712_v27  ;;  %v1298_v24 = vadd.f32 %v9362_v9, %v9747_v45 }
 0x122   :  { %v2047_v61 = vpop.f32.mrf.mxu1  ;;  %v9880_v49 = vpop.f32.mrf.mxu0  ;;  %v2473_v45 = vmax.f32 %v1303_v6, 0.0  ;;  %v1328_v6 = vadd.f32 %v9362_v9, %v9806_v25 }
 0x123   :  { %v9873_v18 = vpack.c.bf16 %v2621_v20, %v2620_v38  ;;  %v2048_v48 = vadd.f32 %v9362_v9, %v2047_v61  ;;  %v2623_v27 = vmax.f32 %v2053_v36, 0.0  ;;  %v2474_v38 = vmax.f32 %v1308_v43, 0.0 }
 0x124   :  { %v7799_v17 = vpop.f32.mrf.mxu1  ;;  %v9887_v14 = vpop.f32.mrf.mxu0  ;;  %v2472_v47 = vmax.f32 %v1298_v24, 0.0  ;;  %v1333_v43 = vadd.f32 %v9796_v55, %v9362_v9 }
 0x125   :  { %v2622_v52 = vmax.f32 %v2048_v48, 0.0  ;;  %v2063_v60 = vadd.f32 %v7799_v17, %v9362_v9 }
 0x126   :  { %v2057_v10 = vpop.f32.mrf.mxu1  ;;  %v9893_v36 = vpop.f32.mrf.mxu0  ;;  %v2715_v24 = vpack.c.bf16 %v2473_v45, %v2472_v47  ;;  %v2478_v47 = vmax.f32 %v1328_v6, 0.0 }
 0x127   :  { %v9889_v1 = vpack.c.bf16 %v2623_v27, %v2622_v52  ;;  %v2058_v40 = vadd.f32 %v9362_v9, %v2057_v10  ;;  %v2625_v7 = vmax.f32 %v2063_v60, 0.0  ;;  %v2716_v52 = vpack.c.bf16 %v2475_v0, %v2474_v38 }
 0x128   :  { %v7802_v20 = vpop.f32.mrf.mxu1  ;;  %7943 = vmatmul.mubr.msk.bf16.gmra.mxu1 %vm2858_vm2, %v2713_v4  ;;  %v9897_v48 = vpop.f32.mrf.mxu0  ;;  %v1318_v0 = vadd.f32 %v9362_v9, %v9789_v35 }
 0x129   :  { %v2624_v57 = vmax.f32 %v2058_v40, 0.0  ;;  %v2073_v46 = vadd.f32 %v7802_v20, %v9362_v9  ;;  %7946 = vmatprep.mubr.msk.bf16.mxu1 %vm2858_vm2, %v2714_v58  ;;  %v1323_v40 = vadd.f32 %v9780_v37, %v9362_v9 }
 0x12a   :  { %v2067_v61 = vpop.f32.mrf.mxu1  ;;  %v9904_v60 = vpop.f32.mrf.mxu0 }
 0x12b   :  { %v9899_v17 = vpack.c.bf16 %v2625_v7, %v2624_v57  ;;  %v2068_v27 = vadd.f32 %v9362_v9, %v2067_v61  ;;  %v2627_v4 = vmax.f32 %v2073_v46, 0.0  ;;  %v2479_v46 = vmax.f32 %v1333_v43, 0.0  ;;  %v8488_v43 = vld [vmem:[%s11241_s3] sm:$0xff]  }
 0x12c   :  { %v7805_v33 = vpop.f32.mrf.mxu1  ;;  %v9913_v38 = vpop.f32.mrf.mxu0  ;;  %v2477_v35 = vmax.f32 %v1323_v40, 0.0  ;;  %8192 = vmatprep.subr.bf16.mxu0 %v8488_v43 }
 0x12d   :  { %v2626_v10 = vmax.f32 %v2068_v27, 0.0  ;;  %v2083_v58 = vadd.f32 %v7805_v33, %v9362_v9  ;;  %v2476_v27 = vmax.f32 %v1318_v0, 0.0  ;;  %8193 = vmatpush3.bf16.msra.mxu0 %v8488_v43 }
 0x12e   :  { %v2077_v20 = vpop.f32.mrf.mxu1  ;;  %v9919_v61 = vpop.f32.mrf.mxu0 }
 0x12f   :  { %v9915_v55 = vpack.c.bf16 %v2627_v4, %v2626_v10  ;;  %v2078_v7 = vadd.f32 %v9362_v9, %v2077_v20  ;;  %v2629_v25 = vmax.f32 %v2083_v58, 0.0 }
 0x130   :  { %v7808_v57 = vpop.f32.mrf.mxu1  ;;  %7947 = vmatmul.mubr.msk.bf16.gmra.mxu1 %vm2858_vm2, %v2715_v24  ;;  %v9923_v4 = vpop.f32.mrf.mxu0  ;;  %v1353_v24 = vadd.f32 %v9828_v44, %v9362_v9 }
 0x131   :  { %11244 = vst [vmem:[#allocation5_spill] sm:$0xff] %v9915_v55  ;;  %v2628_v45 = vmax.f32 %v2078_v7, 0.0  ;;  %v2093_v37 = vadd.f32 %v7808_v57, %v9362_v9  ;;  %7950 = vmatprep.mubr.msk.bf16.mxu1 %vm2858_vm2, %v2716_v52  ;;  %v1348_v52 = vadd.f32 %v9362_v9, %v9835_v32  ;;  %v2718_v7 = vpack.c.bf16 %v2479_v46, %v2478_v47 }
 0x132   :  { %v2087_v33 = vpop.f32.mrf.mxu1  ;;  %v9935_v6 = vpop.f32.mrf.mxu0  ;;  %v2483_v46 = vmax.f32 %v1353_v24, 0.0  ;;  %v9959_v24 = vld [vmem:[%s11242_s4] ss:$0 sm:$0xff] }
 0x133   :  { %v9925_v10 = vpack.c.bf16 %v2629_v25, %v2628_v45  ;;  %v2088_v20 = vadd.f32 %v9362_v9, %v2087_v33  ;;  %v2631_v40 = vmax.f32 %v2093_v37, 0.0  ;;  %v2717_v25 = vpack.c.bf16 %v2477_v35, %v2476_v27 }
 0x134   :  { %v7811_v58 = vpop.f32.mrf.mxu1  ;;  %v1343_v45 = vadd.f32 %v9815_v3, %v9362_v9  ;;  %v9942_v44 = vpop.f32.mrf.mxu0  ;;  %v2482_v47 = vmax.f32 %v1348_v52, 0.0 }
 0x135   :  { %11245 = vst [vmem:[#allocation6_spill] sm:$0xff] %v9925_v10  ;;  %v2630_v0 = vmax.f32 %v2088_v20, 0.0  ;;  %v2103_v57 = vadd.f32 %v7811_v58, %v9362_v9  ;;  %v1338_v10 = vadd.f32 %v9362_v9, %v9819_v30 }
 0x136   :  { %v2097_v33 = vpop.f32.mrf.mxu1  ;;  %v9948_v35 = vpop.f32.mrf.mxu0  ;;  %v2481_v30 = vmax.f32 %v1343_v45, 0.0 }
 0x137   :  { %v9944_v32 = vpack.c.bf16 %v2631_v40, %v2630_v0  ;;  %v2098_v37 = vadd.f32 %v9362_v9, %v2097_v33  ;;  %v2633_v27 = vmax.f32 %v2103_v57, 0.0  ;;  %v2480_v55 = vmax.f32 %v1338_v10, 0.0 }
 0x138   :  { %v7814_v20 = vpop.f32.mrf.mxu1  ;;  %7951 = vmatmul.mubr.msk.bf16.gmra.mxu1 %vm2858_vm2, %v2717_v25  ;;  %v9952_v40 = vpop.f32.mrf.mxu0  ;;  %v2720_v57 = vpack.c.bf16 %v2483_v46, %v2482_v47  ;;  %v1358_v46 = vadd.f32 %v9959_v24, %v9845_v31 }
 0x139   :  { %11246 = vst [vmem:[#allocation7_spill] sm:$0xff] %v9944_v32  ;;  %v2632_v3 = vmax.f32 %v2098_v37, 0.0  ;;  %v2113_v58 = vadd.f32 %v7814_v20, %v9362_v9  ;;  %7954 = vmatprep.mubr.msk.bf16.mxu1 %vm2858_vm2, %v2718_v7  ;;  %v1373_v9 = vadd.f32 %v9959_v24, %v9852_v54  ;;  %v1368_v37 = vadd.f32 %v9959_v24, %v9861_v12 }
 0x13a   :  { %v2107_v43 = vpop.f32.mrf.mxu1  ;;  %v9964_v7 = vpop.f32.mrf.mxu0  ;;  %v2719_v20 = vpack.c.bf16 %v2481_v30, %v2480_v55 }
 0x13b   :  { %v9954_v0 = vpack.c.bf16 %v2633_v27, %v2632_v3  ;;  %v2108_v52 = vadd.f32 %v9959_v24, %v2107_v43  ;;  %v2635_v10 = vmax.f32 %v2113_v58, 0.0  ;;  %v1363_v27 = vadd.f32 %v9959_v24, %v9841_v22 }
 0x13c   :  { %v7817_v25 = vpop.f32.mrf.mxu1  ;;  %v9973_v47 = vpop.f32.mrf.mxu0  ;;  %v2486_v30 = vmax.f32 %v1368_v37, 0.0 }
 0x13d   :  { %11247 = vst [vmem:[#allocation8_spill] sm:$0xff] %v9954_v0  ;;  %v2634_v45 = vmax.f32 %v2108_v52, 0.0  ;;  %v2123_v33 = vadd.f32 %v9959_v24, %v7817_v25  ;;  %v2487_v52 = vmax.f32 %v1373_v9, 0.0  ;;  %v2485_v31 = vmax.f32 %v1363_v27, 0.0 }
 0x13e   :  { %v2117_v3 = vpop.f32.mrf.mxu1  ;;  %v9979_v25 = vpop.f32.mrf.mxu0  ;;  %v2484_v0 = vmax.f32 %v1358_v46, 0.0  ;;  %v1393_v9 = vadd.f32 %v9959_v24, %v9880_v49 }
 0x13f   :  { %v9975_v54 = vpack.c.bf16 %v2635_v10, %v2634_v45  ;;  %v2118_v58 = vadd.f32 %v9959_v24, %v2117_v3  ;;  %v2637_v12 = vmax.f32 %v2123_v33, 0.0  ;;  %v1388_v33 = vadd.f32 %v9959_v24, %v9887_v14 }
 0x140   :  { %v7820_v43 = vpop.f32.mrf.mxu1  ;;  %7955 = vmatmul.mubr.msk.bf16.gmra.mxu1 %vm2858_vm2, %v2719_v20  ;;  %v9983_v10 = vpop.f32.mrf.mxu0  ;;  %v2722_v27 = vpack.c.bf16 %v2487_v52, %v2486_v30  ;;  %v2491_v52 = vmax.f32 %v1393_v9, 0.0 }
 0x141   :  { %11248 = vst [vmem:[#allocation9_spill] sm:$0xff] %v9975_v54  ;;  %v2636_v55 = vmax.f32 %v2118_v58, 0.0  ;;  %v2133_v22 = vadd.f32 %v9959_v24, %v7820_v43  ;;  %7958 = vmatprep.mubr.msk.bf16.mxu1 %vm2858_vm2, %v2720_v57  ;;  %v2721_v43 = vpack.c.bf16 %v2485_v31, %v2484_v0 }
 0x142   :  { %v2127_v32 = vpop.f32.mrf.mxu1  ;;  %v9992_v58 = vpop.f32.mrf.mxu0 }
 0x143   :  { %v9985_v45 = vpack.c.bf16 %v2637_v12, %v2636_v55  ;;  %v2128_v3 = vadd.f32 %v9959_v24, %v2127_v32  ;;  %v2639_v57 = vmax.f32 %v2133_v22, 0.0  ;;  %v1383_v12 = vadd.f32 %v9959_v24, %v9867_v15 }
 0x144   :  { %v7823_v20 = vpop.f32.mrf.mxu1  ;;  %v1378_v32 = vadd.f32 %v9959_v24, %v9871_v16  ;;  %v2490_v22 = vmax.f32 %v1388_v33, 0.0  ;;  %v1413_v33 = vadd.f32 %v9959_v24, %v9904_v60 }
 0x145   :  { %11249 = vst [vmem:[#allocation10_spill] sm:$0xff] %v9985_v45  ;;  %v2638_v37 = vmax.f32 %v2128_v3, 0.0  ;;  %v2143_v46 = vadd.f32 %v9959_v24, %v7823_v20  ;;  %v9999_v45 = vpop.f32.mrf.mxu0  ;;  %v2489_v16 = vmax.f32 %v1383_v12, 0.0  ;;  %v1408_v12 = vadd.f32 %v9959_v24, %v9913_v38 }
 0x146   :  { %v2137_v55 = vpop.f32.mrf.mxu1  ;;  %v2488_v3 = vmax.f32 %v1378_v32, 0.0 }
 0x147   :  { %v10001_v49 = vpack.c.bf16 %v2639_v57, %v2638_v37  ;;  %v2138_v14 = vadd.f32 %v9959_v24, %v2137_v55  ;;  %v10005_v30 = vpop.f32.mrf.mxu0  ;;  %v2641_v0 = vmax.f32 %v2143_v46, 0.0 }
 0x148   :  { %v7826_v54 = vpop.f32.mrf.mxu1  ;;  %7959 = vmatmul.mubr.msk.bf16.gmra.mxu1 %vm2858_vm2, %v2721_v43  ;;  %v2724_v43 = vpack.c.bf16 %v2491_v52, %v2490_v22  ;;  %v2723_v32 = vpack.c.bf16 %v2489_v16, %v2488_v3  ;;  %v1398_v52 = vadd.f32 %v9959_v24, %v9897_v48  ;;  %v2494_v3 = vmax.f32 %v1408_v12, 0.0 }
 0x149   :  { %11250 = vst [vmem:[#allocation11_spill] sm:$0xff] %v10001_v49  ;;  %v2640_v31 = vmax.f32 %v2138_v14, 0.0  ;;  %v2153_v15 = vadd.f32 %v9959_v24, %v7826_v54  ;;  %7962 = vmatprep.mubr.msk.bf16.mxu1 %vm2858_vm2, %v2722_v27  ;;  %v10009_v57 = vpop.f32.mrf.mxu0 }
 0x14a   :  { %v2147_v20 = vpop.f32.mrf.mxu1 }
 0x14b   :  { %v10011_v37 = vpack.c.bf16 %v2641_v0, %v2640_v31  ;;  %v2148_v55 = vadd.f32 %v9959_v24, %v2147_v20  ;;  %v10016_v46 = vpop.f32.mrf.mxu0  ;;  %v2643_v14 = vmax.f32 %v2153_v15, 0.0  ;;  %v1403_v0 = vadd.f32 %v9959_v24, %v9893_v36 }
 0x14c   :  { %v7829_v9 = vpop.f32.mrf.mxu1 }
 0x14d   :  { %11251 = vst [vmem:[#allocation12_spill] sm:$0xff] %v10011_v37  ;;  %v2642_v54 = vmax.f32 %v2148_v55, 0.0  ;;  %v2163_v27 = vadd.f32 %v9959_v24, %v7829_v9  ;;  %v10025_v22 = vpop.f32.mrf.mxu0  ;;  %v2495_v55 = vmax.f32 %v1413_v33, 0.0  ;;  %v2493_v48 = vmax.f32 %v1403_v0, 0.0 }
 0x14e   :  { %v2157_v31 = vpop.f32.mrf.mxu1  ;;  %v2492_v37 = vmax.f32 %v1398_v52, 0.0  ;;  %v1433_v33 = vadd.f32 %v9959_v24, %v9935_v6 }
 0x14f   :  { %v10027_v60 = vpack.c.bf16 %v2643_v14, %v2642_v54  ;;  %v2158_v15 = vadd.f32 %v9959_v24, %v2157_v31  ;;  %v10031_v9 = vpop.f32.mrf.mxu0  ;;  %v2645_v38 = vmax.f32 %v2163_v27, 0.0  ;;  %v1428_v27 = vadd.f32 %v9959_v24, %v9942_v44 }
 0x150   :  { %v7832_v20 = vpop.f32.mrf.mxu1  ;;  %7963 = vmatmul.mubr.msk.bf16.gmra.mxu1 %vm2858_vm2, %v2723_v32  ;;  %v2726_v0 = vpack.c.bf16 %v2495_v55, %v2494_v3  ;;  %v2499_v55 = vmax.f32 %v1433_v33, 0.0 }
 0x151   :  { %11252 = vst [vmem:[#allocation13_spill] sm:$0xff] %v10027_v60  ;;  %v2644_v16 = vmax.f32 %v2158_v15, 0.0  ;;  %v2173_v36 = vadd.f32 %v9959_v24, %v7832_v20  ;;  %7966 = vmatprep.mubr.msk.bf16.mxu1 %vm2858_vm2, %v2724_v43  ;;  %v10035_v14 = vpop.f32.mrf.mxu0  ;;  %v2725_v20 = vpack.c.bf16 %v2493_v48, %v2492_v37 }
 0x152   :  { %v2167_v49 = vpop.f32.mrf.mxu1 }
 0x153   :  { %v10037_v54 = vpack.c.bf16 %v2645_v38, %v2644_v16  ;;  %v2168_v31 = vadd.f32 %v9959_v24, %v2167_v49  ;;  %v10044_v15 = vpop.f32.mrf.mxu0  ;;  %v2647_v43 = vmax.f32 %v2173_v36, 0.0  ;;  %v1423_v38 = vadd.f32 %v9959_v24, %v9919_v61 }
 0x154   :  { %v7835_v32 = vpop.f32.mrf.mxu1  ;;  %v1418_v49 = vadd.f32 %v9959_v24, %v9923_v4  ;;  %v2498_v36 = vmax.f32 %v1428_v27, 0.0  ;;  %v1453_v27 = vadd.f32 %v9959_v24, %v9964_v7 }
 0x155   :  { %11253 = vst [vmem:[#allocation14_spill] sm:$0xff] %v10037_v54  ;;  %v2646_v12 = vmax.f32 %v2168_v31, 0.0  ;;  %v2183_v52 = vadd.f32 %v9959_v24, %v7835_v32  ;;  %v10051_v54 = vpop.f32.mrf.mxu0  ;;  %v2497_v4 = vmax.f32 %v1423_v38, 0.0  ;;  %v1448_v38 = vadd.f32 %v9959_v24, %v9973_v47 }
 0x156   :  { %v2177_v16 = vpop.f32.mrf.mxu1  ;;  %v2496_v31 = vmax.f32 %v1418_v49, 0.0 }
 0x157   :  { %v10053_v6 = vpack.c.bf16 %v2647_v43, %v2646_v12  ;;  %v2178_v44 = vadd.f32 %v9959_v24, %v2177_v16  ;;  %v10057_v3 = vpop.f32.mrf.mxu0  ;;  %v2649_v37 = vmax.f32 %v2183_v52, 0.0 }
 0x158   :  { %v7838_v60 = vpop.f32.mrf.mxu1  ;;  %7967 = vmatmul.mubr.msk.bf16.gmra.mxu1 %vm2858_vm2, %v2725_v20  ;;  %v2728_v20 = vpack.c.bf16 %v2499_v55, %v2498_v36  ;;  %v2727_v49 = vpack.c.bf16 %v2497_v4, %v2496_v31  ;;  %v1438_v55 = vadd.f32 %v9959_v24, %v9952_v40  ;;  %v2502_v31 = vmax.f32 %v1448_v38, 0.0 }
 0x159   :  { %11254 = vst [vmem:[#allocation15_spill] sm:$0xff] %v10053_v6  ;;  %v2648_v48 = vmax.f32 %v2178_v44, 0.0  ;;  %v2193_v61 = vadd.f32 %v9959_v24, %v7838_v60  ;;  %7970 = vmatprep.mubr.msk.bf16.mxu1 %vm2858_vm2, %v2726_v0  ;;  %v10061_v43 = vpop.f32.mrf.mxu0 }
 0x15a   :  { %v2187_v32 = vpop.f32.mrf.mxu1 }
 0x15b   :  { %v10063_v12 = vpack.c.bf16 %v2649_v37, %v2648_v48  ;;  %v2188_v16 = vadd.f32 %v9959_v24, %v2187_v32  ;;  %v10068_v52 = vpop.f32.mrf.mxu0  ;;  %v2651_v44 = vmax.f32 %v2193_v61, 0.0  ;;  %v1443_v37 = vadd.f32 %v9959_v24, %v9948_v35 }
 0x15c   :  { %v7841_v33 = vpop.f32.mrf.mxu1 }
 0x15d   :  { %11255 = vst [vmem:[#allocation16_spill] sm:$0xff] %v10063_v12  ;;  %v2650_v60 = vmax.f32 %v2188_v16, 0.0  ;;  %v2203_v0 = vadd.f32 %v9959_v24, %v7841_v33  ;;  %v10077_v36 = vpop.f32.mrf.mxu0  ;;  %v2503_v16 = vmax.f32 %v1453_v27, 0.0  ;;  %v2501_v40 = vmax.f32 %v1443_v37, 0.0 }
 0x15e   :  { %v2197_v48 = vpop.f32.mrf.mxu1  ;;  %v2500_v12 = vmax.f32 %v1438_v55, 0.0  ;;  %v1473_v27 = vadd.f32 %v9959_v24, %v9992_v58 }
 0x15f   :  { %v10079_v7 = vpack.c.bf16 %v2651_v44, %v2650_v60  ;;  %v2198_v61 = vadd.f32 %v9959_v24, %v2197_v48  ;;  %v10083_v33 = vpop.f32.mrf.mxu0  ;;  %v2653_v47 = vmax.f32 %v2203_v0, 0.0  ;;  %v1468_v0 = vadd.f32 %v9959_v24, %v9999_v45 }
 0x160   :  { %v7844_v32 = vpop.f32.mrf.mxu1  ;;  %7971 = vmatmul.mubr.msk.bf16.gmra.mxu1 %vm2858_vm2, %v2727_v49  ;;  %v2730_v37 = vpack.c.bf16 %v2503_v16, %v2502_v31  ;;  %v2507_v16 = vmax.f32 %v1473_v27, 0.0 }
 0x161   :  { %11256 = vst [vmem:[#allocation17_spill] sm:$0xff] %v10079_v7  ;;  %v2652_v4 = vmax.f32 %v2198_v61, 0.0  ;;  %v2213_v35 = vadd.f32 %v9959_v24, %v7844_v32  ;;  %7974 = vmatprep.mubr.msk.bf16.mxu1 %vm2858_vm2, %v2728_v20  ;;  %v10087_v44 = vpop.f32.mrf.mxu0  ;;  %v2729_v32 = vpack.c.bf16 %v2501_v40, %v2500_v12 }
 0x162   :  { %v2207_v6 = vpop.f32.mrf.mxu1 }
 0x163   :  { %v10089_v60 = vpack.c.bf16 %v2653_v47, %v2652_v4  ;;  %v2208_v48 = vadd.f32 %v9959_v24, %v2207_v6  ;;  %v10096_v61 = vpop.f32.mrf.mxu0  ;;  %v2655_v20 = vmax.f32 %v2213_v35, 0.0  ;;  %v1463_v47 = vadd.f32 %v9959_v24, %v9979_v25 }
 0x164   :  { %v7847_v49 = vpop.f32.mrf.mxu1  ;;  %v1458_v6 = vadd.f32 %v9959_v24, %v9983_v10  ;;  %v2506_v35 = vmax.f32 %v1468_v0, 0.0  ;;  %v1493_v0 = vadd.f32 %v9959_v24, %v10016_v46 }
 0x165   :  { %11257 = vst [vmem:[#allocation18_spill] sm:$0xff] %v10089_v60  ;;  %v2654_v38 = vmax.f32 %v2208_v48, 0.0  ;;  %v2223_v55 = vadd.f32 %v9959_v24, %v7847_v49  ;;  %v10103_v60 = vpop.f32.mrf.mxu0  ;;  %v2505_v10 = vmax.f32 %v1463_v47, 0.0  ;;  %v1488_v47 = vadd.f32 %v9959_v24, %v10025_v22 }
 0x166   :  { %v2217_v4 = vpop.f32.mrf.mxu1  ;;  %v2504_v48 = vmax.f32 %v1458_v6, 0.0 }
 0x167   :  { %v10105_v58 = vpack.c.bf16 %v2655_v20, %v2654_v38  ;;  %v2218_v45 = vadd.f32 %v9959_v24, %v2217_v4  ;;  %v10109_v31 = vpop.f32.mrf.mxu0  ;;  %v2657_v12 = vmax.f32 %v2223_v55, 0.0 }
 0x168   :  { %v7850_v7 = vpop.f32.mrf.mxu1  ;;  %7975 = vmatmul.mubr.msk.bf16.gmra.mxu1 %vm2858_vm2, %v2729_v32  ;;  %v2732_v32 = vpack.c.bf16 %v2507_v16, %v2506_v35  ;;  %v2731_v6 = vpack.c.bf16 %v2505_v10, %v2504_v48  ;;  %v1478_v16 = vadd.f32 %v9959_v24, %v10009_v57  ;;  %v2510_v48 = vmax.f32 %v1488_v47, 0.0 }
 0x169   :  { %11258 = vst [vmem:[#allocation19_spill] sm:$0xff] %v10105_v58  ;;  %v2656_v40 = vmax.f32 %v2218_v45, 0.0  ;;  %v2233_v25 = vadd.f32 %v9959_v24, %v7850_v7  ;;  %7978 = vmatprep.mubr.msk.bf16.mxu1 %vm2858_vm2, %v2730_v37  ;;  %v10113_v20 = vpop.f32.mrf.mxu0 }
 0x16a   :  { %v2227_v49 = vpop.f32.mrf.mxu1 }
 0x16b   :  { %v10115_v38 = vpack.c.bf16 %v2657_v12, %v2656_v40  ;;  %v2228_v4 = vadd.f32 %v9959_v24, %v2227_v49  ;;  %v10120_v55 = vpop.f32.mrf.mxu0  ;;  %v2659_v45 = vmax.f32 %v2233_v25, 0.0  ;;  %v1483_v12 = vadd.f32 %v9959_v24, %v10005_v30 }
 0x16c   :  { %v7853_v27 = vpop.f32.mrf.mxu1 }
 0x16d   :  { %11259 = vst [vmem:[#allocation20_spill] sm:$0xff] %v10115_v38  ;;  %v2658_v7 = vmax.f32 %v2228_v4, 0.0  ;;  %v2243_v37 = vadd.f32 %v9959_v24, %v7853_v27  ;;  %v10129_v35 = vpop.f32.mrf.mxu0  ;;  %v2511_v4 = vmax.f32 %v1493_v0, 0.0  ;;  %v2509_v57 = vmax.f32 %v1483_v12, 0.0 }
 0x16e   :  { %v2237_v40 = vpop.f32.mrf.mxu1  ;;  %v2508_v38 = vmax.f32 %v1478_v16, 0.0  ;;  %v1513_v0 = vadd.f32 %v9959_v24, %v10044_v15 }
 0x16f   :  { %v10131_v46 = vpack.c.bf16 %v2659_v45, %v2658_v7  ;;  %v2238_v25 = vadd.f32 %v9959_v24, %v2237_v40  ;;  %v10135_v27 = vpop.f32.mrf.mxu0  ;;  %v2661_v22 = vmax.f32 %v2243_v37, 0.0  ;;  %v1508_v37 = vadd.f32 %v9959_v24, %v10051_v54 }
 0x170   :  { %v7856_v49 = vpop.f32.mrf.mxu1  ;;  %7979 = vmatmul.mubr.msk.bf16.gmra.mxu1 %vm2858_vm2, %v2731_v6  ;;  %v2734_v12 = vpack.c.bf16 %v2511_v4, %v2510_v48  ;;  %v2515_v4 = vmax.f32 %v1513_v0, 0.0 }
 0x171   :  { %11260 = vst [vmem:[#allocation21_spill] sm:$0xff] %v10131_v46  ;;  %v2660_v10 = vmax.f32 %v2238_v25, 0.0  ;;  %v2253_v30 = vadd.f32 %v9959_v24, %v7856_v49  ;;  %7982 = vmatprep.mubr.msk.bf16.mxu1 %vm2858_vm2, %v2732_v32  ;;  %v10139_v45 = vpop.f32.mrf.mxu0  ;;  %v2733_v49 = vpack.c.bf16 %v2509_v57, %v2508_v38 }
 0x172   :  { %v2247_v58 = vpop.f32.mrf.mxu1 }
 0x173   :  { %v10141_v7 = vpack.c.bf16 %v2661_v22, %v2660_v10  ;;  %v2248_v40 = vadd.f32 %v9959_v24, %v2247_v58  ;;  %v10148_v25 = vpop.f32.mrf.mxu0  ;;  %v2663_v32 = vmax.f32 %v2253_v30, 0.0  ;;  %v1503_v22 = vadd.f32 %v9959_v24, %v10031_v9 }
 0x174   :  { %v7859_v6 = vpop.f32.mrf.mxu1  ;;  %v1498_v58 = vadd.f32 %v9959_v24, %v10035_v14  ;;  %v2514_v30 = vmax.f32 %v1508_v37, 0.0  ;;  %v1533_v37 = vadd.f32 %v9959_v24, %v10068_v52 }
 0x175   :  { %11261 = vst [vmem:[#allocation22_spill] sm:$0xff] %v10141_v7  ;;  %v2662_v47 = vmax.f32 %v2248_v40, 0.0  ;;  %v2263_v16 = vadd.f32 %v9959_v24, %v7859_v6  ;;  %v10155_v7 = vpop.f32.mrf.mxu0  ;;  %v2513_v14 = vmax.f32 %v1503_v22, 0.0  ;;  %v1528_v22 = vadd.f32 %v9959_v24, %v10077_v36 }
 0x176   :  { %v2257_v10 = vpop.f32.mrf.mxu1  ;;  %v2512_v40 = vmax.f32 %v1498_v58, 0.0 }
 0x177   :  { %v10157_v15 = vpack.c.bf16 %v2663_v32, %v2662_v47  ;;  %v2258_v54 = vadd.f32 %v9959_v24, %v2257_v10  ;;  %v10161_v48 = vpop.f32.mrf.mxu0  ;;  %v2665_v38 = vmax.f32 %v2263_v16, 0.0 }
 0x178   :  { %v7862_v46 = vpop.f32.mrf.mxu1  ;;  %7983 = vmatmul.mubr.msk.bf16.gmra.mxu1 %vm2858_vm2, %v2733_v49  ;;  %v2736_v49 = vpack.c.bf16 %v2515_v4, %v2514_v30  ;;  %v2735_v58 = vpack.c.bf16 %v2513_v14, %v2512_v40  ;;  %v1518_v4 = vadd.f32 %v9959_v24, %v10061_v43  ;;  %v2518_v40 = vmax.f32 %v1528_v22, 0.0 }
 0x179   :  { %11262 = vst [vmem:[#allocation23_spill] sm:$0xff] %v10157_v15  ;;  %v2664_v57 = vmax.f32 %v2258_v54, 0.0  ;;  %v2273_v9 = vadd.f32 %v9959_v24, %v7862_v46  ;;  %7986 = vmatprep.mubr.msk.bf16.mxu1 %vm2858_vm2, %v2734_v12  ;;  %v10165_v32 = vpop.f32.mrf.mxu0 }
 0x17a   :  { %v2267_v6 = vpop.f32.mrf.mxu1 }
 0x17b   :  { %v10167_v47 = vpack.c.bf16 %v2665_v38, %v2664_v57  ;;  %v2268_v10 = vadd.f32 %v9959_v24, %v2267_v6  ;;  %v10172_v16 = vpop.f32.mrf.mxu0  ;;  %v2667_v54 = vmax.f32 %v2273_v9, 0.0  ;;  %v1523_v38 = vadd.f32 %v9959_v24, %v10057_v3 }
 0x17c   :  { %v7865_v0 = vpop.f32.mrf.mxu1 }
 0x17d   :  { %11263 = vst [vmem:[#allocation24_spill] sm:$0xff] %v10167_v47  ;;  %v2666_v46 = vmax.f32 %v2268_v10, 0.0  ;;  %v2283_v12 = vadd.f32 %v9959_v24, %v7865_v0  ;;  %v10181_v30 = vpop.f32.mrf.mxu0  ;;  %v2519_v10 = vmax.f32 %v1533_v37, 0.0  ;;  %v2517_v43 = vmax.f32 %v1523_v38, 0.0 }
 0x17e   :  { %v2277_v57 = vpop.f32.mrf.mxu1  ;;  %v2516_v47 = vmax.f32 %v1518_v4, 0.0  ;;  %v1553_v37 = vadd.f32 %v9959_v24, %v10096_v61 }
 0x17f   :  { %v10183_v52 = vpack.c.bf16 %v2667_v54, %v2666_v46  ;;  %v2278_v9 = vadd.f32 %v9959_v24, %v2277_v57  ;;  %v10187_v0 = vpop.f32.mrf.mxu0  ;;  %v2669_v36 = vmax.f32 %v2283_v12, 0.0  ;;  %v1548_v12 = vadd.f32 %v9959_v24, %v10103_v60 }
 0x180   :  { %v7868_v6 = vpop.f32.mrf.mxu1  ;;  %7987 = vmatmul.mubr.msk.bf16.gmra.mxu1 %vm2858_vm2, %v2735_v58  ;;  %v2738_v38 = vpack.c.bf16 %v2519_v10, %v2518_v40  ;;  %v2523_v10 = vmax.f32 %v1553_v37, 0.0 }
 0x181   :  { %11264 = vst [vmem:[#allocation25_spill] sm:$0xff] %v10183_v52  ;;  %v2668_v14 = vmax.f32 %v2278_v9, 0.0  ;;  %v2293_v3 = vadd.f32 %v9959_v24, %v7868_v6  ;;  %7990 = vmatprep.mubr.msk.bf16.mxu1 %vm2858_vm2, %v2736_v49  ;;  %v10191_v54 = vpop.f32.mrf.mxu0  ;;  %v2737_v6 = vpack.c.bf16 %v2517_v43, %v2516_v47 }
 0x182   :  { %v2287_v15 = vpop.f32.mrf.mxu1 }
 0x183   :  { %v10193_v46 = vpack.c.bf16 %v2669_v36, %v2668_v14  ;;  %v2288_v57 = vadd.f32 %v9959_v24, %v2287_v15  ;;  %v10200_v9 = vpop.f32.mrf.mxu0  ;;  %v2671_v49 = vmax.f32 %v2293_v3, 0.0  ;;  %v1543_v36 = vadd.f32 %v9959_v24, %v10083_v33 }
 0x184   :  { %v7871_v58 = vpop.f32.mrf.mxu1  ;;  %v1538_v15 = vadd.f32 %v9959_v24, %v10087_v44  ;;  %v2522_v3 = vmax.f32 %v1548_v12, 0.0  ;;  %v1573_v12 = vadd.f32 %v9959_v24, %v10120_v55 }
 0x185   :  { %11265 = vst [vmem:[#allocation26_spill] sm:$0xff] %v10193_v46  ;;  %v2670_v22 = vmax.f32 %v2288_v57, 0.0  ;;  %v2303_v4 = vadd.f32 %v9959_v24, %v7871_v58  ;;  %v10207_v46 = vpop.f32.mrf.mxu0  ;;  %v2521_v44 = vmax.f32 %v1543_v36, 0.0  ;;  %v1568_v36 = vadd.f32 %v9959_v24, %v10129_v35 }
 0x186   :  { %v2297_v14 = vpop.f32.mrf.mxu1  ;;  %v2520_v57 = vmax.f32 %v1538_v15, 0.0 }
 0x187   :  { %v10209_v61 = vpack.c.bf16 %v2671_v49, %v2670_v22  ;;  %v2298_v60 = vadd.f32 %v9959_v24, %v2297_v14  ;;  %v10213_v40 = vpop.f32.mrf.mxu0  ;;  %v2673_v47 = vmax.f32 %v2303_v4, 0.0 }
 0x188   :  { %v7874_v52 = vpop.f32.mrf.mxu1  ;;  %7991 = vmatmul.mubr.msk.bf16.gmra.mxu1 %vm2858_vm2, %v2737_v6  ;;  %v2740_v6 = vpack.c.bf16 %v2523_v10, %v2522_v3  ;;  %v2739_v15 = vpack.c.bf16 %v2521_v44, %v2520_v57  ;;  %v1558_v10 = vadd.f32 %v9959_v24, %v10113_v20  ;;  %v2526_v57 = vmax.f32 %v1568_v36, 0.0 }
 0x189   :  { %11266 = vst [vmem:[#allocation27_spill] sm:$0xff] %v10209_v61  ;;  %v2672_v43 = vmax.f32 %v2298_v60, 0.0  ;;  %v2313_v33 = vadd.f32 %v9959_v24, %v7874_v52  ;;  %7994 = vmatprep.mubr.msk.bf16.mxu1 %vm2858_vm2, %v2738_v38  ;;  %v10217_v49 = vpop.f32.mrf.mxu0 }
 0x18a   :  { %v2307_v58 = vpop.f32.mrf.mxu1 }
 0x18b   :  { %v10219_v22 = vpack.c.bf16 %v2673_v47, %v2672_v43  ;;  %v2308_v14 = vadd.f32 %v9959_v24, %v2307_v58  ;;  %v10224_v4 = vpop.f32.mrf.mxu0  ;;  %v2675_v60 = vmax.f32 %v2313_v33, 0.0  ;;  %v1563_v47 = vadd.f32 %v9959_v24, %v10109_v31 }
 0x18c   :  { %v7877_v37 = vpop.f32.mrf.mxu1 }
 0x18d   :  { %11267 = vst [vmem:[#allocation28_spill] sm:$0xff] %v10219_v22  ;;  %v2674_v52 = vmax.f32 %v2308_v14, 0.0  ;;  %v2323_v38 = vadd.f32 %v9959_v24, %v7877_v37  ;;  %v10233_v3 = vpop.f32.mrf.mxu0  ;;  %v2527_v14 = vmax.f32 %v1573_v12, 0.0  ;;  %v2525_v20 = vmax.f32 %v1563_v47, 0.0 }
 0x18e   :  { %v2317_v43 = vpop.f32.mrf.mxu1  ;;  %v2524_v22 = vmax.f32 %v1558_v10, 0.0  ;;  %v1593_v12 = vadd.f32 %v9959_v24, %v10148_v25 }
 0x18f   :  { %v10235_v55 = vpack.c.bf16 %v2675_v60, %v2674_v52  ;;  %v2318_v33 = vadd.f32 %v9959_v24, %v2317_v43  ;;  %v10239_v37 = vpop.f32.mrf.mxu0  ;;  %v2677_v35 = vmax.f32 %v2323_v38, 0.0  ;;  %v1588_v38 = vadd.f32 %v9959_v24, %v10155_v7 }
 0x190   :  { %v7880_v58 = vpop.f32.mrf.mxu1  ;;  %7995 = vmatmul.mubr.msk.bf16.gmra.mxu1 %vm2858_vm2, %v2739_v15  ;;  %v2742_v47 = vpack.c.bf16 %v2527_v14, %v2526_v57  ;;  %v2531_v14 = vmax.f32 %v1593_v12, 0.0 }
 0x191   :  { %11268 = vst [vmem:[#allocation29_spill] sm:$0xff] %v10235_v55  ;;  %v2676_v44 = vmax.f32 %v2318_v33, 0.0  ;;  %v2333_v31 = vadd.f32 %v9959_v24, %v7880_v58  ;;  %7998 = vmatprep.mubr.msk.bf16.mxu1 %vm2858_vm2, %v2740_v6  ;;  %v10243_v60 = vpop.f32.mrf.mxu0  ;;  %v2741_v58 = vpack.c.bf16 %v2525_v20, %v2524_v22 }
 0x192   :  { %v2327_v61 = vpop.f32.mrf.mxu1 }
 0x193   :  { %v10245_v52 = vpack.c.bf16 %v2677_v35, %v2676_v44  ;;  %v2328_v43 = vadd.f32 %v9959_v24, %v2327_v61  ;;  %v10252_v33 = vpop.f32.mrf.mxu0  ;;  %v2679_v6 = vmax.f32 %v2333_v31, 0.0  ;;  %v1583_v35 = vadd.f32 %v9959_v24, %v10135_v27 }
 0x194   :  { %v7883_v15 = vpop.f32.mrf.mxu1  ;;  %v1578_v61 = vadd.f32 %v9959_v24, %v10139_v45  ;;  %v2530_v31 = vmax.f32 %v1588_v38, 0.0  ;;  %v1613_v38 = vadd.f32 %v9959_v24, %v10172_v16 }
 0x195   :  { %11269 = vst [vmem:[#allocation30_spill] sm:$0xff] %v10245_v52  ;;  %v2678_v36 = vmax.f32 %v2328_v43, 0.0  ;;  %v2343_v10 = vadd.f32 %v9959_v24, %v7883_v15  ;;  %v10259_v52 = vpop.f32.mrf.mxu0  ;;  %v2529_v45 = vmax.f32 %v1583_v35, 0.0  ;;  %v1608_v35 = vadd.f32 %v9959_v24, %v10181_v30 }
 0x196   :  { %v2337_v44 = vpop.f32.mrf.mxu1  ;;  %v2528_v43 = vmax.f32 %v1578_v61, 0.0 }
 0x197   :  { %v10261_v25 = vpack.c.bf16 %v2679_v6, %v2678_v36  ;;  %v2338_v7 = vadd.f32 %v9959_v24, %v2337_v44  ;;  %v10265_v57 = vpop.f32.mrf.mxu0  ;;  %v2681_v22 = vmax.f32 %v2343_v10, 0.0 }
 0x198   :  { %v7886_v55 = vpop.f32.mrf.mxu1  ;;  %7999 = vmatmul.mubr.msk.bf16.gmra.mxu1 %vm2858_vm2, %v2741_v58  ;;  %v2744_v58 = vpack.c.bf16 %v2531_v14, %v2530_v31  ;;  %v2743_v61 = vpack.c.bf16 %v2529_v45, %v2528_v43  ;;  %v1598_v14 = vadd.f32 %v9959_v24, %v10165_v32  ;;  %v2534_v43 = vmax.f32 %v1608_v35, 0.0 }
 0x199   :  { %11270 = vst [vmem:[#allocation31_spill] sm:$0xff] %v10261_v25  ;;  %v2680_v20 = vmax.f32 %v2338_v7, 0.0  ;;  %v2353_v27 = vadd.f32 %v9959_v24, %v7886_v55  ;;  %8002 = vmatprep.mubr.msk.bf16.mxu1 %vm2858_vm2, %v2742_v47  ;;  %v10269_v6 = vpop.f32.mrf.mxu0 }
 0x19a   :  { %v2347_v15 = vpop.f32.mrf.mxu1 }
 0x19b   :  { %v10271_v36 = vpack.c.bf16 %v2681_v22, %v2680_v20  ;;  %v2348_v44 = vadd.f32 %v9959_v24, %v2347_v15  ;;  %v10276_v10 = vpop.f32.mrf.mxu0  ;;  %v2683_v7 = vmax.f32 %v2353_v27, 0.0  ;;  %v1603_v22 = vadd.f32 %v9959_v24, %v10161_v48 }
 0x19c   :  { %v7889_v12 = vpop.f32.mrf.mxu1 }
 0x19d   :  { %11271 = vst [vmem:[#allocation32_spill] sm:$0xff] %v10271_v36  ;;  %v2682_v55 = vmax.f32 %v2348_v44, 0.0  ;;  %v2363_v47 = vadd.f32 %v9959_v24, %v7889_v12  ;;  %v10285_v31 = vpop.f32.mrf.mxu0  ;;  %v2535_v44 = vmax.f32 %v1613_v38, 0.0  ;;  %v2533_v32 = vmax.f32 %v1603_v22, 0.0 }
 0x19e   :  { %v2357_v20 = vpop.f32.mrf.mxu1  ;;  %v2532_v36 = vmax.f32 %v1598_v14, 0.0  ;;  %v1633_v38 = vadd.f32 %v9959_v24, %v10200_v9 }
 0x19f   :  { %v10287_v16 = vpack.c.bf16 %v2683_v7, %v2682_v55  ;;  %v2358_v27 = vadd.f32 %v9959_v24, %v2357_v20  ;;  %v10291_v12 = vpop.f32.mrf.mxu0  ;;  %v2685_v30 = vmax.f32 %v2363_v47, 0.0  ;;  %v1628_v47 = vadd.f32 %v9959_v24, %v10207_v46 }
 0x1a0   :  { %v7892_v15 = vpop.f32.mrf.mxu1  ;;  %8003 = vmatmul.mubr.msk.bf16.gmra.mxu1 %vm2858_vm2, %v2743_v61  ;;  %v2746_v22 = vpack.c.bf16 %v2535_v44, %v2534_v43  ;;  %v2539_v44 = vmax.f32 %v1633_v38, 0.0 }
 0x1a1   :  { %11272 = vst [vmem:[#allocation33_spill] sm:$0xff] %v10287_v16  ;;  %v2684_v45 = vmax.f32 %v2358_v27, 0.0  ;;  %v2373_v48 = vadd.f32 %v9959_v24, %v7892_v15  ;;  %8006 = vmatprep.mubr.msk.bf16.mxu1 %vm2858_vm2, %v2744_v58  ;;  %v10295_v7 = vpop.f32.mrf.mxu0  ;;  %v2745_v15 = vpack.c.bf16 %v2533_v32, %v2532_v36 }
 0x1a2   :  { %v2367_v25 = vpop.f32.mrf.mxu1 }
 0x1a3   :  { %v10297_v55 = vpack.c.bf16 %v2685_v30, %v2684_v45  ;;  %v2368_v20 = vadd.f32 %v9959_v24, %v2367_v25  ;;  %v10304_v27 = vpop.f32.mrf.mxu0  ;;  %v2687_v58 = vmax.f32 %v2373_v48, 0.0  ;;  %v1623_v30 = vadd.f32 %v9959_v24, %v10187_v0 }
 0x1a4   :  { %v7895_v61 = vpop.f32.mrf.mxu1  ;;  %v1618_v25 = vadd.f32 %v9959_v24, %v10191_v54  ;;  %v2538_v48 = vmax.f32 %v1628_v47, 0.0  ;;  %v1653_v47 = vadd.f32 %v9959_v24, %v10224_v4 }
 0x1a5   :  { %11273 = vst [vmem:[#allocation34_spill] sm:$0xff] %v10297_v55  ;;  %v2686_v35 = vmax.f32 %v2368_v20, 0.0  ;;  %v2383_v14 = vadd.f32 %v9959_v24, %v7895_v61  ;;  %v10311_v55 = vpop.f32.mrf.mxu0  ;;  %v2537_v54 = vmax.f32 %v1623_v30, 0.0  ;;  %v1648_v30 = vadd.f32 %v9959_v24, %v10233_v3 }
 0x1a6   :  { %v2377_v45 = vpop.f32.mrf.mxu1  ;;  %v2536_v20 = vmax.f32 %v1618_v25, 0.0 }
 0x1a7   :  { %v10313_v9 = vpack.c.bf16 %v2687_v58, %v2686_v35  ;;  %v2378_v46 = vadd.f32 %v9959_v24, %v2377_v45  ;;  %v10317_v43 = vpop.f32.mrf.mxu0  ;;  %v2689_v36 = vmax.f32 %v2383_v14, 0.0 }
 0x1a8   :  { %v7898_v16 = vpop.f32.mrf.mxu1  ;;  %8007 = vmatmul.mubr.msk.bf16.gmra.mxu1 %vm2858_vm2, %v2745_v15  ;;  %v2748_v15 = vpack.c.bf16 %v2539_v44, %v2538_v48  ;;  %v2747_v25 = vpack.c.bf16 %v2537_v54, %v2536_v20  ;;  %v1638_v44 = vadd.f32 %v9959_v24, %v10217_v49  ;;  %v2542_v20 = vmax.f32 %v1648_v30, 0.0 }
 0x1a9   :  { %11274 = vst [vmem:[#allocation35_spill] sm:$0xff] %v10313_v9  ;;  %v2688_v32 = vmax.f32 %v2378_v46, 0.0  ;;  %v2393_v0 = vadd.f32 %v9959_v24, %v7898_v16  ;;  %8010 = vmatprep.mubr.msk.bf16.mxu1 %vm2858_vm2, %v2746_v22  ;;  %v10321_v58 = vpop.f32.mrf.mxu0 }
 0x1aa   :  { %v2387_v61 = vpop.f32.mrf.mxu1 }
 0x1ab   :  { %v10323_v35 = vpack.c.bf16 %v2689_v36, %v2688_v32  ;;  %v2388_v45 = vadd.f32 %v9959_v24, %v2387_v61  ;;  %v10328_v14 = vpop.f32.mrf.mxu0  ;;  %v2691_v46 = vmax.f32 %v2393_v0, 0.0  ;;  %v1643_v36 = vadd.f32 %v9959_v24, %v10213_v40 }
 0x1ac   :  { %v7901_v38 = vpop.f32.mrf.mxu1 }
 0x1ad   :  { %11275 = vst [vmem:[#allocation36_spill] sm:$0xff] %v10323_v35  ;;  %v2690_v16 = vmax.f32 %v2388_v45, 0.0  ;;  %v2403_v22 = vadd.f32 %v9959_v24, %v7901_v38  ;;  %v10337_v48 = vpop.f32.mrf.mxu0  ;;  %v2543_v45 = vmax.f32 %v1653_v47, 0.0  ;;  %v2541_v49 = vmax.f32 %v1643_v36, 0.0 }
 0x1ae   :  { %v2397_v32 = vpop.f32.mrf.mxu1  ;;  %v2540_v35 = vmax.f32 %v1638_v44, 0.0  ;;  %v1673_v47 = vadd.f32 %v9959_v24, %v10252_v33  ;;  %v1663_v44 = vadd.f32 %v9959_v24, %v10239_v37 }
 0x1af   :  { %v10339_v4 = vpack.c.bf16 %v2691_v46, %v2690_v16  ;;  %v2398_v0 = vadd.f32 %v9959_v24, %v2397_v32  ;;  %v10343_v38 = vpop.f32.mrf.mxu0  ;;  %v2693_v3 = vmax.f32 %v2403_v22, 0.0  ;;  %v1668_v22 = vadd.f32 %v9959_v24, %v10259_v52 }
 0x1b0   :  { %v7904_v61 = vpop.f32.mrf.mxu1  ;;  %8011 = vmatmul.mubr.msk.bf16.gmra.mxu1 %vm2858_vm2, %v2747_v25  ;;  %v2749_v36 = vpack.c.bf16 %v2541_v49, %v2540_v35  ;;  %v2545_v37 = vmax.f32 %v1663_v44, 0.0 }
 0x1b1   :  { %v2692_v54 = vmax.f32 %v2398_v0, 0.0  ;;  %v2413_v40 = vadd.f32 %v9959_v24, %v7904_v61  ;;  %8014 = vmatprep.mubr.msk.bf16.mxu1 %vm2858_vm2, %v2748_v15  ;;  %v10354_v25 = vpop.f32.mrf.mxu0  ;;  %v2750_v15 = vpack.c.bf16 %v2543_v45, %v2542_v20 }
 0x1b2   :  { %v2407_v9 = vpop.f32.mrf.mxu1 }
 0x1b3   :  { %v10347_v46 = vpack.c.bf16 %v2693_v3, %v2692_v54  ;;  %v2408_v16 = vadd.f32 %v9959_v24, %v2407_v9  ;;  %v2695_v0 = vmax.f32 %v2413_v40, 0.0  ;;  %v1658_v9 = vadd.f32 %v9959_v24, %v10243_v60  ;;  %v10365_v45 = vpop.f32.mrf.mxu0 }
 0x1b4   :  { %v7907_v32 = vpop.f32.mrf.mxu1  ;;  %v2547_v40 = vmax.f32 %v1673_v47, 0.0  ;;  %v1693_v47 = vadd.f32 %v9959_v24, %v10276_v10 }
 0x1b5   :  { %v2694_v61 = vmax.f32 %v2408_v16, 0.0  ;;  %v2423_v30 = vadd.f32 %v9959_v24, %v7907_v32  ;;  %v2546_v16 = vmax.f32 %v1668_v22, 0.0  ;;  %v2544_v32 = vmax.f32 %v1658_v9, 0.0  ;;  %v10374_v22 = vpop.f32.mrf.mxu0 }
 0x1b6   :  { %v2417_v3 = vpop.f32.mrf.mxu1  ;;  %v1683_v9 = vadd.f32 %v9959_v24, %v10265_v57 }
 0x1b7   :  { %v10361_v54 = vpack.c.bf16 %v2695_v0, %v2694_v61  ;;  %v2418_v33 = vadd.f32 %v9959_v24, %v2417_v3  ;;  %v2697_v20 = vmax.f32 %v2423_v30, 0.0  ;;  %v2752_v3 = vpack.c.bf16 %v2547_v40, %v2546_v16 }
 0x1b8   :  { %v7910_v52 = vpop.f32.mrf.mxu1  ;;  %8015 = vmatmul.mubr.msk.bf16.gmra.mxu1 %vm2858_vm2, %v2749_v36  ;;  %v2751_v44 = vpack.c.bf16 %v2545_v37, %v2544_v32  ;;  %v1678_v40 = vadd.f32 %v9959_v24, %v10269_v6  ;;  %v2549_v57 = vmax.f32 %v1683_v9, 0.0  ;;  %v10395_v6 = vld [vmem:[%s11242_s4 + $0x1] ss:$0 sm:$0xff] }
 0x1b9   :  { %11276 = vst [vmem:[#allocation37_spill] sm:$0xff] %v10361_v54  ;;  %v2696_v35 = vmax.f32 %v2418_v33, 0.0  ;;  %v2433_v49 = vadd.f32 %v9959_v24, %v7910_v52  ;;  %8018 = vmatprep.mubr.msk.bf16.mxu1 %vm2858_vm2, %v2750_v15  ;;  %v1688_v15 = vadd.f32 %v9959_v24, %v10285_v31  ;;  %v2551_v31 = vmax.f32 %v1693_v47, 0.0 }
 0x1ba   :  { %v2427_v60 = vpop.f32.mrf.mxu1  ;;  %v2548_v32 = vmax.f32 %v1678_v40, 0.0  ;;  %v1708_v47 = vadd.f32 %v9959_v24, %v10311_v55  ;;  %v10409_v40 = vld [vmem:[%s11242_s4] ss:$0 sm:$0xff] }
 0x1bb   :  { %v10369_v0 = vpack.c.bf16 %v2697_v20, %v2696_v35  ;;  %v2428_v61 = vadd.f32 %v9959_v24, %v2427_v60  ;;  %v2699_v30 = vmax.f32 %v2433_v49, 0.0  ;;  %v10387_v35 = vpop.f32.mrf.mxu0  ;;  %v2550_v37 = vmax.f32 %v1688_v15, 0.0 }
 0x1bc   :  { %v7913_v54 = vpop.f32.mrf.mxu1  ;;  %v2753_v9 = vpack.c.bf16 %v2549_v57, %v2548_v32 }
 0x1bd   :  { %11277 = vst [vmem:[#allocation38_spill] sm:$0xff] %v10369_v0  ;;  %v2698_v36 = vmax.f32 %v2428_v61, 0.0  ;;  %v2443_v33 = vadd.f32 %v9959_v24, %v7913_v54  ;;  %v2754_v15 = vpack.c.bf16 %v2551_v31, %v2550_v37 }
 0x1be   :  { %v2437_v52 = vpop.f32.mrf.mxu1 }
 0x1bf   :  { %v10383_v16 = vpack.c.bf16 %v2699_v30, %v2698_v36  ;;  %v2438_v10 = vadd.f32 %v9959_v24, %v2437_v52  ;;  %v2701_v54 = vmax.f32 %v2443_v33, 0.0  ;;  %v1713_v36 = vadd.f32 %v9959_v24, %v10304_v27  ;;  %v10401_v33 = vpop.f32.mrf.mxu0 }
 0x1c0   :  { %v7924_v20 = vpop.f32.mrf.mxu1  ;;  %8019 = vmatmul.mubr.msk.bf16.gmra.mxu1 %vm2858_vm2, %v2751_v44  ;;  %v1703_v27 = vadd.f32 %v10409_v40, %v10291_v12  ;;  %v1698_v24 = vadd.f32 %v10409_v40, %v10295_v7 }
 0x1c1   :  { %11278 = vst [vmem:[#allocation39_spill] sm:$0xff] %v10383_v16  ;;  %v2700_v49 = vmax.f32 %v2438_v10, 0.0  ;;  %8022 = vmatprep.mubr.msk.bf16.mxu1 %vm2858_vm2, %v2752_v3  ;;  %v3286_v52 = vadd.f32 %v7924_v20, %v10395_v6  ;;  %v2555_v31 = vmax.f32 %v1713_v36, 0.0  ;;  %v2554_v20 = vmax.f32 %v1708_v47, 0.0  ;;  %v10417_v37 = vpop.f32.mrf.mxu0 }
 0x1c2   :  { %v3277_v60 = vpop.f32.mrf.mxu1  ;;  %v2553_v12 = vmax.f32 %v1703_v27, 0.0  ;;  %v1733_v47 = vadd.f32 %v10409_v40, %v10328_v14  ;;  %v1723_v27 = vadd.f32 %v10409_v40, %v10317_v43 }
 0x1c3   :  { %v10390_v61 = vpack.c.bf16 %v2701_v54, %v2700_v49  ;;  %v3278_v3 = vadd.f32 %v10395_v6, %v3277_v60  ;;  %v4302_v60 = vmax.f32 %v3286_v52, 0.0  ;;  %v2756_v0 = vpack.c.bf16 %v2555_v31, %v2554_v20 }
 0x1c4   :  { %v7925_v30 = vpop.f32.mrf.mxu1  ;;  %v2559_v20 = vmax.f32 %v1733_v47, 0.0 }
 0x1c5   :  { %11279 = vst [vmem:[#allocation40_spill] sm:$0xff] %v10390_v61  ;;  %v3289_v44 = vadd.f32 %v7925_v30, %v10395_v6  ;;  %v4300_v57 = vmax.f32 %v3278_v3, 0.0  ;;  %v2552_v30 = vmax.f32 %v1698_v24, 0.0  ;;  %v1728_v3 = vadd.f32 %v10409_v40, %v10337_v48 }
 0x1c6   :  { %v3280_v10 = vpop.f32.mrf.mxu1 }
 0x1c7   :  { %v3281_v55 = vadd.f32 %v10395_v6, %v3280_v10  ;;  %v4303_v54 = vmax.f32 %v3289_v44, 0.0  ;;  %v10420_v44 = vpop.f32.mrf.mxu0 }
 0x1c8   :  { %v7928_v49 = vpop.f32.mrf.mxu1  ;;  %8023 = vmatmul.mubr.msk.bf16.gmra.mxu1 %vm2858_vm2, %v2753_v9 }
 0x1c9   :  { %v4301_v32 = vmax.f32 %v3281_v55, 0.0  ;;  %8026 = vmatprep.mubr.msk.bf16.mxu1 %vm2858_vm2, %v2754_v15  ;;  %v4557_v7 = vpack.c.bf16 %v4303_v54, %v4302_v60  ;;  %v2755_v15 = vpack.c.bf16 %v2553_v12, %v2552_v30  ;;  %v3302_v52 = vadd.f32 %v7928_v49, %v10395_v6  ;;  %v10435_v14 = vpop.f32.mrf.mxu0 }
 0x1ca   :  { %v3293_v61 = vpop.f32.mrf.mxu1  ;;  %v2558_v49 = vmax.f32 %v1728_v3, 0.0 }
 0x1cb   :  { %v4556_v16 = vpack.c.bf16 %v4301_v32, %v4300_v57  ;;  %v3294_v9 = vadd.f32 %v10395_v6, %v3293_v61  ;;  %v1718_v61 = vadd.f32 %v10409_v40, %v10321_v58  ;;  %v4306_v43 = vmax.f32 %v3302_v52, 0.0 }
 0x1cc   :  { %v7929_v10 = vpop.f32.mrf.mxu1  ;;  %v2557_v57 = vmax.f32 %v1723_v27, 0.0  ;;  %v2758_v47 = vpack.c.bf16 %v2559_v20, %v2558_v49  ;;  %v1743_v52 = vadd.f32 %v10409_v40, %v10343_v38 }
 0x1cd   :  { %v3305_v36 = vadd.f32 %v7929_v10, %v10395_v6  ;;  %8194 = vmatprep.mubr.bf16.mxu0 %v4556_v16  ;;  %v4304_v48 = vmax.f32 %v3294_v9, 0.0  ;;  %v2556_v32 = vmax.f32 %v1718_v61, 0.0  ;;  %v1748_v10 = vadd.f32 %v10409_v40, %v10374_v22 }
 0x1ce   :  { %v3296_v24 = vpop.f32.mrf.mxu1  ;;  %8195 = vmatmul.mubr.bf16.vlgmr.msra.gmra.mxu0 %v4557_v7  ;;  %v1753_v7 = vadd.f32 %v10409_v40, %v10365_v45  ;;  %v1738_v45 = vadd.f32 %v10409_v40, %v10354_v25  ;;  %v2561_v38 = vmax.f32 %v1743_v52, 0.0 }
 0x1cf   :  { %v3297_v55 = vadd.f32 %v10395_v6, %v3296_v24  ;;  %v4307_v16 = vmax.f32 %v3305_v36, 0.0  ;;  %v10442_v36 = vpop.f32.mrf.mxu0  ;;  %v2757_v3 = vpack.c.bf16 %v2557_v57, %v2556_v32 }
 0x1d0   :  { %v7932_v54 = vpop.f32.mrf.mxu1  ;;  %8027 = vmatmul.mubr.msk.bf16.gmra.mxu1 %vm2858_vm2, %v2755_v15  ;;  %v2560_v49 = vmax.f32 %v1738_v45, 0.0 }
 0x1d1   :  { %v4305_v31 = vmax.f32 %v3297_v55, 0.0  ;;  %8030 = vmatprep.mubr.msk.bf16.mxu1 %vm2858_vm2, %v2756_v0  ;;  %v4559_v58 = vpack.c.bf16 %v4307_v16, %v4306_v43  ;;  %v3318_v15 = vadd.f32 %v7932_v54, %v10395_v6  ;;  %v2563_v55 = vmax.f32 %v1753_v7, 0.0 }
 0x1d2   :  { %v3309_v60 = vpop.f32.mrf.mxu1  ;;  %v2562_v16 = vmax.f32 %v1748_v10, 0.0  ;;  %v1773_v7 = vadd.f32 %v10409_v40, %v10417_v37  ;;  %v1768_v10 = vadd.f32 %v10409_v40, %v10420_v44 }
 0x1d3   :  { %v4558_v12 = vpack.c.bf16 %v4305_v31, %v4304_v48  ;;  %v3310_v9 = vadd.f32 %v10395_v6, %v3309_v60  ;;  %v7718_v48 = vpop.f32.mrf.mxu0  ;;  %v4310_v54 = vmax.f32 %v3318_v15, 0.0  ;;  %v1758_v15 = vadd.f32 %v10409_v40, %v10401_v33 }
 0x1d4   :  { %v7933_v30 = vpop.f32.mrf.mxu1  ;;  %v2760_v25 = vpack.c.bf16 %v2563_v55, %v2562_v16 }
 0x1d5   :  { %v3321_v0 = vadd.f32 %v7933_v30, %v10395_v6  ;;  %8198 = vmatprep.mubr.bf16.mxu0 %v4558_v12  ;;  %v4308_v31 = vmax.f32 %v3310_v9, 0.0  ;;  %v1787_v12 = vpop.f32.mrf.mxu0  ;;  %v2759_v9 = vpack.c.bf16 %v2561_v38, %v2560_v49  ;;  %v2564_v16 = vmax.f32 %v1758_v15, 0.0 }
 0x1d6   :  { %v3312_v27 = vpop.f32.mrf.mxu1  ;;  %8199 = vmatmul.mubr.bf16.gmra.mxu0 %v4559_v58  ;;  %v1793_v38 = vadd.f32 %v10409_v40, %v7718_v48  ;;  %v1788_v49 = vadd.f32 %v10409_v40, %v1787_v12  ;;  %v1778_v48 = vadd.f32 %v10409_v40, %v10442_v36 }
 0x1d7   :  { %v3313_v22 = vadd.f32 %v10395_v6, %v3312_v27  ;;  %v4311_v24 = vmax.f32 %v3321_v0, 0.0  ;;  %v1763_v0 = vadd.f32 %v10409_v40, %v10387_v35  ;;  %v7721_v37 = vpop.f32.mrf.mxu0 }
 0x1d8   :  { %v7936_v61 = vpop.f32.mrf.mxu1  ;;  %8031 = vmatmul.mubr.msk.bf16.gmra.mxu1 %vm2858_vm2, %v2757_v3 }
 0x1d9   :  { %v4309_v20 = vmax.f32 %v3313_v22, 0.0  ;;  %8034 = vmatprep.mubr.msk.bf16.mxu1 %vm2858_vm2, %v2758_v47  ;;  %v4561_v32 = vpack.c.bf16 %v4311_v24, %v4310_v54  ;;  %v3334_v47 = vadd.f32 %v7936_v61, %v10395_v6  ;;  %v2567_v24 = vmax.f32 %v1773_v7, 0.0 }
 0x1da   :  { %v3325_v43 = vpop.f32.mrf.mxu1  ;;  %v2566_v61 = vmax.f32 %v1768_v10, 0.0  ;;  %v2565_v35 = vmax.f32 %v1763_v0, 0.0  ;;  %v2571_v0 = vmax.f32 %v1793_v38, 0.0  ;;  %v1803_v38 = vadd.f32 %v10409_v40, %v7721_v37 }
 0x1db   :  { %v4560_v57 = vpack.c.bf16 %v4309_v20, %v4308_v31  ;;  %v3326_v58 = vadd.f32 %v10395_v6, %v3325_v43  ;;  %v4314_v55 = vmax.f32 %v3334_v47, 0.0  ;;  %v1797_v43 = vpop.f32.mrf.mxu0 }
 0x1dc   :  { %v7937_v60 = vpop.f32.mrf.mxu1 }
 0x1dd   :  { %v3337_v30 = vadd.f32 %v7937_v60, %v10395_v6  ;;  %8202 = vmatprep.mubr.bf16.mxu0 %v4560_v57  ;;  %v4312_v22 = vmax.f32 %v3326_v58, 0.0  ;;  %v7724_v10 = vpop.f32.mrf.mxu0 }
 0x1de   :  { %v3328_v3 = vpop.f32.mrf.mxu1  ;;  %8203 = vmatmul.mubr.bf16.gmra.mxu0 %v4561_v32  ;;  %v2762_v32 = vpack.c.bf16 %v2567_v24, %v2566_v61 }
 0x1df   :  { %v3329_v52 = vadd.f32 %v10395_v6, %v3328_v3  ;;  %v4315_v27 = vmax.f32 %v3337_v30, 0.0  ;;  %v1783_v30 = vadd.f32 %v10409_v40, %v10435_v14  ;;  %v2570_v3 = vmax.f32 %v1788_v49, 0.0 }
 0x1e0   :  { %v7940_v45 = vpop.f32.mrf.mxu1  ;;  %8035 = vmatmul.mubr.msk.bf16.gmra.mxu1 %vm2858_vm2, %v2759_v9 }
 0x1e1   :  { %v4313_v44 = vmax.f32 %v3329_v52, 0.0  ;;  %8038 = vmatprep.mubr.msk.bf16.mxu1 %vm2858_vm2, %v2760_v25  ;;  %v4563_v54 = vpack.c.bf16 %v4315_v27, %v4314_v55  ;;  %v2761_v25 = vpack.c.bf16 %v2565_v35, %v2564_v16  ;;  %v3350_v58 = vadd.f32 %v7940_v45, %v10395_v6 }
 0x1e2   :  { %v3341_v31 = vpop.f32.mrf.mxu1  ;;  %v2569_v14 = vmax.f32 %v1783_v30, 0.0  ;;  %v2568_v45 = vmax.f32 %v1778_v48, 0.0  ;;  %v2764_v61 = vpack.c.bf16 %v2571_v0, %v2570_v3 }
 0x1e3   :  { %v4562_v20 = vpack.c.bf16 %v4313_v44, %v4312_v22  ;;  %v3342_v57 = vadd.f32 %v10395_v6, %v3341_v31  ;;  %v4318_v27 = vmax.f32 %v3350_v58, 0.0  ;;  %v1807_v44 = vpop.f32.mrf.mxu0  ;;  %v1813_v31 = vadd.f32 %v10409_v40, %v7724_v10 }
 0x1e4   :  { %v7941_v33 = vpop.f32.mrf.mxu1 }
 0x1e5   :  { %v3353_v60 = vadd.f32 %v7941_v33, %v10395_v6  ;;  %8206 = vmatprep.mubr.bf16.mxu0 %v4562_v20  ;;  %v4316_v15 = vmax.f32 %v3342_v57, 0.0  ;;  %v1808_v20 = vadd.f32 %v10409_v40, %v1807_v44  ;;  %v1798_v57 = vadd.f32 %v10409_v40, %v1797_v43 }
 0x1e6   :  { %v3344_v7 = vpop.f32.mrf.mxu1  ;;  %8207 = vmatmul.mubr.bf16.gmra.mxu0 %v4563_v54  ;;  %v2763_v54 = vpack.c.bf16 %v2569_v14, %v2568_v45 }
 0x1e7   :  { %v3345_v12 = vadd.f32 %v10395_v6, %v3344_v7  ;;  %v4319_v9 = vmax.f32 %v3353_v60, 0.0  ;;  %v2575_v7 = vmax.f32 %v1813_v31, 0.0  ;;  %v2574_v48 = vmax.f32 %v1808_v20, 0.0 }
 0x1e8   :  { %v7944_v47 = vpop.f32.mrf.mxu1  ;;  %8039 = vmatmul.mubr.msk.bf16.gmra.mxu1 %vm2858_vm2, %v2761_v25 }
 0x1e9   :  { %v4317_v52 = vmax.f32 %v3345_v12, 0.0  ;;  %8042 = vmatprep.mubr.msk.bf16.mxu1 %vm2858_vm2, %v2762_v32  ;;  %v4565_v36 = vpack.c.bf16 %v4319_v9, %v4318_v27  ;;  %v3366_v33 = vadd.f32 %v7944_v47, %v10395_v6  ;;  %v2573_v12 = vmax.f32 %v1803_v38, 0.0 }
 0x1ea   :  { %v3357_v22 = vpop.f32.mrf.mxu1  ;;  %v2572_v9 = vmax.f32 %v1798_v57, 0.0 }
 0x1eb   :  { %v4564_v24 = vpack.c.bf16 %v4317_v52, %v4316_v15  ;;  %v3358_v35 = vadd.f32 %v10395_v6, %v3357_v22  ;;  %v4322_v10 = vmax.f32 %v3366_v33, 0.0  ;;  %v2766_v15 = vpack.c.bf16 %v2575_v7, %v2574_v48 }
 0x1ec   :  { %v7945_v55 = vpop.f32.mrf.mxu1  ;;  %v2765_v52 = vpack.c.bf16 %v2573_v12, %v2572_v9 }
 0x1ed   :  { %v3369_v16 = vadd.f32 %v7945_v55, %v10395_v6  ;;  %8210 = vmatprep.mubr.bf16.mxu0 %v4564_v24  ;;  %v4320_v58 = vmax.f32 %v3358_v35, 0.0 }
 0x1ee   :  { %v3360_v49 = vpop.f32.mrf.mxu1  ;;  %8211 = vmatmul.mubr.bf16.gmra.mxu0 %v4565_v36 }
 0x1ef   :  { %v3361_v32 = vadd.f32 %v10395_v6, %v3360_v49  ;;  %v4323_v60 = vmax.f32 %v3369_v16, 0.0 }
 0x1f0   :  { %v7948_v25 = vpop.f32.mrf.mxu1  ;;  %8043 = vmatmul.mubr.msk.bf16.gmra.mxu1 %vm2858_vm2, %v2763_v54 }
 0x1f1   :  { %v4321_v30 = vmax.f32 %v3361_v32, 0.0  ;;  %8046 = vmatprep.mubr.msk.bf16.mxu1 %vm2858_vm2, %v2764_v61  ;;  %v4567_v0 = vpack.c.bf16 %v4323_v60, %v4322_v10  ;;  %v3382_v27 = vadd.f32 %v7948_v25, %v10395_v6 }
 0x1f2   :  { %v3373_v37 = vpop.f32.mrf.mxu1 }
 0x1f3   :  { %v4566_v47 = vpack.c.bf16 %v4321_v30, %v4320_v58  ;;  %v3374_v40 = vadd.f32 %v10395_v6, %v3373_v37  ;;  %v4326_v61 = vmax.f32 %v3382_v27, 0.0 }
 0x1f4   :  { %v7949_v3 = vpop.f32.mrf.mxu1 }
 0x1f5   :  { %v3385_v43 = vadd.f32 %v7949_v3, %v10395_v6  ;;  %8214 = vmatprep.mubr.bf16.mxu0 %v4566_v47  ;;  %v4324_v24 = vmax.f32 %v3374_v40, 0.0 }
 0x1f6   :  { %v3376_v14 = vpop.f32.mrf.mxu1  ;;  %8215 = vmatmul.mubr.bf16.gmra.mxu0 %v4567_v0 }
 0x1f7   :  { %v3377_v45 = vadd.f32 %v10395_v6, %v3376_v14  ;;  %v4327_v22 = vmax.f32 %v3385_v43, 0.0 }
 0x1f8   :  { %v7952_v44 = vpop.f32.mrf.mxu1  ;;  %8047 = vmatmul.mubr.msk.bf16.gmra.mxu1 %vm2858_vm2, %v2765_v52 }
 0x1f9   :  { %v4325_v36 = vmax.f32 %v3377_v45, 0.0  ;;  %8050 = vmatprep.mubr.msk.bf16.mxu1 %vm2858_vm2, %v2766_v15  ;;  %v4569_v16 = vpack.c.bf16 %v4327_v22, %v4326_v61  ;;  %v3398_v33 = vadd.f32 %v7952_v44, %v10395_v6 }
 0x1fa   :  { %v3389_v55 = vpop.f32.mrf.mxu1 }
 0x1fb   :  { %v4568_v35 = vpack.c.bf16 %v4325_v36, %v4324_v24  ;;  %v3390_v20 = vadd.f32 %v10395_v6, %v3389_v55  ;;  %v4330_v58 = vmax.f32 %v3398_v33, 0.0 }
 0x1fc   :  { %v7953_v31 = vpop.f32.mrf.mxu1 }
 0x1fd   :  { %v3401_v54 = vadd.f32 %v7953_v31, %v10395_v6  ;;  %8218 = vmatprep.mubr.bf16.mxu0 %v4568_v35  ;;  %v4328_v60 = vmax.f32 %v3390_v20, 0.0 }
 0x1fe   :  { %v3392_v38 = vpop.f32.mrf.mxu1  ;;  %8219 = vmatmul.mubr.bf16.gmra.mxu0 %v4569_v16 }
 0x1ff   :  { %v3393_v49 = vadd.f32 %v10395_v6, %v3392_v38  ;;  %v4331_v57 = vmax.f32 %v3401_v54, 0.0 }
 0x200   :  { %v7956_v32 = vpop.f32.mrf.mxu1  ;;  %8051 = vmatmul.mubr.msk.bf16.gmra.mxu1 %vm2858_vm2, %v9405_v29 }
 0x201   :  { %v4329_v25 = vmax.f32 %v3393_v49, 0.0  ;;  %8054 = vmatprep.mubr.msk.bf16.mxu1 %vm2858_vm2, %v9429_v42  ;;  %v4571_v48 = vpack.c.bf16 %v4331_v57, %v4330_v58  ;;  %v3414_v37 = vadd.f32 %v7956_v32, %v10395_v6 }
 0x202   :  { %v3405_v30 = vpop.f32.mrf.mxu1 }
 0x203   :  { %v4570_v7 = vpack.c.bf16 %v4329_v25, %v4328_v60  ;;  %v3406_v12 = vadd.f32 %v10395_v6, %v3405_v30  ;;  %v4334_v43 = vmax.f32 %v3414_v37, 0.0 }
 0x204   :  { %v7957_v10 = vpop.f32.mrf.mxu1 }
 0x205   :  { %v3417_v9 = vadd.f32 %v7957_v10, %v10395_v6  ;;  %8222 = vmatprep.mubr.bf16.mxu0 %v4570_v7  ;;  %v4332_v42 = vmax.f32 %v3406_v12, 0.0 }
 0x206   :  { %v3408_v47 = vpop.f32.mrf.mxu1  ;;  %8223 = vmatmul.mubr.bf16.gmra.mxu0 %v4571_v48 }
 0x207   :  { %v3409_v29 = vadd.f32 %v10395_v6, %v3408_v47  ;;  %v4335_v0 = vmax.f32 %v3417_v9, 0.0 }
 0x208   :  { %v7960_v3 = vpop.f32.mrf.mxu1  ;;  %8055 = vmatmul.mubr.msk.bf16.gmra.mxu1 %vm2858_vm2, %v9456_v56 }
 0x209   :  { %v4333_v40 = vmax.f32 %v3409_v29, 0.0  ;;  %8058 = vmatprep.mubr.msk.bf16.mxu1 %vm2858_vm2, %v9480_v5  ;;  %v4573_v27 = vpack.c.bf16 %v4335_v0, %v4334_v43  ;;  %v3430_v44 = vadd.f32 %v7960_v3, %v10395_v6 }
 0x20a   :  { %v3421_v15 = vpop.f32.mrf.mxu1 }
 0x20b   :  { %v4572_v52 = vpack.c.bf16 %v4333_v40, %v4332_v42  ;;  %v3422_v45 = vadd.f32 %v10395_v6, %v3421_v15  ;;  %v4338_v35 = vmax.f32 %v3430_v44, 0.0 }
 0x20c   :  { %v7961_v14 = vpop.f32.mrf.mxu1 }
 0x20d   :  { %v3433_v22 = vadd.f32 %v7961_v14, %v10395_v6  ;;  %8226 = vmatprep.mubr.bf16.mxu0 %v4572_v52  ;;  %v4336_v5 = vmax.f32 %v3422_v45, 0.0 }
 0x20e   :  { %v3424_v24 = vpop.f32.mrf.mxu1  ;;  %8227 = vmatmul.mubr.bf16.gmra.mxu0 %v4573_v27 }
 0x20f   :  { %v3425_v56 = vadd.f32 %v10395_v6, %v3424_v24  ;;  %v4339_v36 = vmax.f32 %v3433_v22, 0.0 }
 0x210   :  { %v7964_v61 = vpop.f32.mrf.mxu1  ;;  %8059 = vmatmul.mubr.msk.bf16.gmra.mxu1 %vm2858_vm2, %v9504_v19 }
 0x211   :  { %v4337_v55 = vmax.f32 %v3425_v56, 0.0  ;;  %8062 = vmatprep.mubr.msk.bf16.mxu1 %vm2858_vm2, %v9528_v34  ;;  %v4575_v20 = vpack.c.bf16 %v4339_v36, %v4338_v35  ;;  %v3446_v49 = vadd.f32 %v7964_v61, %v10395_v6 }
 0x212   :  { %v3437_v16 = vpop.f32.mrf.mxu1 }
 0x213   :  { %v4574_v31 = vpack.c.bf16 %v4337_v55, %v4336_v5  ;;  %v3438_v33 = vadd.f32 %v10395_v6, %v3437_v16  ;;  %v4342_v58 = vmax.f32 %v3446_v49, 0.0 }
 0x214   :  { %v7965_v54 = vpop.f32.mrf.mxu1 }
 0x215   :  { %v3449_v38 = vadd.f32 %v7965_v54, %v10395_v6  ;;  %8230 = vmatprep.mubr.bf16.mxu0 %v4574_v31  ;;  %v4340_v34 = vmax.f32 %v3438_v33, 0.0 }
 0x216   :  { %v3440_v57 = vpop.f32.mrf.mxu1  ;;  %8231 = vmatmul.mubr.bf16.gmra.mxu0 %v4575_v20 }
 0x217   :  { %v3441_v19 = vadd.f32 %v10395_v6, %v3440_v57  ;;  %v4343_v32 = vmax.f32 %v3449_v38, 0.0 }
 0x218   :  { %v7968_v60 = vpop.f32.mrf.mxu1  ;;  %8063 = vmatmul.mubr.msk.bf16.gmra.mxu1 %vm2858_vm2, %v9552_v50 }
 0x219   :  { %v4341_v25 = vmax.f32 %v3441_v19, 0.0  ;;  %8066 = vmatprep.mubr.msk.bf16.mxu1 %vm2858_vm2, %v9576_v2  ;;  %v4577_v48 = vpack.c.bf16 %v4343_v32, %v4342_v58  ;;  %v3462_v37 = vadd.f32 %v7968_v60, %v10395_v6  ;;  %v8527_v19 = vmov 0.0  }
 0x21a   :  { %v3453_v30 = vpop.f32.mrf.mxu1  ;;  %8450 = vmatprep.subr.bf16.mxu1 %v8527_v19 }
 0x21b   :  { %v4576_v7 = vpack.c.bf16 %v4341_v25, %v4340_v34  ;;  %v3454_v12 = vadd.f32 %v10395_v6, %v3453_v30  ;;  %v4346_v42 = vmax.f32 %v3462_v37, 0.0 }
 0x21c   :  { %v7969_v10 = vpop.f32.mrf.mxu1 }
 0x21d   :  { %v3465_v9 = vadd.f32 %v7969_v10, %v10395_v6  ;;  %8234 = vmatprep.mubr.bf16.mxu0 %v4576_v7  ;;  %v4344_v2 = vmax.f32 %v3454_v12, 0.0 }
 0x21e   :  { %v3456_v47 = vpop.f32.mrf.mxu1  ;;  %8235 = vmatmul.mubr.bf16.gmra.mxu0 %v4577_v48 }
 0x21f   :  { %v3457_v50 = vadd.f32 %v10395_v6, %v3456_v47  ;;  %v4347_v29 = vmax.f32 %v3465_v9, 0.0 }
 0x220   :  { %v7972_v0 = vpop.f32.mrf.mxu1  ;;  %8067 = vmatmul.mubr.msk.bf16.gmra.mxu1 %vm2858_vm2, %v9600_v21 }
 0x221   :  { %v4345_v3 = vmax.f32 %v3457_v50, 0.0  ;;  %8070 = vmatprep.mubr.msk.bf16.mxu1 %vm2858_vm2, %v9624_v41  ;;  %v4579_v15 = vpack.c.bf16 %v4347_v29, %v4346_v42  ;;  %v3478_v45 = vadd.f32 %v7972_v0, %v10395_v6 }
 0x222   :  { %v3469_v40 = vpop.f32.mrf.mxu1 }
 0x223   :  { %v4578_v43 = vpack.c.bf16 %v4345_v3, %v4344_v2  ;;  %v3470_v27 = vadd.f32 %v10395_v6, %v3469_v40  ;;  %v4350_v36 = vmax.f32 %v3478_v45, 0.0 }
 0x224   :  { %v7973_v52 = vpop.f32.mrf.mxu1 }
 0x225   :  { %v3481_v14 = vadd.f32 %v7973_v52, %v10395_v6  ;;  %8238 = vmatprep.mubr.bf16.mxu0 %v4578_v43  ;;  %v4348_v41 = vmax.f32 %v3470_v27, 0.0 }
 0x226   :  { %v3472_v22 = vpop.f32.mrf.mxu1  ;;  %8239 = vmatmul.mubr.bf16.gmra.mxu0 %v4579_v15 }
 0x227   :  { %v3473_v21 = vadd.f32 %v10395_v6, %v3472_v22  ;;  %v4351_v44 = vmax.f32 %v3481_v14, 0.0 }
 0x228   :  { %v7976_v24 = vpop.f32.mrf.mxu1  ;;  %8071 = vmatmul.mubr.msk.bf16.gmra.mxu1 %vm2858_vm2, %v9651_v63 }
 0x229   :  { %v4349_v56 = vmax.f32 %v3473_v21, 0.0  ;;  %8074 = vmatprep.mubr.msk.bf16.mxu1 %vm2858_vm2, %v9687_v28  ;;  %v4581_v55 = vpack.c.bf16 %v4351_v44, %v4350_v36  ;;  %v3494_v20 = vadd.f32 %v7976_v24, %v10395_v6  ;;  %v8489_v28 = vld [vmem:[%s11241_s3 + $0x78] sm:$0xff]  }
 0x22a   :  { %v3485_v61 = vpop.f32.mrf.mxu1  ;;  %8451 = vmatpush3.bf16.msra.mxu1 %v8489_v28 }
 0x22b   :  { %v4580_v5 = vpack.c.bf16 %v4349_v56, %v4348_v41  ;;  %v3486_v16 = vadd.f32 %v10395_v6, %v3485_v61  ;;  %v4354_v32 = vmax.f32 %v3494_v20, 0.0  ;;  %8452 = vmatprep.subr.bf16.mxu1 %v8527_v19 }
 0x22c   :  { %v7977_v35 = vpop.f32.mrf.mxu1 }
 0x22d   :  { %v3497_v31 = vadd.f32 %v7977_v35, %v10395_v6  ;;  %8242 = vmatprep.mubr.bf16.mxu0 %v4580_v5  ;;  %v4352_v49 = vmax.f32 %v3486_v16, 0.0 }
 0x22e   :  { %v3488_v54 = vpop.f32.mrf.mxu1  ;;  %8243 = vmatmul.mubr.bf16.gmra.mxu0 %v4581_v55 }
 0x22f   :  { %v3489_v63 = vadd.f32 %v10395_v6, %v3488_v54  ;;  %v4355_v33 = vmax.f32 %v3497_v31, 0.0 }
 0x230   :  { %v7980_v38 = vpop.f32.mrf.mxu1  ;;  %8075 = vmatmul.mubr.msk.bf16.gmra.mxu1 %vm2858_vm2, %v9708_v62 }
 0x231   :  { %v4353_v57 = vmax.f32 %v3489_v63, 0.0  ;;  %8078 = vmatprep.mubr.msk.bf16.mxu1 %vm2858_vm2, %v9734_v23  ;;  %v4583_v25 = vpack.c.bf16 %v4355_v33, %v4354_v32  ;;  %v3510_v7 = vadd.f32 %v7980_v38, %v10395_v6 }
 0x232   :  { %v3501_v60 = vpop.f32.mrf.mxu1 }
 0x233   :  { %v4582_v34 = vpack.c.bf16 %v4353_v57, %v4352_v49  ;;  %v3502_v58 = vadd.f32 %v10395_v6, %v3501_v60  ;;  %v4358_v47 = vmax.f32 %v3510_v7, 0.0 }
 0x234   :  { %v7981_v62 = vpop.f32.mrf.mxu1 }
 0x235   :  { %v3513_v30 = vadd.f32 %v7981_v62, %v10395_v6  ;;  %8246 = vmatprep.mubr.bf16.mxu0 %v4582_v34  ;;  %v4356_v9 = vmax.f32 %v3502_v58, 0.0 }
 0x236   :  { %v3504_v48 = vpop.f32.mrf.mxu1  ;;  %8247 = vmatmul.mubr.bf16.gmra.mxu0 %v4583_v25 }
 0x237   :  { %v3505_v23 = vadd.f32 %v10395_v6, %v3504_v48  ;;  %v4359_v10 = vmax.f32 %v3513_v30, 0.0 }
 0x238   :  { %v7984_v12 = vpop.f32.mrf.mxu1  ;;  %8079 = vmatmul.mubr.msk.bf16.gmra.mxu1 %vm2858_vm2, %v9752_v51 }
 0x239   :  { %v4357_v37 = vmax.f32 %v3505_v23, 0.0  ;;  %8082 = vmatprep.mubr.msk.bf16.mxu1 %vm2858_vm2, %v9776_v59  ;;  %v4585_v0 = vpack.c.bf16 %v4359_v10, %v4358_v47  ;;  %v3526_v40 = vadd.f32 %v7984_v12, %v10395_v6 }
 0x23a   :  { %v3517_v50 = vpop.f32.mrf.mxu1 }
 0x23b   :  { %v4584_v29 = vpack.c.bf16 %v4357_v37, %v4356_v9  ;;  %v3518_v3 = vadd.f32 %v10395_v6, %v3517_v50  ;;  %v4362_v14 = vmax.f32 %v3526_v40, 0.0 }
 0x23c   :  { %v7985_v2 = vpop.f32.mrf.mxu1 }
 0x23d   :  { %v3529_v42 = vadd.f32 %v7985_v2, %v10395_v6  ;;  %8250 = vmatprep.mubr.bf16.mxu0 %v4584_v29  ;;  %v4360_v59 = vmax.f32 %v3518_v3, 0.0 }
 0x23e   :  { %v3520_v43 = vpop.f32.mrf.mxu1  ;;  %8251 = vmatmul.mubr.bf16.gmra.mxu0 %v4585_v0 }
 0x23f   :  { %v3521_v51 = vadd.f32 %v10395_v6, %v3520_v43  ;;  %v4363_v15 = vmax.f32 %v3529_v42, 0.0 }
 0x240   :  { %v7988_v52 = vpop.f32.mrf.mxu1  ;;  %8083 = vmatmul.mubr.msk.bf16.gmra.mxu1 %vm2858_vm2, %v9791_v39 }
 0x241   :  { %v4361_v27 = vmax.f32 %v3521_v51, 0.0  ;;  %8086 = vmatprep.mubr.msk.bf16.mxu1 %vm2858_vm2, %v9808_v53  ;;  %v4587_v21 = vpack.c.bf16 %v4363_v15, %v4362_v14  ;;  %v3542_v56 = vadd.f32 %v7988_v52, %v10395_v6  ;;  %v11280_v52 = vld [vmem:[#allocation5_spill] sm:$0xff] }
 0x242   :  { %v3533_v45 = vpop.f32.mrf.mxu1 }
 0x243   :  { %v4586_v22 = vpack.c.bf16 %v4361_v27, %v4360_v59  ;;  %v3534_v24 = vadd.f32 %v10395_v6, %v3533_v45  ;;  %v4366_v35 = vmax.f32 %v3542_v56, 0.0 }
 0x244   :  { %v7989_v44 = vpop.f32.mrf.mxu1 }
 0x245   :  { %v3545_v41 = vadd.f32 %v7989_v44, %v10395_v6  ;;  %8254 = vmatprep.mubr.bf16.mxu0 %v4586_v22  ;;  %v4364_v53 = vmax.f32 %v3534_v24, 0.0 }
 0x246   :  { %v3536_v36 = vpop.f32.mrf.mxu1  ;;  %8255 = vmatmul.mubr.bf16.gmra.mxu0 %v4587_v21 }
 0x247   :  { %v3537_v39 = vadd.f32 %v10395_v6, %v3536_v36  ;;  %v4367_v61 = vmax.f32 %v3545_v41, 0.0 }
 0x248   :  { %v7992_v5 = vpop.f32.mrf.mxu1  ;;  %8087 = vmatmul.mubr.msk.bf16.gmra.mxu1 %vm2858_vm2, %v9821_v8 }
 0x249   :  { %v4365_v55 = vmax.f32 %v3537_v39, 0.0  ;;  %8090 = vmatprep.mubr.msk.bf16.mxu1 %vm2858_vm2, %v9837_v13  ;;  %v4589_v20 = vpack.c.bf16 %v4367_v61, %v4366_v35  ;;  %v3558_v38 = vadd.f32 %v7992_v5, %v10395_v6  ;;  %v11281_v39 = vld [vmem:[#allocation6_spill] sm:$0xff] }
 0x24a   :  { %v3549_v16 = vpop.f32.mrf.mxu1 }
 0x24b   :  { %v4588_v31 = vpack.c.bf16 %v4365_v55, %v4364_v53  ;;  %v3550_v63 = vadd.f32 %v10395_v6, %v3549_v16  ;;  %v4370_v60 = vmax.f32 %v3558_v38, 0.0  ;;  %v11282_v53 = vld [vmem:[#allocation7_spill] sm:$0xff] }
 0x24c   :  { %v7993_v54 = vpop.f32.mrf.mxu1 }
 0x24d   :  { %v3561_v33 = vadd.f32 %v7993_v54, %v10395_v6  ;;  %8258 = vmatprep.mubr.bf16.mxu0 %v4588_v31  ;;  %v4368_v13 = vmax.f32 %v3550_v63, 0.0 }
 0x24e   :  { %v3552_v28 = vpop.f32.mrf.mxu1  ;;  %8259 = vmatmul.mubr.bf16.gmra.mxu0 %v4589_v20 }
 0x24f   :  { %v3553_v8 = vadd.f32 %v10395_v6, %v3552_v28  ;;  %v4371_v49 = vmax.f32 %v3561_v33, 0.0 }
 0x250   :  { %v7996_v57 = vpop.f32.mrf.mxu1  ;;  %8091 = vmatmul.mubr.msk.bf16.gmra.mxu1 %vm2858_vm2, %v9847_v26 }
 0x251   :  { %v4369_v32 = vmax.f32 %v3553_v8, 0.0  ;;  %8094 = vmatprep.mubr.msk.bf16.mxu1 %vm2858_vm2, %v9863_v11  ;;  %v4591_v62 = vpack.c.bf16 %v4371_v49, %v4370_v60  ;;  %v3574_v48 = vadd.f32 %v7996_v57, %v10395_v6  ;;  %v11283_v57 = vld [vmem:[#allocation8_spill] sm:$0xff] }
 0x252   :  { %v3565_v34 = vpop.f32.mrf.mxu1 }
 0x253   :  { %v4590_v25 = vpack.c.bf16 %v4369_v32, %v4368_v13  ;;  %v3566_v30 = vadd.f32 %v10395_v6, %v3565_v34  ;;  %v4374_v37 = vmax.f32 %v3574_v48, 0.0  ;;  %v8490_v13 = vld [vmem:[%s11241_s3 + $0x70] sm:$0xff]  }
 0x254   :  { %v7997_v58 = vpop.f32.mrf.mxu1  ;;  %v11284_v34 = vld [vmem:[#allocation9_spill] sm:$0xff]  ;;  %8453 = vmatpush3.bf16.msra.mxu1 %v8490_v13 }
 0x255   :  { %v3577_v7 = vadd.f32 %v7997_v58, %v10395_v6  ;;  %8262 = vmatprep.mubr.bf16.mxu0 %v4590_v25  ;;  %v4372_v11 = vmax.f32 %v3566_v30, 0.0  ;;  %8454 = vmatprep.subr.bf16.mxu1 %v8527_v19 }
 0x256   :  { %v3568_v23 = vpop.f32.mrf.mxu1  ;;  %8263 = vmatmul.mubr.bf16.gmra.mxu0 %v4591_v62 }
 0x257   :  { %v3569_v26 = vadd.f32 %v10395_v6, %v3568_v23  ;;  %v4375_v10 = vmax.f32 %v3577_v7, 0.0 }
 0x258   :  { %v8000_v12 = vpop.f32.mrf.mxu1  ;;  %8095 = vmatmul.mubr.msk.bf16.gmra.mxu1 %vm2858_vm2, %v9873_v18 }
 0x259   :  { %v4373_v9 = vmax.f32 %v3569_v26, 0.0  ;;  %8098 = vmatprep.mubr.msk.bf16.mxu1 %vm2858_vm2, %v9889_v1  ;;  %v4593_v29 = vpack.c.bf16 %v4375_v10, %v4374_v37  ;;  %v3590_v42 = vadd.f32 %v8000_v12, %v10395_v6  ;;  %v11285_v37 = vld [vmem:[#allocation10_spill] sm:$0xff] }
 0x25a   :  { %v3581_v47 = vpop.f32.mrf.mxu1 }
 0x25b   :  { %v4592_v50 = vpack.c.bf16 %v4373_v9, %v4372_v11  ;;  %v3582_v2 = vadd.f32 %v10395_v6, %v3581_v47  ;;  %v4378_v59 = vmax.f32 %v3590_v42, 0.0 }
 0x25c   :  { %v8001_v0 = vpop.f32.mrf.mxu1 }
 0x25d   :  { %v3593_v3 = vadd.f32 %v8001_v0, %v10395_v6  ;;  %8266 = vmatprep.mubr.bf16.mxu0 %v4592_v50  ;;  %v4376_v1 = vmax.f32 %v3582_v2, 0.0 }
 0x25e   :  { %v3584_v40 = vpop.f32.mrf.mxu1  ;;  %8267 = vmatmul.mubr.bf16.gmra.mxu0 %v4593_v29  ;;  %v11286_v29 = vld [vmem:[#allocation11_spill] sm:$0xff] }
 0x25f   :  { %v3585_v18 = vadd.f32 %v10395_v6, %v3584_v40  ;;  %v4379_v43 = vmax.f32 %v3593_v3, 0.0 }
 0x260   :  { %v8004_v51 = vpop.f32.mrf.mxu1  ;;  %8099 = vmatmul.mubr.msk.bf16.gmra.mxu1 %vm2858_vm2, %v9899_v17 }
 0x261   :  { %v4377_v15 = vmax.f32 %v3585_v18, 0.0  ;;  %8102 = vmatprep.mubr.msk.bf16.mxu1 %vm2858_vm2, %v11280_v52  ;;  %v4595_v45 = vpack.c.bf16 %v4379_v43, %v4378_v59  ;;  %v3606_v24 = vadd.f32 %v8004_v51, %v10395_v6 }
 0x262   :  { %v3597_v27 = vpop.f32.mrf.mxu1 }
 0x263   :  { %v4594_v14 = vpack.c.bf16 %v4377_v15, %v4376_v1  ;;  %v3598_v21 = vadd.f32 %v10395_v6, %v3597_v27  ;;  %v4382_v55 = vmax.f32 %v3606_v24, 0.0  ;;  %v11287_v27 = vld [vmem:[#allocation12_spill] sm:$0xff] }
 0x264   :  { %v8005_v22 = vpop.f32.mrf.mxu1 }
 0x265   :  { %v3609_v44 = vadd.f32 %v8005_v22, %v10395_v6  ;;  %8270 = vmatprep.mubr.bf16.mxu0 %v4594_v14  ;;  %v4380_v61 = vmax.f32 %v3598_v21, 0.0  ;;  %v11288_v22 = vld [vmem:[#allocation13_spill] sm:$0xff] }
 0x266   :  { %v3600_v41 = vpop.f32.mrf.mxu1  ;;  %8271 = vmatmul.mubr.bf16.gmra.mxu0 %v4595_v45 }
 0x267   :  { %v3601_v17 = vadd.f32 %v10395_v6, %v3600_v41  ;;  %v4383_v56 = vmax.f32 %v3609_v44, 0.0 }
 0x268   :  { %v8008_v36 = vpop.f32.mrf.mxu1  ;;  %8103 = vmatmul.mubr.msk.bf16.gmra.mxu1 %vm2858_vm2, %v11281_v39 }
 0x269   :  { %v4381_v5 = vmax.f32 %v3601_v17, 0.0  ;;  %8106 = vmatprep.mubr.msk.bf16.mxu1 %vm2858_vm2, %v11282_v53  ;;  %v4597_v31 = vpack.c.bf16 %v4383_v56, %v4382_v55  ;;  %v3622_v33 = vadd.f32 %v8008_v36, %v10395_v6  ;;  %v10644_v56 = vld [vmem:[%s11242_s4 + $0x1] ss:$0 sm:$0xff] }
 0x26a   :  { %v3613_v35 = vpop.f32.mrf.mxu1 }
 0x26b   :  { %v4596_v16 = vpack.c.bf16 %v4381_v5, %v4380_v61  ;;  %v3614_v54 = vadd.f32 %v10395_v6, %v3613_v35  ;;  %v4386_v25 = vmax.f32 %v3622_v33, 0.0  ;;  %v11289_v35 = vld [vmem:[#allocation14_spill] sm:$0xff] }
 0x26c   :  { %v8009_v20 = vpop.f32.mrf.mxu1 }
 0x26d   :  { %v3625_v63 = vadd.f32 %v8009_v20, %v10395_v6  ;;  %8274 = vmatprep.mubr.bf16.mxu0 %v4596_v16  ;;  %v4384_v32 = vmax.f32 %v3614_v54, 0.0  ;;  %v11290_v20 = vld [vmem:[#allocation15_spill] sm:$0xff] }
 0x26e   :  { %v3616_v38 = vpop.f32.mrf.mxu1  ;;  %8275 = vmatmul.mubr.bf16.gmra.mxu0 %v4597_v31 }
 0x26f   :  { %v3617_v28 = vadd.f32 %v10395_v6, %v3616_v38  ;;  %v4387_v8 = vmax.f32 %v3625_v63, 0.0 }
 0x270   :  { %v8012_v49 = vpop.f32.mrf.mxu1  ;;  %8107 = vmatmul.mubr.msk.bf16.gmra.mxu1 %vm2858_vm2, %v11283_v57 }
 0x271   :  { %v4385_v60 = vmax.f32 %v3617_v28, 0.0  ;;  %8110 = vmatprep.mubr.msk.bf16.mxu1 %vm2858_vm2, %v11284_v34  ;;  %v4599_v30 = vpack.c.bf16 %v4387_v8, %v4386_v25  ;;  %v3638_v26 = vadd.f32 %v8012_v49, %v10395_v6 }
 0x272   :  { %v3629_v62 = vpop.f32.mrf.mxu1 }
 0x273   :  { %v4598_v58 = vpack.c.bf16 %v4385_v60, %v4384_v32  ;;  %v3630_v48 = vadd.f32 %v10395_v6, %v3629_v62  ;;  %v4390_v0 = vmax.f32 %v3638_v26, 0.0  ;;  %v11291_v62 = vld [vmem:[#allocation16_spill] sm:$0xff]  ;;  %v10665_v26 = vld [vmem:[%s11242_s4 + $0x2] ss:$0 sm:$0xff] }
 0x274   :  { %v8013_v7 = vpop.f32.mrf.mxu1 }
 0x275   :  { %v3641_v23 = vadd.f32 %v8013_v7, %v10395_v6  ;;  %8278 = vmatprep.mubr.bf16.mxu0 %v4598_v58  ;;  %v4388_v47 = vmax.f32 %v3630_v48, 0.0  ;;  %v11292_v48 = vld [vmem:[#allocation17_spill] sm:$0xff] }
 0x276   :  { %v3632_v10 = vpop.f32.mrf.mxu1  ;;  %8279 = vmatmul.mubr.bf16.gmra.mxu0 %v4599_v30 }
 0x277   :  { %v3633_v12 = vadd.f32 %v10395_v6, %v3632_v10  ;;  %v4391_v11 = vmax.f32 %v3641_v23, 0.0 }
 0x278   :  { %v8016_v9 = vpop.f32.mrf.mxu1  ;;  %8111 = vmatmul.mubr.msk.bf16.gmra.mxu1 %vm2858_vm2, %v11285_v37 }
 0x279   :  { %v4389_v50 = vmax.f32 %v3633_v12, 0.0  ;;  %8114 = vmatprep.mubr.msk.bf16.mxu1 %vm2858_vm2, %v11286_v29  ;;  %v4601_v42 = vpack.c.bf16 %v4391_v11, %v4390_v0  ;;  %v3654_v51 = vadd.f32 %v8016_v9, %v10395_v6 }
 0x27a   :  { %v3645_v2 = vpop.f32.mrf.mxu1 }
 0x27b   :  { %v4600_v3 = vpack.c.bf16 %v4389_v50, %v4388_v47  ;;  %v3646_v18 = vadd.f32 %v10395_v6, %v3645_v2  ;;  %v4394_v21 = vmax.f32 %v3654_v51, 0.0 }
 0x27c   :  { %v8017_v40 = vpop.f32.mrf.mxu1 }
 0x27d   :  { %v3657_v43 = vadd.f32 %v8017_v40, %v10395_v6  ;;  %8282 = vmatprep.mubr.bf16.mxu0 %v4600_v3  ;;  %v4392_v14 = vmax.f32 %v3646_v18, 0.0 }
 0x27e   :  { %v3648_v1 = vpop.f32.mrf.mxu1  ;;  %8283 = vmatmul.mubr.bf16.gmra.mxu0 %v4601_v42 }
 0x27f   :  { %v3649_v15 = vadd.f32 %v10395_v6, %v3648_v1  ;;  %v4395_v52 = vmax.f32 %v3657_v43, 0.0 }
 0x280   :  { %v8020_v59 = vpop.f32.mrf.mxu1  ;;  %8115 = vmatmul.mubr.msk.bf16.gmra.mxu1 %vm2858_vm2, %v11287_v27  ;;  %v11293_v27 = vld [vmem:[#allocation18_spill] sm:$0xff] }
 0x281   :  { %v4393_v45 = vmax.f32 %v3649_v15, 0.0  ;;  %8118 = vmatprep.mubr.msk.bf16.mxu1 %vm2858_vm2, %v11288_v22  ;;  %v4603_v41 = vpack.c.bf16 %v4395_v52, %v4394_v21  ;;  %v3670_v39 = vadd.f32 %v10644_v56, %v8020_v59 }
 0x282   :  { %v3661_v44 = vpop.f32.mrf.mxu1 }
 0x283   :  { %v4602_v24 = vpack.c.bf16 %v4393_v45, %v4392_v14  ;;  %v3662_v6 = vadd.f32 %v10644_v56, %v3661_v44  ;;  %v4398_v54 = vmax.f32 %v3670_v39, 0.0 }
 0x284   :  { %v8021_v17 = vpop.f32.mrf.mxu1 }
 0x285   :  { %v3673_v36 = vadd.f32 %v10644_v56, %v8021_v17  ;;  %8286 = vmatprep.mubr.bf16.mxu0 %v4602_v24  ;;  %v4396_v16 = vmax.f32 %v3662_v6, 0.0  ;;  %v11294_v24 = vld [vmem:[#allocation19_spill] sm:$0xff] }
 0x286   :  { %v3664_v61 = vpop.f32.mrf.mxu1  ;;  %8287 = vmatmul.mubr.bf16.gmra.mxu0 %v4603_v41 }
 0x287   :  { %v3665_v5 = vadd.f32 %v10644_v56, %v3664_v61  ;;  %v4399_v53 = vmax.f32 %v3673_v36, 0.0 }
 0x288   :  { %v8024_v55 = vpop.f32.mrf.mxu1  ;;  %8119 = vmatmul.mubr.msk.bf16.gmra.mxu1 %vm2858_vm2, %v11289_v35 }
 0x289   :  { %v4397_v31 = vmax.f32 %v3665_v5, 0.0  ;;  %8122 = vmatprep.mubr.msk.bf16.mxu1 %vm2858_vm2, %v11290_v20  ;;  %v4605_v38 = vpack.c.bf16 %v4399_v53, %v4398_v54  ;;  %v3686_v57 = vadd.f32 %v10644_v56, %v8024_v55 }
 0x28a   :  { %v3677_v63 = vpop.f32.mrf.mxu1 }
 0x28b   :  { %v4604_v33 = vpack.c.bf16 %v4397_v31, %v4396_v16  ;;  %v3678_v8 = vadd.f32 %v10644_v56, %v3677_v63  ;;  %v4402_v23 = vmax.f32 %v3686_v57, 0.0 }
 0x28c   :  { %v8025_v28 = vpop.f32.mrf.mxu1 }
 0x28d   :  { %v3689_v49 = vadd.f32 %v10644_v56, %v8025_v28  ;;  %8290 = vmatprep.mubr.bf16.mxu0 %v4604_v33  ;;  %v4400_v30 = vmax.f32 %v3678_v8, 0.0 }
 0x28e   :  { %v3680_v13 = vpop.f32.mrf.mxu1  ;;  %v8196_v32 = vpop.f32.mrf.mxu0  ;;  %8291 = vmatmul.mubr.bf16.gmra.mxu0 %v4605_v38 }
 0x28f   :  { %v3681_v60 = vadd.f32 %v10644_v56, %v3680_v13  ;;  %v4403_v34 = vmax.f32 %v3689_v49, 0.0  ;;  %v4779_v29 = vadd.f32 %v8196_v32, %v10665_v26 }
 0x290   :  { %v8028_v25 = vpop.f32.mrf.mxu1  ;;  %8123 = vmatmul.mubr.msk.bf16.gmra.mxu1 %vm2858_vm2, %v11291_v62  ;;  %v4770_v58 = vpop.f32.mrf.mxu0 }
 0x291   :  { %v4401_v7 = vmax.f32 %v3681_v60, 0.0  ;;  %8126 = vmatprep.mubr.msk.bf16.mxu1 %vm2858_vm2, %v11292_v48  ;;  %v4771_v11 = vadd.f32 %v10665_v26, %v4770_v58  ;;  %v4607_v37 = vpack.c.bf16 %v4403_v34, %v4402_v23  ;;  %v3702_v42 = vadd.f32 %v10644_v56, %v8028_v25  ;;  %v11295_v25 = vld [vmem:[#allocation20_spill] sm:$0xff] }
 0x292   :  { %v3693_v10 = vpop.f32.mrf.mxu1  ;;  %v8197_v12 = vpop.f32.mrf.mxu0  ;;  %v5795_v45 = vmax.f32 %v4779_v29, 0.0 }
 0x293   :  { %v4606_v9 = vpack.c.bf16 %v4401_v7, %v4400_v30  ;;  %v3694_v0 = vadd.f32 %v10644_v56, %v3693_v10  ;;  %v5793_v43 = vmax.f32 %v4771_v11, 0.0  ;;  %v4782_v51 = vadd.f32 %v8197_v12, %v10665_v26  ;;  %v11296_v7 = vld [vmem:[#allocation21_spill] sm:$0xff] }
 0x294   :  { %v8029_v47 = vpop.f32.mrf.mxu1  ;;  %v4773_v50 = vpop.f32.mrf.mxu0  ;;  %v4406_v41 = vmax.f32 %v3702_v42, 0.0 }
 0x295   :  { %v3705_v2 = vadd.f32 %v10644_v56, %v8029_v47  ;;  %v4774_v3 = vadd.f32 %v10665_v26, %v4773_v50  ;;  %8294 = vmatprep.mubr.bf16.mxu0 %v4606_v9  ;;  %v4404_v22 = vmax.f32 %v3694_v0, 0.0  ;;  %v5796_v39 = vmax.f32 %v4782_v51, 0.0 }
 0x296   :  { %v3696_v40 = vpop.f32.mrf.mxu1  ;;  %v8200_v18 = vpop.f32.mrf.mxu0  ;;  %8295 = vmatmul.mubr.bf16.gmra.mxu0 %v4607_v37 }
 0x297   :  { %v5794_v1 = vmax.f32 %v4774_v3, 0.0  ;;  %v3697_v15 = vadd.f32 %v10644_v56, %v3696_v40  ;;  %v4407_v52 = vmax.f32 %v3705_v2, 0.0  ;;  %v4795_v63 = vadd.f32 %v8200_v18, %v10665_v26 }
 0x298   :  { %v8032_v59 = vpop.f32.mrf.mxu1  ;;  %8127 = vmatmul.mubr.msk.bf16.gmra.mxu1 %vm2858_vm2, %v11293_v27  ;;  %v4786_v14 = vpop.f32.mrf.mxu0 }
 0x299   :  { %v6049_v21 = vmax.f32 %v5793_v43, %v5794_v1  ;;  %v4405_v44 = vmax.f32 %v3697_v15, 0.0  ;;  %8130 = vmatprep.mubr.msk.bf16.mxu1 %vm2858_vm2, %v11294_v24  ;;  %v4787_v17 = vadd.f32 %v10665_v26, %v4786_v14  ;;  %v4609_v53 = vpack.c.bf16 %v4407_v52, %v4406_v41 }
 0x29a   :  { %v3709_v6 = vpop.f32.mrf.mxu1  ;;  %v8201_v36 = vpop.f32.mrf.mxu0  ;;  %v3718_v33 = vadd.f32 %v10644_v56, %v8032_v59  ;;  %v5799_v48 = vmax.f32 %v4795_v63, 0.0 }
 0x29b   :  { %v6050_v61 = vmax.f32 %v6049_v21, %v5795_v45  ;;  %v4608_v5 = vpack.c.bf16 %v4405_v44, %v4404_v22  ;;  %v5797_v16 = vmax.f32 %v4787_v17, 0.0  ;;  %v3710_v20 = vadd.f32 %v10644_v56, %v3709_v6  ;;  %v11297_v44 = vld [vmem:[#allocation22_spill] sm:$0xff]  ;;  %v11298_v6 = vld [vmem:[#allocation23_spill] sm:$0xff] }
 0x29c   :  { %v8033_v55 = vpop.f32.mrf.mxu1  ;;  %v4789_v35 = vpop.f32.mrf.mxu0  ;;  %v4798_v13 = vadd.f32 %v8201_v36, %v10665_v26  ;;  %v4410_v23 = vmax.f32 %v3718_v33, 0.0 }
 0x29d   :  { %v6051_v31 = vmax.f32 %v6050_v61, %v5796_v39  ;;  %v3721_v54 = vadd.f32 %v10644_v56, %v8033_v55  ;;  %8298 = vmatprep.mubr.bf16.mxu0 %v4608_v5  ;;  %v4790_v38 = vadd.f32 %v10665_v26, %v4789_v35  ;;  %v4408_v58 = vmax.f32 %v3710_v20, 0.0 }
 0x29e   :  { %v3712_v28 = vpop.f32.mrf.mxu1  ;;  %v8204_v8 = vpop.f32.mrf.mxu0  ;;  %8299 = vmatmul.mubr.bf16.gmra.mxu0 %v4609_v53  ;;  %v5800_v47 = vmax.f32 %v4798_v13, 0.0 }
 0x29f   :  { %v6052_v49 = vmax.f32 %v6051_v31, %v5797_v16  ;;  %v3713_v57 = vadd.f32 %v10644_v56, %v3712_v28  ;;  %v4411_v32 = vmax.f32 %v3721_v54, 0.0  ;;  %v5798_v60 = vmax.f32 %v4790_v38, 0.0 }
 0x2a0   :  { %v8036_v34 = vpop.f32.mrf.mxu1  ;;  %8131 = vmatmul.mubr.msk.bf16.gmra.mxu1 %vm2858_vm2, %v11295_v25  ;;  %v4802_v62 = vpop.f32.mrf.mxu0  ;;  %v4811_v18 = vadd.f32 %v8204_v8, %v10665_v26 }
 0x2a1   :  { %v4409_v30 = vmax.f32 %v3713_v57, 0.0  ;;  %8134 = vmatprep.mubr.msk.bf16.mxu1 %vm2858_vm2, %v11296_v7  ;;  %v6053_v10 = vmax.f32 %v6052_v49, %v5798_v60  ;;  %v4803_v12 = vadd.f32 %v10665_v26, %v4802_v62  ;;  %v4611_v50 = vpack.c.bf16 %v4411_v32, %v4410_v23 }
 0x2a2   :  { %v3725_v11 = vpop.f32.mrf.mxu1  ;;  %v8205_v9 = vpop.f32.mrf.mxu0  ;;  %v3734_v43 = vadd.f32 %v10644_v56, %v8036_v34  ;;  %v5803_v36 = vmax.f32 %v4811_v18, 0.0 }
 0x2a3   :  { %v4610_v37 = vpack.c.bf16 %v4409_v30, %v4408_v58  ;;  %v6054_v29 = vmax.f32 %v6053_v10, %v5799_v48  ;;  %v3726_v3 = vadd.f32 %v10644_v56, %v3725_v11  ;;  %v5801_v51 = vmax.f32 %v4803_v12, 0.0  ;;  %v11299_v48 = vld [vmem:[#allocation24_spill] sm:$0xff] }
 0x2a4   :  { %v8037_v0 = vpop.f32.mrf.mxu1  ;;  %v4805_v2 = vpop.f32.mrf.mxu0  ;;  %v4814_v45 = vadd.f32 %v8205_v9, %v10665_v26  ;;  %v4414_v39 = vmax.f32 %v3734_v43, 0.0  ;;  %v8491_v10 = vld [vmem:[%s11241_s3 + $0x68] sm:$0xff]   ;;  %v11300_v9 = vld [vmem:[#allocation25_spill] sm:$0xff] }
 0x2a5   :  { %v3737_v42 = vadd.f32 %v10644_v56, %v8037_v0  ;;  %v4806_v40 = vadd.f32 %v10665_v26, %v4805_v2  ;;  %8302 = vmatprep.mubr.bf16.mxu0 %v4610_v37  ;;  %v6055_v1 = vmax.f32 %v6054_v29, %v5800_v47  ;;  %v4412_v41 = vmax.f32 %v3726_v3, 0.0  ;;  %8455 = vmatpush3.bf16.msra.mxu1 %v8491_v10 }
 0x2a6   :  { %v3728_v15 = vpop.f32.mrf.mxu1  ;;  %v8208_v52 = vpop.f32.mrf.mxu0  ;;  %8303 = vmatmul.mubr.bf16.gmra.mxu0 %v4611_v50  ;;  %v5804_v16 = vmax.f32 %v4814_v45, 0.0  ;;  %8456 = vmatprep.subr.bf16.mxu1 %v8527_v19 }
 0x2a7   :  { %v5802_v59 = vmax.f32 %v4806_v40, 0.0  ;;  %v3729_v27 = vadd.f32 %v10644_v56, %v3728_v15  ;;  %v6056_v14 = vmax.f32 %v6055_v1, %v5801_v51  ;;  %v4415_v22 = vmax.f32 %v3737_v42, 0.0 }
 0x2a8   :  { %v8040_v21 = vpop.f32.mrf.mxu1  ;;  %8135 = vmatmul.mubr.msk.bf16.gmra.mxu1 %vm2858_vm2, %v11297_v44  ;;  %v4818_v24 = vpop.f32.mrf.mxu0  ;;  %v4827_v8 = vadd.f32 %v8208_v52, %v10665_v26 }
 0x2a9   :  { %v4413_v17 = vmax.f32 %v3729_v27, 0.0  ;;  %8138 = vmatprep.mubr.msk.bf16.mxu1 %vm2858_vm2, %v11298_v6  ;;  %v6057_v61 = vmax.f32 %v6056_v14, %v5802_v59  ;;  %v4819_v5 = vadd.f32 %v10665_v26, %v4818_v24  ;;  %v4613_v31 = vpack.c.bf16 %v4415_v22, %v4414_v39 }
 0x2aa   :  { %v3741_v53 = vpop.f32.mrf.mxu1  ;;  %v8209_v55 = vpop.f32.mrf.mxu0  ;;  %v3750_v49 = vadd.f32 %v10644_v56, %v8040_v21  ;;  %v5807_v37 = vmax.f32 %v4827_v8, 0.0 }
 0x2ab   :  { %v4612_v35 = vpack.c.bf16 %v4413_v17, %v4412_v41  ;;  %v6058_v20 = vmax.f32 %v6057_v61, %v5803_v36  ;;  %v3742_v33 = vadd.f32 %v10644_v56, %v3741_v53  ;;  %v5805_v57 = vmax.f32 %v4819_v5, 0.0  ;;  %v11301_v36 = vld [vmem:[#allocation26_spill] sm:$0xff] }
 0x2ac   :  { %v8041_v54 = vpop.f32.mrf.mxu1  ;;  %v4821_v63 = vpop.f32.mrf.mxu0  ;;  %v4830_v58 = vadd.f32 %v8209_v55, %v10665_v26  ;;  %v4418_v47 = vmax.f32 %v3750_v49, 0.0 }
 0x2ad   :  { %v3753_v38 = vadd.f32 %v10644_v56, %v8041_v54  ;;  %v4822_v28 = vadd.f32 %v10665_v26, %v4821_v63  ;;  %8306 = vmatprep.mubr.bf16.mxu0 %v4612_v35  ;;  %v6059_v13 = vmax.f32 %v6058_v20, %v5804_v16  ;;  %v4416_v12 = vmax.f32 %v3742_v33, 0.0  ;;  %v11302_v35 = vld [vmem:[#allocation27_spill] sm:$0xff] }
 0x2ae   :  { %v3744_v32 = vpop.f32.mrf.mxu1  ;;  %v8212_v60 = vpop.f32.mrf.mxu0  ;;  %8307 = vmatmul.mubr.bf16.gmra.mxu0 %v4613_v31  ;;  %v5808_v42 = vmax.f32 %v4830_v58, 0.0 }
 0x2af   :  { %v5806_v34 = vmax.f32 %v4822_v28, 0.0  ;;  %v3745_v25 = vadd.f32 %v10644_v56, %v3744_v32  ;;  %v6060_v62 = vmax.f32 %v6059_v13, %v5805_v57  ;;  %v4419_v30 = vmax.f32 %v3753_v38, 0.0 }
 0x2b0   :  { %v8044_v7 = vpop.f32.mrf.mxu1  ;;  %8139 = vmatmul.mubr.msk.bf16.gmra.mxu1 %vm2858_vm2, %v11299_v48  ;;  %v4834_v23 = vpop.f32.mrf.mxu0  ;;  %v4843_v1 = vadd.f32 %v8212_v60, %v10665_v26 }
 0x2b1   :  { %v4417_v11 = vmax.f32 %v3745_v25, 0.0  ;;  %8142 = vmatprep.mubr.msk.bf16.mxu1 %vm2858_vm2, %v11300_v9  ;;  %v6061_v50 = vmax.f32 %v6060_v62, %v5806_v34  ;;  %v4835_v2 = vadd.f32 %v10665_v26, %v4834_v23  ;;  %v4615_v40 = vpack.c.bf16 %v4419_v30, %v4418_v47  ;;  %v11303_v9 = vld [vmem:[#allocation28_spill] sm:$0xff] }
 0x2b2   :  { %v3757_v29 = vpop.f32.mrf.mxu1  ;;  %v8213_v0 = vpop.f32.mrf.mxu0  ;;  %v3766_v14 = vadd.f32 %v10644_v56, %v8044_v7  ;;  %v5811_v61 = vmax.f32 %v4843_v1, 0.0 }
 0x2b3   :  { %v4614_v3 = vpack.c.bf16 %v4417_v11, %v4416_v12  ;;  %v6062_v18 = vmax.f32 %v6061_v50, %v5807_v37  ;;  %v3758_v15 = vadd.f32 %v10644_v56, %v3757_v29  ;;  %v5809_v21 = vmax.f32 %v4835_v2, 0.0  ;;  %v11304_v29 = vld [vmem:[#allocation29_spill] sm:$0xff] }
 0x2b4   :  { %v8045_v43 = vpop.f32.mrf.mxu1  ;;  %v4837_v51 = vpop.f32.mrf.mxu0  ;;  %v4846_v44 = vadd.f32 %v8213_v0, %v10665_v26  ;;  %v4422_v16 = vmax.f32 %v3766_v14, 0.0 }
 0x2b5   :  { %v3769_v52 = vadd.f32 %v10644_v56, %v8045_v43  ;;  %v4838_v59 = vadd.f32 %v10665_v26, %v4837_v51  ;;  %8310 = vmatprep.mubr.bf16.mxu0 %v4614_v3  ;;  %v10724_v27 = vmax.f32 %v6062_v18, %v5808_v42  ;;  %v4420_v5 = vmax.f32 %v3758_v15, 0.0 }
 0x2b6   :  { %v3760_v45 = vpop.f32.mrf.mxu1  ;;  %v8216_v22 = vpop.f32.mrf.mxu0  ;;  %8311 = vmatmul.mubr.bf16.gmra.mxu0 %v4615_v40  ;;  %v5812_v63 = vmax.f32 %v4846_v44, 0.0 }
 0x2b7   :  { %v5810_v24 = vmax.f32 %v4838_v59, 0.0  ;;  %v3761_v41 = vadd.f32 %v10644_v56, %v3760_v45  ;;  %v4423_v17 = vmax.f32 %v3769_v52, 0.0  ;;  %v4859_v34 = vadd.f32 %v8216_v22, %v10665_v26 }
 0x2b8   :  { %v8048_v6 = vpop.f32.mrf.mxu1  ;;  %8143 = vmatmul.mubr.msk.bf16.gmra.mxu1 %vm2858_vm2, %v11301_v36  ;;  %v4850_v39 = vpop.f32.mrf.mxu0  ;;  %v6064_v14 = vrot.slane %v10724_v27, 4 }
 0x2b9   :  { %v6070_v53 = vmax.f32 %v5809_v21, %v5810_v24  ;;  %v4421_v55 = vmax.f32 %v3761_v41, 0.0  ;;  %8146 = vmatprep.mubr.msk.bf16.mxu1 %vm2858_vm2, %v11302_v35  ;;  %v4851_v31 = vadd.f32 %v10665_v26, %v4850_v39  ;;  %v4617_v28 = vpack.c.bf16 %v4423_v17, %v4422_v16  ;;  %v11305_v16 = vld [vmem:[#allocation30_spill] sm:$0xff] }
 0x2ba   :  { %v3773_v20 = vpop.f32.mrf.mxu1  ;;  %v8217_v54 = vpop.f32.mrf.mxu0  ;;  %v3782_v25 = vadd.f32 %v10644_v56, %v8048_v6  ;;  %v5815_v0 = vmax.f32 %v4859_v34, 0.0 }
 0x2bb   :  { %v6071_v33 = vmax.f32 %v6070_v53, %v5811_v61  ;;  %v4616_v38 = vpack.c.bf16 %v4421_v55, %v4420_v5  ;;  %v5813_v57 = vmax.f32 %v4851_v31, 0.0  ;;  %v3774_v32 = vadd.f32 %v10644_v56, %v3773_v20 }
 0x2bc   :  { %v8049_v8 = vpop.f32.mrf.mxu1  ;;  %v4853_v49 = vpop.f32.mrf.mxu0  ;;  %v4862_v23 = vadd.f32 %v8217_v54, %v10665_v26  ;;  %v4426_v2 = vmax.f32 %v3782_v25, 0.0  ;;  %v6065_v20 = vmax.f32 %v10724_v27, %v6064_v14 }
 0x2bd   :  { %v6072_v13 = vmax.f32 %v6071_v33, %v5812_v63  ;;  %v3785_v60 = vadd.f32 %v10644_v56, %v8049_v8  ;;  %8314 = vmatprep.mubr.bf16.mxu0 %v4616_v38  ;;  %v4854_v62 = vadd.f32 %v10665_v26, %v4853_v49  ;;  %v4424_v47 = vmax.f32 %v3774_v32, 0.0  ;;  %v11306_v33 = vld [vmem:[#allocation31_spill] sm:$0xff] }
 0x2be   :  { %v3776_v58 = vpop.f32.mrf.mxu1  ;;  %v8220_v30 = vpop.f32.mrf.mxu0  ;;  %8315 = vmatmul.mubr.bf16.gmra.mxu0 %v4617_v28  ;;  %v5816_v51 = vmax.f32 %v4862_v23, 0.0 }
 0x2bf   :  { %v6073_v7 = vmax.f32 %v6072_v13, %v5813_v57  ;;  %v3777_v48 = vadd.f32 %v10644_v56, %v3776_v58  ;;  %v4427_v10 = vmax.f32 %v3785_v60, 0.0  ;;  %v5814_v12 = vmax.f32 %v4854_v62, 0.0 }
 0x2c0   :  { %v8052_v11 = vpop.f32.mrf.mxu1  ;;  %8147 = vmatmul.mubr.msk.bf16.gmra.mxu1 %vm2858_vm2, %v11303_v9  ;;  %v4866_v37 = vpop.f32.mrf.mxu0  ;;  %v4875_v44 = vadd.f32 %v8220_v30, %v10665_v26  ;;  %v6066_v30 = vrot.slane %v6065_v20, 2 }
 0x2c1   :  { %v4425_v50 = vmax.f32 %v3777_v48, 0.0  ;;  %8150 = vmatprep.mubr.msk.bf16.mxu1 %vm2858_vm2, %v11304_v29  ;;  %v6074_v3 = vmax.f32 %v6073_v7, %v5814_v12  ;;  %v4867_v42 = vadd.f32 %v10665_v26, %v4866_v37  ;;  %v4619_v1 = vpack.c.bf16 %v4427_v10, %v4426_v2 }
 0x2c2   :  { %v3789_v40 = vpop.f32.mrf.mxu1  ;;  %v8221_v18 = vpop.f32.mrf.mxu0  ;;  %v3798_v24 = vadd.f32 %v10644_v56, %v8052_v11  ;;  %v5819_v38 = vmax.f32 %v4875_v44, 0.0 }
 0x2c3   :  { %v4618_v43 = vpack.c.bf16 %v4425_v50, %v4424_v47  ;;  %v6075_v15 = vmax.f32 %v6074_v3, %v5815_v0  ;;  %v3790_v45 = vadd.f32 %v10644_v56, %v3789_v40  ;;  %v5817_v41 = vmax.f32 %v4867_v42, 0.0  ;;  %v11307_v42 = vld [vmem:[#allocation32_spill] sm:$0xff] }
 0x2c4   :  { %v8053_v52 = vpop.f32.mrf.mxu1  ;;  %v4869_v59 = vpop.f32.mrf.mxu0  ;;  %v4878_v53 = vadd.f32 %v8221_v18, %v10665_v26  ;;  %v4430_v28 = vmax.f32 %v3798_v24, 0.0 }
 0x2c5   :  { %v3801_v22 = vadd.f32 %v10644_v56, %v8053_v52  ;;  %v4870_v21 = vadd.f32 %v10665_v26, %v4869_v59  ;;  %8318 = vmatprep.mubr.bf16.mxu0 %v4618_v43  ;;  %v6076_v17 = vmax.f32 %v6075_v15, %v5816_v51  ;;  %v4428_v54 = vmax.f32 %v3790_v45, 0.0  ;;  %v11308_v51 = vld [vmem:[#allocation33_spill] sm:$0xff] }
 0x2c6   :  { %v3792_v6 = vpop.f32.mrf.mxu1  ;;  %v8224_v36 = vpop.f32.mrf.mxu0  ;;  %8319 = vmatmul.mubr.bf16.gmra.mxu0 %v4619_v1  ;;  %v5820_v60 = vmax.f32 %v4878_v53, 0.0  ;;  %v6067_v1 = vmax.f32 %v6065_v20, %v6066_v30 }
 0x2c7   :  { %v5818_v39 = vmax.f32 %v4870_v21, 0.0  ;;  %v3793_v61 = vadd.f32 %v10644_v56, %v3792_v6  ;;  %v6077_v5 = vmax.f32 %v6076_v17, %v5817_v41  ;;  %v4431_v55 = vmax.f32 %v3801_v22, 0.0 }
 0x2c8   :  { %v8056_v35 = vpop.f32.mrf.mxu1  ;;  %8151 = vmatmul.mubr.msk.bf16.gmra.mxu1 %vm2858_vm2, %v11305_v16  ;;  %v4882_v31 = vpop.f32.mrf.mxu0  ;;  %v4891_v23 = vadd.f32 %v8224_v36, %v10665_v26  ;;  %v6068_v53 = vrot.slane %v6067_v1, 1 }
 0x2c9   :  { %v4429_v63 = vmax.f32 %v3793_v61, 0.0  ;;  %8154 = vmatprep.mubr.msk.bf16.mxu1 %vm2858_vm2, %v11306_v33  ;;  %v6078_v8 = vmax.f32 %v6077_v5, %v5818_v39  ;;  %v4883_v49 = vadd.f32 %v10665_v26, %v4882_v31  ;;  %v4621_v34 = vpack.c.bf16 %v4431_v55, %v4430_v28 }
 0x2ca   :  { %v3805_v57 = vpop.f32.mrf.mxu1  ;;  %v8225_v13 = vpop.f32.mrf.mxu0  ;;  %v3814_v10 = vadd.f32 %v10644_v56, %v8056_v35  ;;  %v5823_v15 = vmax.f32 %v4891_v23, 0.0 }
 0x2cb   :  { %v4620_v32 = vpack.c.bf16 %v4429_v63, %v4428_v54  ;;  %v6079_v25 = vmax.f32 %v6078_v8, %v5819_v38  ;;  %v3806_v27 = vadd.f32 %v10644_v56, %v3805_v57  ;;  %v5821_v12 = vmax.f32 %v4883_v49, 0.0  ;;  %v11309_v49 = vld [vmem:[#allocation34_spill] sm:$0xff] }
 0x2cc   :  { %v8057_v62 = vpop.f32.mrf.mxu1  ;;  %v4885_v58 = vpop.f32.mrf.mxu0  ;;  %v4894_v0 = vadd.f32 %v8225_v13, %v10665_v26  ;;  %v4434_v52 = vmax.f32 %v3814_v10, 0.0 }
 0x2cd   :  { %v3817_v7 = vadd.f32 %v10644_v56, %v8057_v62  ;;  %v4886_v48 = vadd.f32 %v10665_v26, %v4885_v58  ;;  %8322 = vmatprep.mubr.bf16.mxu0 %v4620_v32  ;;  %v6080_v11 = vmax.f32 %v6079_v25, %v5820_v60  ;;  %v4432_v18 = vmax.f32 %v3806_v27, 0.0  ;;  %v11310_v25 = vld [vmem:[#allocation35_spill] sm:$0xff] }
 0x2ce   :  { %v3808_v9 = vpop.f32.mrf.mxu1  ;;  %v8228_v37 = vpop.f32.mrf.mxu0  ;;  %8323 = vmatmul.mubr.bf16.gmra.mxu0 %v4621_v34  ;;  %v5824_v44 = vmax.f32 %v4894_v0, 0.0 }
 0x2cf   :  { %v5822_v47 = vmax.f32 %v4886_v48, 0.0  ;;  %v3809_v50 = vadd.f32 %v10644_v56, %v3808_v9  ;;  %v6081_v29 = vmax.f32 %v6080_v11, %v5821_v12  ;;  %v4435_v2 = vmax.f32 %v3817_v7, 0.0 }
 0x2d0   :  { %v8060_v3 = vpop.f32.mrf.mxu1  ;;  %8155 = vmatmul.mubr.msk.bf16.gmra.mxu1 %vm2858_vm2, %v11307_v42  ;;  %v4898_v40 = vpop.f32.mrf.mxu0  ;;  %v4907_v36 = vadd.f32 %v8228_v37, %v10665_v26  ;;  %v6069_v48 = vmax.f32 %v6067_v1, %v6068_v53 }
 0x2d1   :  { %v4433_v43 = vmax.f32 %v3809_v50, 0.0  ;;  %8158 = vmatprep.mubr.msk.bf16.mxu1 %vm2858_vm2, %v11308_v51  ;;  %v6082_v59 = vmax.f32 %v6081_v29, %v5822_v47  ;;  %v4899_v22 = vadd.f32 %v10665_v26, %v4898_v40  ;;  %v4623_v24 = vpack.c.bf16 %v4435_v2, %v4434_v52 }
 0x2d2   :  { %v3821_v14 = vpop.f32.mrf.mxu1  ;;  %v8229_v45 = vpop.f32.mrf.mxu0  ;;  %v3830_v35 = vadd.f32 %v10644_v56, %v8060_v3  ;;  %v5827_v13 = vmax.f32 %v4907_v36, 0.0  ;;  %v6385_v1 = vpack.c.bf16 %v6069_v48, %v6069_v48 }
 0x2d3   :  { %v4622_v21 = vpack.c.bf16 %v4433_v43, %v4432_v18  ;;  %v6083_v41 = vmax.f32 %v6082_v59, %v5823_v15  ;;  %v3822_v39 = vadd.f32 %v10644_v56, %v3821_v14  ;;  %v5825_v20 = vmax.f32 %v4899_v22, 0.0 }
 0x2d4   :  { %v8061_v17 = vpop.f32.mrf.mxu1  ;;  %v4901_v6 = vpop.f32.mrf.mxu0  ;;  %v4910_v54 = vadd.f32 %v8229_v45, %v10665_v26  ;;  %v4438_v58 = vmax.f32 %v3830_v35, 0.0  ;;  %v6421_v35 = vunpack.c.l.b16 %v6385_v1 }
 0x2d5   :  { %v3833_v61 = vadd.f32 %v10644_v56, %v8061_v17  ;;  %v4902_v5 = vadd.f32 %v10665_v26, %v4901_v6  ;;  %8326 = vmatprep.mubr.bf16.mxu0 %v4622_v21  ;;  %v6084_v55 = vmax.f32 %v6083_v41, %v5824_v44  ;;  %v4436_v32 = vmax.f32 %v3822_v39, 0.0  ;;  %v11311_v44 = vld [vmem:[#allocation36_spill] sm:$0xff] }
 0x2d6   :  { %v3824_v16 = vpop.f32.mrf.mxu1  ;;  %v8232_v31 = vpop.f32.mrf.mxu0  ;;  %8327 = vmatmul.mubr.bf16.gmra.mxu0 %v4623_v24  ;;  %v5828_v23 = vmax.f32 %v4910_v54, 0.0 }
 0x2d7   :  { %v5826_v63 = vmax.f32 %v4902_v5, 0.0  ;;  %v3825_v33 = vadd.f32 %v10644_v56, %v3824_v16  ;;  %v6085_v38 = vrot.slane %v6084_v55, 4  ;;  %v4439_v28 = vmax.f32 %v3833_v61, 0.0 }
 0x2d8   :  { %v8064_v8 = vpop.f32.mrf.mxu1  ;;  %8159 = vmatmul.mubr.msk.bf16.gmra.mxu1 %vm2858_vm2, %v11309_v49  ;;  %v4914_v57 = vpop.f32.mrf.mxu0  ;;  %v4923_v37 = vadd.f32 %v8232_v31, %v10665_v26 }
 0x2d9   :  { %v6091_v60 = vmax.f32 %v5825_v20, %v5826_v63  ;;  %v4437_v34 = vmax.f32 %v3825_v33, 0.0  ;;  %8162 = vmatprep.mubr.msk.bf16.mxu1 %vm2858_vm2, %v11310_v25  ;;  %v6086_v62 = vmax.f32 %v6084_v55, %v6085_v38  ;;  %v4915_v30 = vadd.f32 %v10665_v26, %v4914_v57 }
 0x2da   :  { %v3837_v27 = vpop.f32.mrf.mxu1  ;;  %v8233_v7 = vpop.f32.mrf.mxu0  ;;  %v4625_v9 = vpack.c.bf16 %v4439_v28, %v4438_v58  ;;  %v3846_v40 = vadd.f32 %v10644_v56, %v8064_v8  ;;  %v5831_v41 = vmax.f32 %v4923_v37, 0.0 }
 0x2db   :  { %v6092_v10 = vmax.f32 %v6091_v60, %v5827_v13  ;;  %v4624_v12 = vpack.c.bf16 %v4437_v34, %v4436_v32  ;;  %v6087_v11 = vrot.slane %v6086_v62, 2  ;;  %v5829_v29 = vmax.f32 %v4915_v30, 0.0 }
 0x2dc   :  { %v8065_v47 = vpop.f32.mrf.mxu1  ;;  %v4917_v50 = vpop.f32.mrf.mxu0  ;;  %v3838_v2 = vadd.f32 %v10644_v56, %v3837_v27  ;;  %v4926_v14 = vadd.f32 %v8233_v7, %v10665_v26  ;;  %v4442_v39 = vmax.f32 %v3846_v40, 0.0 }
 0x2dd   :  { %v6093_v0 = vmax.f32 %v6092_v10, %v5828_v23  ;;  %v3849_v3 = vadd.f32 %v10644_v56, %v8065_v47  ;;  %8330 = vmatprep.mubr.bf16.mxu0 %v4624_v12  ;;  %v6088_v42 = vmax.f32 %v6086_v62, %v6087_v11  ;;  %v4918_v18 = vadd.f32 %v10665_v26, %v4917_v50 }
 0x2de   :  { %v3840_v43 = vpop.f32.mrf.mxu1  ;;  %v8236_v51 = vpop.f32.mrf.mxu0  ;;  %8331 = vmatmul.mubr.bf16.gmra.mxu0 %v4625_v9  ;;  %v4440_v17 = vmax.f32 %v3838_v2, 0.0  ;;  %v5832_v20 = vmax.f32 %v4926_v14, 0.0  ;;  %v11312_v9 = vld [vmem:[#allocation37_spill] sm:$0xff] }
 0x2df   :  { %v6094_v15 = vmax.f32 %v6093_v0, %v5829_v29  ;;  %v3841_v52 = vadd.f32 %v10644_v56, %v3840_v43  ;;  %v6089_v59 = vrot.slane %v6088_v42, 1  ;;  %v4443_v45 = vmax.f32 %v3849_v3, 0.0 }
 0x2e0   :  { %v5830_v22 = vmax.f32 %v4918_v18, 0.0  ;;  %v8068_v21 = vpop.f32.mrf.mxu1  ;;  %8163 = vmatmul.mubr.msk.bf16.gmra.mxu1 %vm2858_vm2, %v11311_v44  ;;  %v4930_v24 = vpop.f32.mrf.mxu0  ;;  %v4939_v28 = vadd.f32 %v8236_v51, %v10665_v26 }
 0x2e1   :  { %v4441_v6 = vmax.f32 %v3841_v52, 0.0  ;;  %8166 = vmatprep.mubr.msk.bf16.mxu1 %vm2858_vm2, %v10339_v4  ;;  %v6090_v36 = vmax.f32 %v6088_v42, %v6089_v59  ;;  %v4931_v5 = vadd.f32 %v10665_v26, %v4930_v24  ;;  %v4627_v54 = vpack.c.bf16 %v4443_v45, %v4442_v39  ;;  %v11313_v39 = vld [vmem:[#allocation38_spill] sm:$0xff] }
 0x2e2   :  { %v6095_v61 = vmax.f32 %v6094_v15, %v5830_v22  ;;  %v3853_v53 = vpop.f32.mrf.mxu1  ;;  %v8237_v55 = vpop.f32.mrf.mxu0  ;;  %v3862_v13 = vadd.f32 %v10644_v56, %v8068_v21  ;;  %v5835_v37 = vmax.f32 %v4939_v28, 0.0 }
 0x2e3   :  { %v4626_v16 = vpack.c.bf16 %v4441_v6, %v4440_v17  ;;  %v6386_v31 = vpack.c.bf16 %v6090_v36, %v6090_v36  ;;  %v3854_v4 = vadd.f32 %v10644_v56, %v3853_v53  ;;  %v5833_v32 = vmax.f32 %v4931_v5, 0.0  ;;  %v8492_v5 = vld [vmem:[%s11241_s3 + $0x60] sm:$0xff]  }
 0x2e4   :  { %v6096_v63 = vmax.f32 %v6095_v61, %v5831_v41  ;;  %v8069_v33 = vpop.f32.mrf.mxu1  ;;  %v4933_v38 = vpop.f32.mrf.mxu0  ;;  %v4942_v7 = vadd.f32 %v8237_v55, %v10665_v26  ;;  %v4446_v47 = vmax.f32 %v3862_v13, 0.0  ;;  %8457 = vmatpush3.bf16.msra.mxu1 %v8492_v5 }
 0x2e5   :  { %v3865_v8 = vadd.f32 %v10644_v56, %v8069_v33  ;;  %v4934_v49 = vadd.f32 %v10665_v26, %v4933_v38  ;;  %8334 = vmatprep.mubr.bf16.mxu0 %v4626_v16  ;;  %v6422_v57 = vunpack.c.l.b16 %v6386_v31  ;;  %v4444_v12 = vmax.f32 %v3854_v4, 0.0  ;;  %8458 = vmatprep.subr.bf16.mxu1 %v8527_v19 }
 0x2e6   :  { %v6097_v60 = vmax.f32 %v6096_v63, %v5832_v20  ;;  %v3856_v34 = vpop.f32.mrf.mxu1  ;;  %v8240_v25 = vpop.f32.mrf.mxu0  ;;  %8335 = vmatmul.mubr.bf16.gmra.mxu0 %v4627_v54  ;;  %v5836_v42 = vmax.f32 %v4942_v7, 0.0 }
 0x2e7   :  { %v5834_v62 = vmax.f32 %v4934_v49, 0.0  ;;  %v3857_v58 = vadd.f32 %v10644_v56, %v3856_v34  ;;  %v10803_v30 = vsel %vm6437_vm3, %v6422_v57, %v6421_v35  ;;  %v4447_v48 = vmax.f32 %v3865_v8, 0.0  ;;  %v11314_v35 = vld [vmem:[#allocation39_spill] sm:$0xff] }
 0x2e8   :  { %v6098_v27 = vmax.f32 %v6097_v60, %v5833_v32  ;;  %v8072_v23 = vpop.f32.mrf.mxu1  ;;  %8167 = vmatmul.mubr.msk.bf16.gmra.mxu1 %vm2858_vm2, %v10347_v46  ;;  %v4946_v10 = vpop.f32.mrf.mxu0  ;;  %v4955_v52 = vadd.f32 %v8240_v25, %v10665_v26 }
 0x2e9   :  { %v4445_v11 = vmax.f32 %v3857_v58, 0.0  ;;  %8170 = vmatprep.mubr.msk.bf16.mxu1 %vm2858_vm2, %v11312_v9  ;;  %v4947_v29 = vadd.f32 %v10665_v26, %v4946_v10  ;;  %v4629_v40 = vpack.c.bf16 %v4447_v48, %v4446_v47  ;;  %v3878_v59 = vadd.f32 %v10644_v56, %v8072_v23 }
 0x2ea   :  { %v6099_v50 = vmax.f32 %v6098_v27, %v5834_v62  ;;  %v3869_v0 = vpop.f32.mrf.mxu1  ;;  %v8241_v2 = vpop.f32.mrf.mxu0  ;;  %v5839_v16 = vmax.f32 %v4955_v52, 0.0 }
 0x2eb   :  { %v4628_v3 = vpack.c.bf16 %v4445_v11, %v4444_v12  ;;  %v3870_v46 = vadd.f32 %v10644_v56, %v3869_v0  ;;  %v5837_v14 = vmax.f32 %v4947_v29, 0.0  ;;  %v4958_v17 = vadd.f32 %v8241_v2, %v10665_v26 }
 0x2ec   :  { %v6100_v18 = vmax.f32 %v6099_v50, %v5835_v37  ;;  %v8073_v43 = vpop.f32.mrf.mxu1  ;;  %v4949_v51 = vpop.f32.mrf.mxu0  ;;  %v4450_v31 = vmax.f32 %v3878_v59, 0.0  ;;  %v11315_v37 = vld [vmem:[#allocation40_spill] sm:$0xff] }
 0x2ed   :  { %v3881_v1 = vadd.f32 %v10644_v56, %v8073_v43  ;;  %v4950_v15 = vadd.f32 %v10665_v26, %v4949_v51  ;;  %8338 = vmatprep.mubr.bf16.mxu0 %v4628_v3  ;;  %v4448_v53 = vmax.f32 %v3870_v46, 0.0  ;;  %v5840_v28 = vmax.f32 %v4958_v17, 0.0  ;;  %v10843_v17 = vld [vmem:[%s11242_s4 + $0x1] ss:$0 sm:$0xff] }
 0x2ee   :  { %v6101_v45 = vmax.f32 %v6100_v18, %v5836_v42  ;;  %v3872_v22 = vpop.f32.mrf.mxu1  ;;  %v8244_v21 = vpop.f32.mrf.mxu0  ;;  %8339 = vmatmul.mubr.bf16.gmra.mxu0 %v4629_v40 }
 0x2ef   :  { %v5838_v44 = vmax.f32 %v4950_v15, 0.0  ;;  %v3873_v24 = vadd.f32 %v10644_v56, %v3872_v22  ;;  %v4451_v6 = vmax.f32 %v3881_v1, 0.0  ;;  %v4971_v13 = vadd.f32 %v8244_v21, %v10665_v26 }
 0x2f0   :  { %v6102_v41 = vmax.f32 %v6101_v45, %v5837_v14  ;;  %v8076_v36 = vpop.f32.mrf.mxu1  ;;  %8171 = vmatmul.mubr.msk.bf16.gmra.mxu1 %vm2858_vm2, %v11313_v39  ;;  %v4962_v61 = vpop.f32.mrf.mxu0 }
 0x2f1   :  { %v4449_v55 = vmax.f32 %v3873_v24, 0.0  ;;  %8174 = vmatprep.mubr.msk.bf16.mxu1 %vm2858_vm2, %v11314_v35  ;;  %v4963_v38 = vadd.f32 %v10665_v26, %v4962_v61  ;;  %v4631_v4 = vpack.c.bf16 %v4451_v6, %v4450_v31  ;;  %v3894_v62 = vadd.f32 %v10644_v56, %v8076_v36 }
 0x2f2   :  { %v6103_v20 = vmax.f32 %v6102_v41, %v5838_v44  ;;  %v3885_v54 = vpop.f32.mrf.mxu1  ;;  %v8245_v63 = vpop.f32.mrf.mxu0  ;;  %v5843_v50 = vmax.f32 %v4971_v13, 0.0 }
 0x2f3   :  { %v4630_v33 = vpack.c.bf16 %v4449_v55, %v4448_v53  ;;  %v3886_v32 = vadd.f32 %v10644_v56, %v3885_v54  ;;  %v5841_v7 = vmax.f32 %v4963_v38, 0.0  ;;  %v4974_v48 = vadd.f32 %v8245_v63, %v10665_v26 }
 0x2f4   :  { %v6104_v8 = vmax.f32 %v6103_v20, %v5839_v16  ;;  %v8077_v49 = vpop.f32.mrf.mxu1  ;;  %v4965_v57 = vpop.f32.mrf.mxu0  ;;  %v4454_v42 = vmax.f32 %v3894_v62, 0.0 }
 0x2f5   :  { %v3897_v60 = vadd.f32 %v10644_v56, %v8077_v49  ;;  %v4966_v34 = vadd.f32 %v10665_v26, %v4965_v57  ;;  %8342 = vmatprep.mubr.bf16.mxu0 %v4630_v33  ;;  %v4452_v29 = vmax.f32 %v3886_v32, 0.0  ;;  %v5844_v51 = vmax.f32 %v4974_v48, 0.0 }
 0x2f6   :  { %v6105_v25 = vmax.f32 %v6104_v8, %v5840_v28  ;;  %v3888_v58 = vpop.f32.mrf.mxu1  ;;  %v8248_v27 = vpop.f32.mrf.mxu0  ;;  %8343 = vmatmul.mubr.bf16.gmra.mxu0 %v4631_v4 }
 0x2f7   :  { %v5842_v23 = vmax.f32 %v4966_v34, 0.0  ;;  %v3889_v10 = vadd.f32 %v10644_v56, %v3888_v58  ;;  %v4455_v11 = vmax.f32 %v3897_v60, 0.0  ;;  %v4987_v59 = vadd.f32 %v8248_v27, %v10665_v26 }
 0x2f8   :  { %v6106_v12 = vrot.slane %v6105_v25, 4  ;;  %v8080_v9 = vpop.f32.mrf.mxu1  ;;  %8175 = vmatmul.mubr.msk.bf16.gmra.mxu1 %vm2858_vm2, %v11315_v37  ;;  %v4978_v47 = vpop.f32.mrf.mxu0 }
 0x2f9   :  { %v6112_v0 = vmax.f32 %v5841_v7, %v5842_v23  ;;  %v4453_v2 = vmax.f32 %v3889_v10, 0.0  ;;  %v4979_v40 = vadd.f32 %v10665_v26, %v4978_v47  ;;  %v4633_v52 = vpack.c.bf16 %v4455_v11, %v4454_v42  ;;  %8466 = vmatprep.mubr.msk.bf16.mxu1 %vm8528_vm10, %v8527_v19 }
 0x2fa   :  { %v6107_v3 = vmax.f32 %v6105_v25, %v6106_v12  ;;  %v3901_v18 = vpop.f32.mrf.mxu1  ;;  %v8249_v43 = vpop.f32.mrf.mxu0  ;;  %v3910_v6 = vadd.f32 %v10843_v17, %v8080_v9  ;;  %v5847_v54 = vmax.f32 %v4987_v59, 0.0 }
 0x2fb   :  { %v6113_v46 = vmax.f32 %v6112_v0, %v5843_v50  ;;  %v4632_v1 = vpack.c.bf16 %v4453_v2, %v4452_v29  ;;  %v5845_v22 = vmax.f32 %v4979_v40, 0.0  ;;  %v3902_v44 = vadd.f32 %v10644_v56, %v3901_v18 }
 0x2fc   :  { %v6108_v15 = vrot.slane %v6107_v3, 2  ;;  %v8081_v14 = vpop.f32.mrf.mxu1  ;;  %v4981_v45 = vpop.f32.mrf.mxu0  ;;  %v4458_v28 = vmax.f32 %v3910_v6, 0.0 }
 0x2fd   :  { %v6114_v21 = vmax.f32 %v6113_v46, %v5844_v51  ;;  %v3913_v24 = vadd.f32 %v10644_v56, %v8081_v14  ;;  %8346 = vmatprep.mubr.bf16.mxu0 %v4632_v1  ;;  %v4982_v36 = vadd.f32 %v10665_v26, %v4981_v45  ;;  %v4990_v56 = vadd.f32 %v8249_v43, %v10665_v26 }
 0x2fe   :  { %v6109_v41 = vmax.f32 %v6107_v3, %v6108_v15  ;;  %v3904_v39 = vpop.f32.mrf.mxu1  ;;  %v8252_v61 = vpop.f32.mrf.mxu0  ;;  %8347 = vmatmul.mubr.bf16.gmra.mxu0 %v4633_v52  ;;  %v4456_v63 = vmax.f32 %v3902_v44, 0.0 }
 0x2ff   :  { %v6115_v5 = vmax.f32 %v6114_v21, %v5845_v22  ;;  %v3905_v53 = vadd.f32 %v10843_v17, %v3904_v39  ;;  %v4459_v35 = vmax.f32 %v3913_v24, 0.0  ;;  %v5846_v16 = vmax.f32 %v4982_v36, 0.0 }
 0x300   :  { %v6110_v55 = vrot.slane %v6109_v41, 1  ;;  %v8084_v31 = vpop.f32.mrf.mxu1  ;;  %v4994_v20 = vpop.f32.mrf.mxu0  ;;  %v5848_v60 = vmax.f32 %v4990_v56, 0.0  ;;  %v5003_v27 = vadd.f32 %v8252_v61, %v10665_v26 }
 0x301   :  { %v4457_v33 = vmax.f32 %v3905_v53, 0.0  ;;  %v6116_v4 = vmax.f32 %v6115_v5, %v5846_v16  ;;  %v4995_v8 = vadd.f32 %v10665_v26, %v4994_v20  ;;  %v4635_v34 = vpack.c.bf16 %v4459_v35, %v4458_v28 }
 0x302   :  { %v6111_v38 = vmax.f32 %v6109_v41, %v6110_v55  ;;  %v3917_v49 = vpop.f32.mrf.mxu1  ;;  %v8253_v57 = vpop.f32.mrf.mxu0  ;;  %v3926_v12 = vadd.f32 %v10843_v17, %v8084_v31  ;;  %v5851_v46 = vmax.f32 %v5003_v27, 0.0 }
 0x303   :  { %v4634_v13 = vpack.c.bf16 %v4457_v33, %v4456_v63  ;;  %v6117_v25 = vmax.f32 %v6116_v4, %v5847_v54  ;;  %v3918_v7 = vadd.f32 %v10843_v17, %v3917_v49  ;;  %v5849_v11 = vmax.f32 %v4995_v8, 0.0 }
 0x304   :  { %v6387_v32 = vpack.c.bf16 %v6111_v38, %v6111_v38  ;;  %v8085_v62 = vpop.f32.mrf.mxu1  ;;  %v4997_v58 = vpop.f32.mrf.mxu0  ;;  %v4462_v1 = vmax.f32 %v3926_v12, 0.0 }
 0x305   :  { %v3929_v48 = vadd.f32 %v10843_v17, %v8085_v62  ;;  %v4998_v23 = vadd.f32 %v10665_v26, %v4997_v58  ;;  %8350 = vmatprep.mubr.bf16.mxu0 %v4634_v13  ;;  %v6118_v9 = vmax.f32 %v6117_v25, %v5848_v60  ;;  %v10863_v26 = vld [vmem:[%s11242_s4 + $0x2] ss:$0 sm:$0xff]  ;;  %v4460_v43 = vmax.f32 %v3918_v7, 0.0 }
 0x306   :  { %v6423_v10 = vunpack.c.l.b16 %v6387_v32  ;;  %v3920_v37 = vpop.f32.mrf.mxu1  ;;  %v8256_v47 = vpop.f32.mrf.mxu0  ;;  %8351 = vmatmul.mubr.bf16.gmra.mxu0 %v4635_v34  ;;  %v5006_v3 = vadd.f32 %v10863_v26, %v8253_v57 }
 0x307   :  { %v5850_v50 = vmax.f32 %v4998_v23, 0.0  ;;  %v3921_v29 = vadd.f32 %v10843_v17, %v3920_v37  ;;  %v6119_v2 = vmax.f32 %v6118_v9, %v5849_v11  ;;  %v4463_v42 = vmax.f32 %v3929_v48, 0.0 }
 0x308   :  { %v10858_v0 = vsel %vm6439_vm4, %v6423_v10, %v10803_v30  ;;  %v8088_v40 = vpop.f32.mrf.mxu1  ;;  %v5010_v18 = vpop.f32.mrf.mxu0  ;;  %v5852_v45 = vmax.f32 %v5006_v3, 0.0  ;;  %v5019_v39 = vadd.f32 %v10863_v26, %v8256_v47 }
 0x309   :  { %v4461_v51 = vmax.f32 %v3921_v29, 0.0  ;;  %v6120_v15 = vmax.f32 %v6119_v2, %v5850_v50  ;;  %v5011_v52 = vadd.f32 %v10863_v26, %v5010_v18  ;;  %v4637_v22 = vpack.c.bf16 %v4463_v42, %v4462_v1 }
 0x30a   :  { %v3933_v30 = vpop.f32.mrf.mxu1  ;;  %v8257_v59 = vpop.f32.mrf.mxu0  ;;  %v3942_v61 = vadd.f32 %v10843_v17, %v8088_v40  ;;  %v5855_v4 = vmax.f32 %v5019_v39, 0.0 }
 0x30b   :  { %v4636_v14 = vpack.c.bf16 %v4461_v51, %v4460_v43  ;;  %v6121_v21 = vmax.f32 %v6120_v15, %v5851_v46  ;;  %v3934_v41 = vadd.f32 %v10843_v17, %v3933_v30  ;;  %v5853_v5 = vmax.f32 %v5011_v52, 0.0 }
 0x30c   :  { %v8089_v44 = vpop.f32.mrf.mxu1  ;;  %v5013_v24 = vpop.f32.mrf.mxu0  ;;  %v5022_v20 = vadd.f32 %v10863_v26, %v8257_v59  ;;  %v4466_v8 = vmax.f32 %v3942_v61, 0.0 }
 0x30d   :  { %v3945_v6 = vadd.f32 %v10843_v17, %v8089_v44  ;;  %v5014_v36 = vadd.f32 %v10863_v26, %v5013_v24  ;;  %8354 = vmatprep.mubr.bf16.mxu0 %v4636_v14  ;;  %v6122_v53 = vmax.f32 %v6121_v21, %v5852_v45  ;;  %v4464_v38 = vmax.f32 %v3934_v41, 0.0 }
 0x30e   :  { %v3936_v55 = vpop.f32.mrf.mxu1  ;;  %v8260_v56 = vpop.f32.mrf.mxu0  ;;  %8355 = vmatmul.mubr.bf16.gmra.mxu0 %v4637_v22  ;;  %v5856_v34 = vmax.f32 %v5022_v20, 0.0 }
 0x30f   :  { %v5854_v35 = vmax.f32 %v5014_v36, 0.0  ;;  %v3937_v16 = vadd.f32 %v10843_v17, %v3936_v55  ;;  %v6123_v31 = vmax.f32 %v6122_v53, %v5853_v5  ;;  %v4467_v54 = vmax.f32 %v3945_v6, 0.0 }
 0x310   :  { %v8092_v63 = vpop.f32.mrf.mxu1  ;;  %v5026_v33 = vpop.f32.mrf.mxu0  ;;  %v5035_v7 = vadd.f32 %v10863_v26, %v8260_v56 }
 0x311   :  { %v4465_v28 = vmax.f32 %v3937_v16, 0.0  ;;  %v6124_v49 = vmax.f32 %v6123_v31, %v5854_v35  ;;  %v5027_v60 = vadd.f32 %v10863_v26, %v5026_v33  ;;  %v4639_v25 = vpack.c.bf16 %v4467_v54, %v4466_v8 }
 0x312   :  { %v3949_v57 = vpop.f32.mrf.mxu1  ;;  %v8261_v13 = vpop.f32.mrf.mxu0  ;;  %v3958_v11 = vadd.f32 %v10843_v17, %v8092_v63  ;;  %v5859_v43 = vmax.f32 %v5035_v7, 0.0 }
 0x313   :  { %v4638_v32 = vpack.c.bf16 %v4465_v28, %v4464_v38  ;;  %v6125_v62 = vmax.f32 %v6124_v49, %v5855_v4  ;;  %v3950_v48 = vadd.f32 %v10843_v17, %v3949_v57  ;;  %v5857_v47 = vmax.f32 %v5027_v60, 0.0 }
 0x314   :  { %v8093_v58 = vpop.f32.mrf.mxu1  ;;  %v5029_v27 = vpop.f32.mrf.mxu0  ;;  %v5038_v50 = vadd.f32 %v10863_v26, %v8261_v13  ;;  %v4470_v52 = vmax.f32 %v3958_v11, 0.0 }
 0x315   :  { %v3961_v23 = vadd.f32 %v10843_v17, %v8093_v58  ;;  %v5030_v10 = vadd.f32 %v10863_v26, %v5029_v27  ;;  %8358 = vmatprep.mubr.bf16.mxu0 %v4638_v32  ;;  %v6126_v12 = vmax.f32 %v6125_v62, %v5856_v34  ;;  %v4468_v51 = vmax.f32 %v3950_v48, 0.0 }
 0x316   :  { %v3952_v9 = vpop.f32.mrf.mxu1  ;;  %v8264_v37 = vpop.f32.mrf.mxu0  ;;  %8359 = vmatmul.mubr.bf16.gmra.mxu0 %v4639_v25  ;;  %v5860_v45 = vmax.f32 %v5038_v50, 0.0 }
 0x317   :  { %v5858_v29 = vmax.f32 %v5030_v10, 0.0  ;;  %v3953_v2 = vadd.f32 %v10843_v17, %v3952_v9  ;;  %v6127_v3 = vrot.slane %v6126_v12, 4  ;;  %v4471_v42 = vmax.f32 %v3961_v23, 0.0 }
 0x318   :  { %v8096_v40 = vpop.f32.mrf.mxu1  ;;  %v5042_v18 = vpop.f32.mrf.mxu0  ;;  %v5051_v41 = vadd.f32 %v10863_v26, %v8264_v37 }
 0x319   :  { %v6133_v46 = vmax.f32 %v5857_v47, %v5858_v29  ;;  %v4469_v1 = vmax.f32 %v3953_v2, 0.0  ;;  %v6128_v15 = vmax.f32 %v6126_v12, %v6127_v3  ;;  %v5043_v30 = vadd.f32 %v10863_v26, %v5042_v18 }
 0x31a   :  { %v3965_v59 = vpop.f32.mrf.mxu1  ;;  %v8265_v14 = vpop.f32.mrf.mxu0  ;;  %v4641_v24 = vpack.c.bf16 %v4471_v42, %v4470_v52  ;;  %v3974_v56 = vadd.f32 %v10843_v17, %v8096_v40  ;;  %v5863_v49 = vmax.f32 %v5051_v41, 0.0 }
 0x31b   :  { %v6134_v22 = vmax.f32 %v6133_v46, %v5859_v43  ;;  %v4640_v21 = vpack.c.bf16 %v4469_v1, %v4468_v51  ;;  %v6129_v44 = vrot.slane %v6128_v15, 2  ;;  %v5861_v39 = vmax.f32 %v5043_v30, 0.0 }
 0x31c   :  { %v8097_v6 = vpop.f32.mrf.mxu1  ;;  %v5045_v36 = vpop.f32.mrf.mxu0  ;;  %v3966_v5 = vadd.f32 %v10843_v17, %v3965_v59  ;;  %v5054_v33 = vadd.f32 %v10863_v26, %v8265_v14  ;;  %v4474_v60 = vmax.f32 %v3974_v56, 0.0 }
 0x31d   :  { %v6135_v61 = vmax.f32 %v6134_v22, %v5860_v45  ;;  %v3977_v53 = vadd.f32 %v10843_v17, %v8097_v6  ;;  %8362 = vmatprep.mubr.bf16.mxu0 %v4640_v21  ;;  %v6130_v55 = vmax.f32 %v6128_v15, %v6129_v44  ;;  %v5046_v35 = vadd.f32 %v10863_v26, %v5045_v36 }
 0x31e   :  { %v3968_v16 = vpop.f32.mrf.mxu1  ;;  %v8268_v31 = vpop.f32.mrf.mxu0  ;;  %8363 = vmatmul.mubr.bf16.gmra.mxu0 %v4641_v24  ;;  %v4472_v57 = vmax.f32 %v3966_v5, 0.0  ;;  %v5864_v48 = vmax.f32 %v5054_v33, 0.0 }
 0x31f   :  { %v6136_v20 = vmax.f32 %v6135_v61, %v5861_v39  ;;  %v3969_v54 = vadd.f32 %v10843_v17, %v3968_v16  ;;  %v6131_v63 = vrot.slane %v6130_v55, 1  ;;  %v4475_v38 = vmax.f32 %v3977_v53, 0.0 }
 0x320   :  { %v5862_v28 = vmax.f32 %v5046_v35, 0.0  ;;  %v8100_v4 = vpop.f32.mrf.mxu1  ;;  %v5058_v8 = vpop.f32.mrf.mxu0  ;;  %v5067_v9 = vadd.f32 %v10863_v26, %v8268_v31 }
 0x321   :  { %v4473_v13 = vmax.f32 %v3969_v54, 0.0  ;;  %v6132_v32 = vmax.f32 %v6130_v55, %v6131_v63  ;;  %v5059_v25 = vadd.f32 %v10863_v26, %v5058_v8  ;;  %v4643_v23 = vpack.c.bf16 %v4475_v38, %v4474_v60 }
 0x322   :  { %v6137_v34 = vmax.f32 %v6136_v20, %v5862_v28  ;;  %v3981_v62 = vpop.f32.mrf.mxu1  ;;  %v8269_v58 = vpop.f32.mrf.mxu0  ;;  %v3990_v2 = vadd.f32 %v10843_v17, %v8100_v4  ;;  %v5867_v22 = vmax.f32 %v5067_v9, 0.0 }
 0x323   :  { %v4642_v27 = vpack.c.bf16 %v4473_v13, %v4472_v57  ;;  %v6388_v7 = vpack.c.bf16 %v6132_v32, %v6132_v32  ;;  %v3982_v37 = vadd.f32 %v10843_v17, %v3981_v62  ;;  %v5865_v3 = vmax.f32 %v5059_v25, 0.0  ;;  %v8493_v32 = vld [vmem:[%s11241_s3 + $0x58] sm:$0xff]  }
 0x324   :  { %v6138_v10 = vmax.f32 %v6137_v34, %v5863_v49  ;;  %v8101_v12 = vpop.f32.mrf.mxu1  ;;  %v5061_v11 = vpop.f32.mrf.mxu0  ;;  %v5070_v15 = vadd.f32 %v10863_v26, %v8269_v58  ;;  %v4478_v21 = vmax.f32 %v3990_v2, 0.0  ;;  %8459 = vmatpush3.bf16.msra.mxu1 %v8493_v32 }
 0x325   :  { %v3993_v47 = vadd.f32 %v10843_v17, %v8101_v12  ;;  %v5062_v50 = vadd.f32 %v10863_v26, %v5061_v11  ;;  %8366 = vmatprep.mubr.bf16.mxu0 %v4642_v27  ;;  %v6424_v29 = vunpack.c.l.b16 %v6388_v7  ;;  %v4476_v14 = vmax.f32 %v3982_v37, 0.0  ;;  %8460 = vmatprep.subr.bf16.mxu1 %v8527_v19 }
 0x326   :  { %v6139_v42 = vmax.f32 %v6138_v10, %v5864_v48  ;;  %v3984_v40 = vpop.f32.mrf.mxu1  ;;  %v8272_v18 = vpop.f32.mrf.mxu0  ;;  %8367 = vmatmul.mubr.bf16.gmra.mxu0 %v4643_v23  ;;  %v5868_v39 = vmax.f32 %v5070_v15, 0.0 }
 0x327   :  { %v5866_v43 = vmax.f32 %v5062_v50, 0.0  ;;  %v3985_v51 = vadd.f32 %v10843_v17, %v3984_v40  ;;  %v10899_v46 = vsel %vm6441_vm5, %v6424_v29, %v10858_v0  ;;  %v4479_v52 = vmax.f32 %v3993_v47, 0.0 }
 0x328   :  { %v6140_v1 = vmax.f32 %v6139_v42, %v5865_v3  ;;  %v8104_v30 = vpop.f32.mrf.mxu1  ;;  %v5074_v59 = vpop.f32.mrf.mxu0  ;;  %v5083_v16 = vadd.f32 %v10863_v26, %v8272_v18 }
 0x329   :  { %v4477_v45 = vmax.f32 %v3985_v51, 0.0  ;;  %v5075_v24 = vadd.f32 %v10863_v26, %v5074_v59  ;;  %v4645_v61 = vpack.c.bf16 %v4479_v52, %v4478_v21  ;;  %v4006_v31 = vadd.f32 %v10843_v17, %v8104_v30 }
 0x32a   :  { %v6141_v44 = vmax.f32 %v6140_v1, %v5866_v43  ;;  %v3997_v41 = vpop.f32.mrf.mxu1  ;;  %v8273_v6 = vpop.f32.mrf.mxu0  ;;  %v5871_v25 = vmax.f32 %v5083_v16, 0.0 }
 0x32b   :  { %v4644_v36 = vpack.c.bf16 %v4477_v45, %v4476_v14  ;;  %v3998_v55 = vadd.f32 %v10843_v17, %v3997_v41  ;;  %v5869_v20 = vmax.f32 %v5075_v24, 0.0  ;;  %v5086_v8 = vadd.f32 %v10863_v26, %v8273_v6 }
 0x32c   :  { %v6142_v0 = vmax.f32 %v6141_v44, %v5867_v22  ;;  %v8105_v5 = vpop.f32.mrf.mxu1  ;;  %v5077_v53 = vpop.f32.mrf.mxu0  ;;  %v4482_v62 = vmax.f32 %v4006_v31, 0.0 }
 0x32d   :  { %v4009_v56 = vadd.f32 %v10843_v17, %v8105_v5  ;;  %v5078_v35 = vadd.f32 %v10863_v26, %v5077_v53  ;;  %8370 = vmatprep.mubr.bf16.mxu0 %v4644_v36  ;;  %v4480_v60 = vmax.f32 %v3998_v55, 0.0  ;;  %v5872_v10 = vmax.f32 %v5086_v8, 0.0 }
 0x32e   :  { %v6143_v54 = vmax.f32 %v6142_v0, %v5868_v39  ;;  %v4000_v63 = vpop.f32.mrf.mxu1  ;;  %v8276_v33 = vpop.f32.mrf.mxu0  ;;  %8371 = vmatmul.mubr.bf16.gmra.mxu0 %v4645_v61 }
 0x32f   :  { %v5870_v38 = vmax.f32 %v5078_v35, 0.0  ;;  %v4001_v28 = vadd.f32 %v10843_v17, %v4000_v63  ;;  %v4483_v49 = vmax.f32 %v4009_v56, 0.0  ;;  %v5099_v47 = vadd.f32 %v10863_v26, %v8276_v33 }
 0x330   :  { %v6144_v4 = vmax.f32 %v6143_v54, %v5869_v20  ;;  %v8108_v57 = vpop.f32.mrf.mxu1  ;;  %v5090_v13 = vpop.f32.mrf.mxu0 }
 0x331   :  { %v4481_v34 = vmax.f32 %v4001_v28, 0.0  ;;  %v5091_v23 = vadd.f32 %v10863_v26, %v5090_v13  ;;  %v4647_v12 = vpack.c.bf16 %v4483_v49, %v4482_v62  ;;  %v4022_v42 = vadd.f32 %v10843_v17, %v8108_v57 }
 0x332   :  { %v6145_v58 = vmax.f32 %v6144_v4, %v5870_v38  ;;  %v4013_v27 = vpop.f32.mrf.mxu1  ;;  %v8277_v7 = vpop.f32.mrf.mxu0  ;;  %v5875_v45 = vmax.f32 %v5099_v47, 0.0 }
 0x333   :  { %v4646_v48 = vpack.c.bf16 %v4481_v34, %v4480_v60  ;;  %v4014_v50 = vadd.f32 %v10843_v17, %v4013_v27  ;;  %v5873_v43 = vmax.f32 %v5091_v23, 0.0  ;;  %v5102_v51 = vadd.f32 %v10863_v26, %v8277_v7 }
 0x334   :  { %v6146_v11 = vmax.f32 %v6145_v58, %v5871_v25  ;;  %v8109_v9 = vpop.f32.mrf.mxu1  ;;  %v5093_v37 = vpop.f32.mrf.mxu0  ;;  %v4486_v41 = vmax.f32 %v4022_v42, 0.0 }
 0x335   :  { %v4025_v29 = vadd.f32 %v10843_v17, %v8109_v9  ;;  %v5094_v2 = vadd.f32 %v10863_v26, %v5093_v37  ;;  %8374 = vmatprep.mubr.bf16.mxu0 %v4646_v48  ;;  %v4484_v22 = vmax.f32 %v4014_v50, 0.0  ;;  %v5876_v61 = vmax.f32 %v5102_v51, 0.0 }
 0x336   :  { %v6147_v3 = vmax.f32 %v6146_v11, %v5872_v10  ;;  %v4016_v40 = vpop.f32.mrf.mxu1  ;;  %v8280_v18 = vpop.f32.mrf.mxu0  ;;  %8375 = vmatmul.mubr.bf16.gmra.mxu0 %v4647_v12 }
 0x337   :  { %v5874_v1 = vmax.f32 %v5094_v2, 0.0  ;;  %v4017_v15 = vadd.f32 %v10843_v17, %v4016_v40  ;;  %v4487_v30 = vmax.f32 %v4025_v29, 0.0  ;;  %v5115_v56 = vadd.f32 %v10863_v26, %v8280_v18 }
 0x338   :  { %v6148_v52 = vrot.slane %v6147_v3, 4  ;;  %v8112_v59 = vpop.f32.mrf.mxu1  ;;  %v5106_v14 = vpop.f32.mrf.mxu0 }
 0x339   :  { %v6154_v21 = vmax.f32 %v5873_v43, %v5874_v1  ;;  %v4485_v44 = vmax.f32 %v4017_v15, 0.0  ;;  %v5107_v6 = vadd.f32 %v10863_v26, %v5106_v14  ;;  %v4649_v55 = vpack.c.bf16 %v4487_v30, %v4486_v41 }
 0x33a   :  { %v6149_v24 = vmax.f32 %v6147_v3, %v6148_v52  ;;  %v4029_v36 = vpop.f32.mrf.mxu1  ;;  %v8281_v39 = vpop.f32.mrf.mxu0  ;;  %v4038_v38 = vadd.f32 %v10843_v17, %v8112_v59  ;;  %v5879_v58 = vmax.f32 %v5115_v56, 0.0 }
 0x33b   :  { %v6155_v0 = vmax.f32 %v6154_v21, %v5875_v45  ;;  %v4648_v5 = vpack.c.bf16 %v4485_v44, %v4484_v22  ;;  %v5877_v31 = vmax.f32 %v5107_v6, 0.0  ;;  %v4030_v54 = vadd.f32 %v10843_v17, %v4029_v36 }
 0x33c   :  { %v6150_v53 = vrot.slane %v6149_v24, 2  ;;  %v8113_v35 = vpop.f32.mrf.mxu1  ;;  %v5109_v16 = vpop.f32.mrf.mxu0  ;;  %v5118_v32 = vadd.f32 %v10863_v26, %v8281_v39  ;;  %v4490_v23 = vmax.f32 %v4038_v38, 0.0 }
 0x33d   :  { %v6156_v20 = vmax.f32 %v6155_v0, %v5876_v61  ;;  %v4041_v63 = vadd.f32 %v10843_v17, %v8113_v35  ;;  %8378 = vmatprep.mubr.bf16.mxu0 %v4648_v5  ;;  %v5110_v28 = vadd.f32 %v10863_v26, %v5109_v16  ;;  %v4488_v27 = vmax.f32 %v4030_v54, 0.0 }
 0x33e   :  { %v6151_v33 = vmax.f32 %v6149_v24, %v6150_v53  ;;  %v4032_v4 = vpop.f32.mrf.mxu1  ;;  %v8284_v8 = vpop.f32.mrf.mxu0  ;;  %8379 = vmatmul.mubr.bf16.gmra.mxu0 %v4649_v55  ;;  %v5880_v50 = vmax.f32 %v5118_v32, 0.0 }
 0x33f   :  { %v6157_v49 = vmax.f32 %v6156_v20, %v5877_v31  ;;  %v4033_v57 = vadd.f32 %v10843_v17, %v4032_v4  ;;  %v4491_v60 = vmax.f32 %v4041_v63, 0.0  ;;  %v5878_v34 = vmax.f32 %v5110_v28, 0.0 }
 0x340   :  { %v6152_v13 = vrot.slane %v6151_v33, 1  ;;  %v8116_v25 = vpop.f32.mrf.mxu1  ;;  %v5122_v62 = vpop.f32.mrf.mxu0  ;;  %v5131_v40 = vadd.f32 %v10863_v26, %v8284_v8 }
 0x341   :  { %v4489_v7 = vmax.f32 %v4033_v57, 0.0  ;;  %v6158_v10 = vmax.f32 %v6157_v49, %v5878_v34  ;;  %v5123_v12 = vadd.f32 %v10863_v26, %v5122_v62  ;;  %v4651_v29 = vpack.c.bf16 %v4491_v60, %v4490_v23 }
 0x342   :  { %v6153_v48 = vmax.f32 %v6151_v33, %v6152_v13  ;;  %v4045_v11 = vpop.f32.mrf.mxu1  ;;  %v8285_v9 = vpop.f32.mrf.mxu0  ;;  %v4054_v15 = vadd.f32 %v10843_v17, %v8116_v25  ;;  %v5883_v0 = vmax.f32 %v5131_v40, 0.0 }
 0x343   :  { %v4650_v37 = vpack.c.bf16 %v4489_v7, %v4488_v27  ;;  %v6159_v2 = vmax.f32 %v6158_v10, %v5879_v58  ;;  %v4046_v18 = vadd.f32 %v10843_v17, %v4045_v11  ;;  %v5881_v52 = vmax.f32 %v5123_v12, 0.0 }
 0x344   :  { %v6389_v47 = vpack.c.bf16 %v6153_v48, %v6153_v48  ;;  %v8117_v3 = vpop.f32.mrf.mxu1  ;;  %v5125_v42 = vpop.f32.mrf.mxu0  ;;  %v5134_v24 = vadd.f32 %v10863_v26, %v8285_v9  ;;  %v4494_v5 = vmax.f32 %v4054_v15, 0.0 }
 0x345   :  { %v4057_v43 = vadd.f32 %v10843_v17, %v8117_v3  ;;  %v5126_v51 = vadd.f32 %v10863_v26, %v5125_v42  ;;  %8382 = vmatprep.mubr.bf16.mxu0 %v4650_v37  ;;  %v6160_v30 = vmax.f32 %v6159_v2, %v5880_v50  ;;  %v4492_v39 = vmax.f32 %v4046_v18, 0.0 }
 0x346   :  { %v6425_v1 = vunpack.c.l.b16 %v6389_v47  ;;  %v4048_v59 = vpop.f32.mrf.mxu1  ;;  %v8288_v14 = vpop.f32.mrf.mxu0  ;;  %8383 = vmatmul.mubr.bf16.gmra.mxu0 %v4651_v29  ;;  %v5884_v31 = vmax.f32 %v5134_v24, 0.0 }
 0x347   :  { %v5882_v45 = vmax.f32 %v5126_v51, 0.0  ;;  %v4049_v22 = vadd.f32 %v10843_v17, %v4048_v59  ;;  %v6161_v44 = vmax.f32 %v6160_v30, %v5881_v52  ;;  %v4495_v41 = vmax.f32 %v4057_v43, 0.0 }
 0x348   :  { %v10939_v21 = vsel %vm6443_vm6, %v6425_v1, %v10899_v46  ;;  %v8120_v6 = vpop.f32.mrf.mxu1  ;;  %v5138_v36 = vpop.f32.mrf.mxu0  ;;  %v5147_v4 = vadd.f32 %v10863_v26, %v8288_v14 }
 0x349   :  { %v4493_v61 = vmax.f32 %v4049_v22, 0.0  ;;  %v6162_v53 = vmax.f32 %v6161_v44, %v5882_v45  ;;  %v5139_v55 = vadd.f32 %v10863_v26, %v5138_v36  ;;  %v4653_v20 = vpack.c.bf16 %v4495_v41, %v4494_v5 }
 0x34a   :  { %v4061_v56 = vpop.f32.mrf.mxu1  ;;  %v8289_v35 = vpop.f32.mrf.mxu0  ;;  %v4070_v8 = vadd.f32 %v10843_v17, %v8120_v6  ;;  %v5887_v10 = vmax.f32 %v5147_v4, 0.0 }
 0x34b   :  { %v4652_v16 = vpack.c.bf16 %v4493_v61, %v4492_v39  ;;  %v6163_v46 = vmax.f32 %v6162_v53, %v5883_v0  ;;  %v4062_v33 = vadd.f32 %v10843_v17, %v4061_v56  ;;  %v5885_v49 = vmax.f32 %v5139_v55, 0.0 }
 0x34c   :  { %v8121_v54 = vpop.f32.mrf.mxu1  ;;  %v5141_v63 = vpop.f32.mrf.mxu0  ;;  %v5150_v62 = vadd.f32 %v10863_v26, %v8289_v35  ;;  %v4498_v12 = vmax.f32 %v4070_v8, 0.0 }
 0x34d   :  { %v4073_v38 = vadd.f32 %v10843_v17, %v8121_v54  ;;  %v5142_v28 = vadd.f32 %v10863_v26, %v5141_v63  ;;  %8386 = vmatprep.mubr.bf16.mxu0 %v4652_v16  ;;  %v6164_v57 = vmax.f32 %v6163_v46, %v5884_v31  ;;  %v4496_v48 = vmax.f32 %v4062_v33, 0.0 }
 0x34e   :  { %v4064_v13 = vpop.f32.mrf.mxu1  ;;  %v8292_v32 = vpop.f32.mrf.mxu0  ;;  %8387 = vmatmul.mubr.bf16.gmra.mxu0 %v4653_v20  ;;  %v5888_v29 = vmax.f32 %v5150_v62, 0.0 }
 0x34f   :  { %v5886_v60 = vmax.f32 %v5142_v28, 0.0  ;;  %v4065_v34 = vadd.f32 %v10843_v17, %v4064_v13  ;;  %v6165_v25 = vmax.f32 %v6164_v57, %v5885_v49  ;;  %v4499_v58 = vmax.f32 %v4073_v38, 0.0 }
 0x350   :  { %v8124_v27 = vpop.f32.mrf.mxu1  ;;  %v5154_v7 = vpop.f32.mrf.mxu0  ;;  %v5163_v18 = vadd.f32 %v10863_v26, %v8292_v32 }
 0x351   :  { %v4497_v23 = vmax.f32 %v4065_v34, 0.0  ;;  %v6166_v11 = vmax.f32 %v6165_v25, %v5886_v60  ;;  %v5155_v50 = vadd.f32 %v10863_v26, %v5154_v7  ;;  %v4655_v2 = vpack.c.bf16 %v4499_v58, %v4498_v12 }
 0x352   :  { %v4077_v9 = vpop.f32.mrf.mxu1  ;;  %v8293_v37 = vpop.f32.mrf.mxu0  ;;  %v4086_v52 = vadd.f32 %v10843_v17, %v8124_v27  ;;  %v5891_v39 = vmax.f32 %v5163_v18, 0.0 }
 0x353   :  { %v4654_v47 = vpack.c.bf16 %v4497_v23, %v4496_v48  ;;  %v6167_v3 = vmax.f32 %v6166_v11, %v5887_v10  ;;  %v4078_v43 = vadd.f32 %v10843_v17, %v4077_v9  ;;  %v5889_v14 = vmax.f32 %v5155_v50, 0.0 }
 0x354   :  { %v8125_v42 = vpop.f32.mrf.mxu1  ;;  %v5157_v40 = vpop.f32.mrf.mxu0  ;;  %v5166_v45 = vadd.f32 %v10863_v26, %v8293_v37  ;;  %v4502_v55 = vmax.f32 %v4086_v52, 0.0 }
 0x355   :  { %v4089_v51 = vadd.f32 %v10843_v17, %v8125_v42  ;;  %v5158_v1 = vadd.f32 %v10863_v26, %v5157_v40  ;;  %8390 = vmatprep.mubr.bf16.mxu0 %v4654_v47  ;;  %v6168_v15 = vmax.f32 %v6167_v3, %v5888_v29  ;;  %v4500_v61 = vmax.f32 %v4078_v43, 0.0 }
 0x356   :  { %v4080_v30 = vpop.f32.mrf.mxu1  ;;  %v8296_v59 = vpop.f32.mrf.mxu0  ;;  %8391 = vmatmul.mubr.bf16.gmra.mxu0 %v4655_v2  ;;  %v5892_v31 = vmax.f32 %v5166_v45, 0.0 }
 0x357   :  { %v5890_v22 = vmax.f32 %v5158_v1, 0.0  ;;  %v4081_v44 = vadd.f32 %v10843_v17, %v4080_v30  ;;  %v6169_v24 = vrot.slane %v6168_v15, 4  ;;  %v4503_v41 = vmax.f32 %v4089_v51, 0.0 }
 0x358   :  { %v8128_v6 = vpop.f32.mrf.mxu1  ;;  %v5170_v36 = vpop.f32.mrf.mxu0  ;;  %v5179_v33 = vadd.f32 %v10863_v26, %v8296_v59 }
 0x359   :  { %v6175_v0 = vmax.f32 %v5889_v14, %v5890_v22  ;;  %v4501_v5 = vmax.f32 %v4081_v44, 0.0  ;;  %v6170_v53 = vmax.f32 %v6168_v15, %v6169_v24  ;;  %v5171_v56 = vadd.f32 %v10863_v26, %v5170_v36 }
 0x35a   :  { %v4093_v35 = vpop.f32.mrf.mxu1  ;;  %v8297_v16 = vpop.f32.mrf.mxu0  ;;  %v4657_v63 = vpack.c.bf16 %v4503_v41, %v4502_v55  ;;  %v4102_v32 = vadd.f32 %v10843_v17, %v8128_v6  ;;  %v5895_v11 = vmax.f32 %v5179_v33, 0.0 }
 0x35b   :  { %v6176_v20 = vmax.f32 %v6175_v0, %v5891_v39  ;;  %v4656_v46 = vpack.c.bf16 %v4501_v5, %v4500_v61  ;;  %v6171_v54 = vrot.slane %v6170_v53, 2  ;;  %v5893_v4 = vmax.f32 %v5171_v56, 0.0 }
 0x35c   :  { %v8129_v38 = vpop.f32.mrf.mxu1  ;;  %v5173_v28 = vpop.f32.mrf.mxu0  ;;  %v4094_v49 = vadd.f32 %v10843_v17, %v4093_v35  ;;  %v5182_v7 = vadd.f32 %v10863_v26, %v8297_v16  ;;  %v4506_v50 = vmax.f32 %v4102_v32, 0.0 }
 0x35d   :  { %v6177_v8 = vmax.f32 %v6176_v20, %v5892_v31  ;;  %v4105_v57 = vadd.f32 %v10843_v17, %v8129_v38  ;;  %8394 = vmatprep.mubr.bf16.mxu0 %v4656_v46  ;;  %v6172_v13 = vmax.f32 %v6170_v53, %v6171_v54  ;;  %v5174_v60 = vadd.f32 %v10863_v26, %v5173_v28 }
 0x35e   :  { %v4096_v34 = vpop.f32.mrf.mxu1  ;;  %v8300_v25 = vpop.f32.mrf.mxu0  ;;  %8395 = vmatmul.mubr.bf16.gmra.mxu0 %v4657_v63  ;;  %v4504_v9 = vmax.f32 %v4094_v49, 0.0  ;;  %v5896_v43 = vmax.f32 %v5182_v7, 0.0 }
 0x35f   :  { %v6178_v62 = vmax.f32 %v6177_v8, %v5893_v4  ;;  %v4097_v58 = vadd.f32 %v10843_v17, %v4096_v34  ;;  %v6173_v27 = vrot.slane %v6172_v13, 1  ;;  %v4507_v48 = vmax.f32 %v4105_v57, 0.0 }
 0x360   :  { %v5894_v23 = vmax.f32 %v5174_v60, 0.0  ;;  %v8132_v10 = vpop.f32.mrf.mxu1  ;;  %v5186_v12 = vpop.f32.mrf.mxu0  ;;  %v5195_v30 = vadd.f32 %v10863_v26, %v8300_v25 }
 0x361   :  { %v4505_v37 = vmax.f32 %v4097_v58, 0.0  ;;  %v6174_v47 = vmax.f32 %v6172_v13, %v6173_v27  ;;  %v5187_v2 = vadd.f32 %v10863_v26, %v5186_v12  ;;  %v4659_v51 = vpack.c.bf16 %v4507_v48, %v4506_v50 }
 0x362   :  { %v6179_v29 = vmax.f32 %v6178_v62, %v5894_v23  ;;  %v4109_v3 = vpop.f32.mrf.mxu1  ;;  %v8301_v42 = vpop.f32.mrf.mxu0  ;;  %v4118_v44 = vadd.f32 %v10843_v17, %v8132_v10  ;;  %v5899_v20 = vmax.f32 %v5195_v30, 0.0  ;;  %v8494_v10 = vld [vmem:[%s11241_s3 + $0x50] sm:$0xff]  }
 0x363   :  { %v4658_v40 = vpack.c.bf16 %v4505_v37, %v4504_v9  ;;  %v6390_v18 = vpack.c.bf16 %v6174_v47, %v6174_v47  ;;  %v4110_v59 = vadd.f32 %v10843_v17, %v4109_v3  ;;  %v5897_v24 = vmax.f32 %v5187_v2, 0.0  ;;  %8461 = vmatpush3.bf16.msra.mxu1 %v8494_v10 }
 0x364   :  { %v6180_v1 = vmax.f32 %v6179_v29, %v5895_v11  ;;  %v8133_v15 = vpop.f32.mrf.mxu1  ;;  %v5189_v52 = vpop.f32.mrf.mxu0  ;;  %v5198_v53 = vadd.f32 %v10863_v26, %v8301_v42  ;;  %v4510_v46 = vmax.f32 %v4118_v44, 0.0  ;;  %8462 = vmatprep.subr.bf16.mxu1 %v8527_v19 }
 0x365   :  { %v4121_v14 = vadd.f32 %v10843_v17, %v8133_v15  ;;  %v5190_v45 = vadd.f32 %v10863_v26, %v5189_v52  ;;  %8398 = vmatprep.mubr.bf16.mxu0 %v4658_v40  ;;  %v6426_v22 = vunpack.c.l.b16 %v6390_v18  ;;  %v4508_v16 = vmax.f32 %v4110_v59, 0.0 }
 0x366   :  { %v6181_v41 = vmax.f32 %v6180_v1, %v5896_v43  ;;  %v4112_v6 = vpop.f32.mrf.mxu1  ;;  %v8304_v36 = vpop.f32.mrf.mxu0  ;;  %8399 = vmatmul.mubr.bf16.gmra.mxu0 %v4659_v51  ;;  %v5900_v4 = vmax.f32 %v5198_v53, 0.0 }
 0x367   :  { %v5898_v39 = vmax.f32 %v5190_v45, 0.0  ;;  %v4113_v61 = vadd.f32 %v10843_v17, %v4112_v6  ;;  %v10975_v0 = vsel %vm6445_vm7, %v6426_v22, %v10939_v21  ;;  %v4511_v55 = vmax.f32 %v4121_v14, 0.0  ;;  %v10995_v14 = vld [vmem:[%s11242_s4 + $0x1] ss:$0 sm:$0xff] }
 0x368   :  { %v6182_v5 = vmax.f32 %v6181_v41, %v5897_v24  ;;  %v8136_v56 = vpop.f32.mrf.mxu1  ;;  %v5202_v35 = vpop.f32.mrf.mxu0  ;;  %v5211_v34 = vadd.f32 %v10863_v26, %v8304_v36 }
 0x369   :  { %v4509_v31 = vmax.f32 %v4113_v61, 0.0  ;;  %v5203_v63 = vadd.f32 %v10863_v26, %v5202_v35  ;;  %v4661_v8 = vpack.c.bf16 %v4511_v55, %v4510_v46  ;;  %v4134_v25 = vadd.f32 %v10843_v17, %v8136_v56 }
 0x36a   :  { %v6183_v54 = vmax.f32 %v6182_v5, %v5898_v39  ;;  %v4125_v33 = vpop.f32.mrf.mxu1  ;;  %v8305_v38 = vpop.f32.mrf.mxu0  ;;  %v5903_v2 = vmax.f32 %v5211_v34, 0.0 }
 0x36b   :  { %v4660_v28 = vpack.c.bf16 %v4509_v31, %v4508_v16  ;;  %v4126_v13 = vadd.f32 %v10843_v17, %v4125_v33  ;;  %v5901_v62 = vmax.f32 %v5203_v63, 0.0  ;;  %v5214_v11 = vadd.f32 %v10863_v26, %v8305_v38 }
 0x36c   :  { %v6184_v21 = vmax.f32 %v6183_v54, %v5899_v20  ;;  %v8137_v49 = vpop.f32.mrf.mxu1  ;;  %v5205_v57 = vpop.f32.mrf.mxu0  ;;  %v4514_v3 = vmax.f32 %v4134_v25, 0.0 }
 0x36d   :  { %v4137_v32 = vadd.f32 %v10843_v17, %v8137_v49  ;;  %v5206_v60 = vadd.f32 %v10863_v26, %v5205_v57  ;;  %8402 = vmatprep.mubr.bf16.mxu0 %v4660_v28  ;;  %v4512_v50 = vmax.f32 %v4126_v13, 0.0  ;;  %v5904_v51 = vmax.f32 %v5214_v11, 0.0 }
 0x36e   :  { %v6185_v58 = vmax.f32 %v6184_v21, %v5900_v4  ;;  %v4128_v27 = vpop.f32.mrf.mxu1  ;;  %v8308_v7 = vpop.f32.mrf.mxu0  ;;  %8403 = vmatmul.mubr.bf16.gmra.mxu0 %v4661_v8 }
 0x36f   :  { %v5902_v48 = vmax.f32 %v5206_v60, 0.0  ;;  %v4129_v23 = vadd.f32 %v10843_v17, %v4128_v27  ;;  %v4515_v9 = vmax.f32 %v4137_v32, 0.0  ;;  %v5227_v59 = vadd.f32 %v10863_v26, %v8308_v7 }
 0x370   :  { %v6186_v12 = vmax.f32 %v6185_v58, %v5901_v62  ;;  %v8140_v37 = vpop.f32.mrf.mxu1  ;;  %v5218_v47 = vpop.f32.mrf.mxu0 }
 0x371   :  { %v4513_v29 = vmax.f32 %v4129_v23, 0.0  ;;  %v5219_v43 = vadd.f32 %v10863_v26, %v5218_v47  ;;  %v4663_v1 = vpack.c.bf16 %v4515_v9, %v4514_v3  ;;  %v4150_v41 = vadd.f32 %v10995_v14, %v8140_v37  ;;  %v11013_v47 = vld [vmem:[%s11242_s4 + $0x2] ss:$0 sm:$0xff] }
 0x372   :  { %v6187_v42 = vmax.f32 %v6186_v12, %v5902_v48  ;;  %v4141_v40 = vpop.f32.mrf.mxu1  ;;  %v8309_v18 = vpop.f32.mrf.mxu0  ;;  %v5907_v31 = vmax.f32 %v5227_v59, 0.0 }
 0x373   :  { %v4662_v17 = vpack.c.bf16 %v4513_v29, %v4512_v50  ;;  %v4142_v45 = vadd.f32 %v10995_v14, %v4141_v40  ;;  %v5905_v39 = vmax.f32 %v5219_v43, 0.0  ;;  %v5230_v61 = vadd.f32 %v10863_v26, %v8309_v18 }
 0x374   :  { %v6188_v15 = vmax.f32 %v6187_v42, %v5903_v2  ;;  %v8141_v52 = vpop.f32.mrf.mxu1  ;;  %v5221_v30 = vpop.f32.mrf.mxu0  ;;  %v4518_v33 = vmax.f32 %v4150_v41, 0.0 }
 0x375   :  { %v4153_v22 = vadd.f32 %v10995_v14, %v8141_v52  ;;  %v5222_v44 = vadd.f32 %v10863_v26, %v5221_v30  ;;  %8406 = vmatprep.mubr.bf16.mxu0 %v4662_v17  ;;  %v4516_v20 = vmax.f32 %v4142_v45, 0.0  ;;  %v5908_v8 = vmax.f32 %v5230_v61, 0.0 }
 0x376   :  { %v6189_v24 = vmax.f32 %v6188_v15, %v5904_v51  ;;  %v4144_v6 = vpop.f32.mrf.mxu1  ;;  %v8312_v36 = vpop.f32.mrf.mxu0  ;;  %8407 = vmatmul.mubr.bf16.gmra.mxu0 %v4663_v1 }
 0x377   :  { %v5906_v5 = vmax.f32 %v5222_v44, 0.0  ;;  %v4145_v53 = vadd.f32 %v10995_v14, %v4144_v6  ;;  %v4519_v56 = vmax.f32 %v4153_v22, 0.0  ;;  %v5243_v32 = vadd.f32 %v10863_v26, %v8312_v36 }
 0x378   :  { %v6190_v55 = vrot.slane %v6189_v24, 4  ;;  %v8144_v35 = vpop.f32.mrf.mxu1  ;;  %v5234_v16 = vpop.f32.mrf.mxu0 }
 0x379   :  { %v6196_v46 = vmax.f32 %v5905_v39, %v5906_v5  ;;  %v4517_v54 = vmax.f32 %v4145_v53, 0.0  ;;  %v5235_v38 = vadd.f32 %v10863_v26, %v5234_v16  ;;  %v4665_v13 = vpack.c.bf16 %v4519_v56, %v4518_v33 }
 0x37a   :  { %v6191_v63 = vmax.f32 %v6189_v24, %v6190_v55  ;;  %v4157_v28 = vpop.f32.mrf.mxu1  ;;  %v8313_v4 = vpop.f32.mrf.mxu0  ;;  %v4166_v48 = vadd.f32 %v10995_v14, %v8144_v35  ;;  %v5911_v40 = vmax.f32 %v5243_v32, 0.0 }
 0x37b   :  { %v6197_v21 = vmax.f32 %v6196_v46, %v5907_v31  ;;  %v4664_v49 = vpack.c.bf16 %v4517_v54, %v4516_v20  ;;  %v5909_v25 = vmax.f32 %v5235_v38, 0.0  ;;  %v4158_v58 = vadd.f32 %v10995_v14, %v4157_v28 }
 0x37c   :  { %v6192_v57 = vrot.slane %v6191_v63, 2  ;;  %v8145_v60 = vpop.f32.mrf.mxu1  ;;  %v5237_v34 = vpop.f32.mrf.mxu0  ;;  %v5246_v50 = vadd.f32 %v11013_v47, %v8313_v4  ;;  %v4522_v43 = vmax.f32 %v4166_v48, 0.0 }
 0x37d   :  { %v6198_v62 = vmax.f32 %v6197_v21, %v5908_v8  ;;  %v4169_v27 = vadd.f32 %v10995_v14, %v8145_v60  ;;  %8410 = vmatprep.mubr.bf16.mxu0 %v4664_v49  ;;  %v5238_v23 = vadd.f32 %v10863_v26, %v5237_v34  ;;  %v4520_v26 = vmax.f32 %v4158_v58, 0.0 }
 0x37e   :  { %v6193_v7 = vmax.f32 %v6191_v63, %v6192_v57  ;;  %v4160_v10 = vpop.f32.mrf.mxu1  ;;  %v8316_v12 = vpop.f32.mrf.mxu0  ;;  %8411 = vmatmul.mubr.bf16.gmra.mxu0 %v4665_v13  ;;  %v5912_v45 = vmax.f32 %v5246_v50, 0.0 }
 0x37f   :  { %v6199_v11 = vmax.f32 %v6198_v62, %v5909_v25  ;;  %v4161_v9 = vadd.f32 %v10995_v14, %v4160_v10  ;;  %v4523_v29 = vmax.f32 %v4169_v27, 0.0  ;;  %v5910_v2 = vmax.f32 %v5238_v23, 0.0 }
 0x380   :  { %v6194_v37 = vrot.slane %v6193_v7, 1  ;;  %v8148_v3 = vpop.f32.mrf.mxu1  ;;  %v5250_v42 = vpop.f32.mrf.mxu0  ;;  %v5259_v6 = vadd.f32 %v11013_v47, %v8316_v12 }
 0x381   :  { %v4521_v18 = vmax.f32 %v4161_v9, 0.0  ;;  %v6200_v51 = vmax.f32 %v6199_v11, %v5910_v2  ;;  %v5251_v1 = vadd.f32 %v11013_v47, %v5250_v42  ;;  %v4667_v22 = vpack.c.bf16 %v4523_v29, %v4522_v43 }
 0x382   :  { %v6195_v17 = vmax.f32 %v6193_v7, %v6194_v37  ;;  %v4173_v15 = vpop.f32.mrf.mxu1  ;;  %v8317_v52 = vpop.f32.mrf.mxu0  ;;  %v4182_v53 = vadd.f32 %v10995_v14, %v8148_v3  ;;  %v5915_v21 = vmax.f32 %v5259_v6, 0.0 }
 0x383   :  { %v4666_v30 = vpack.c.bf16 %v4521_v18, %v4520_v26  ;;  %v6201_v44 = vmax.f32 %v6200_v51, %v5911_v40  ;;  %v4174_v36 = vadd.f32 %v10995_v14, %v4173_v15  ;;  %v5913_v55 = vmax.f32 %v5251_v1, 0.0 }
 0x384   :  { %v6391_v59 = vpack.c.bf16 %v6195_v17, %v6195_v17  ;;  %v8149_v24 = vpop.f32.mrf.mxu1  ;;  %v5253_v41 = vpop.f32.mrf.mxu0  ;;  %v5262_v63 = vadd.f32 %v11013_v47, %v8317_v52  ;;  %v4526_v49 = vmax.f32 %v4182_v53, 0.0 }
 0x385   :  { %v4185_v39 = vadd.f32 %v10995_v14, %v8149_v24  ;;  %v5254_v61 = vadd.f32 %v11013_v47, %v5253_v41  ;;  %8414 = vmatprep.mubr.bf16.mxu0 %v4666_v30  ;;  %v6202_v56 = vmax.f32 %v6201_v44, %v5912_v45  ;;  %v4524_v4 = vmax.f32 %v4174_v36, 0.0 }
 0x386   :  { %v6427_v5 = vunpack.c.l.b16 %v6391_v59  ;;  %v4176_v35 = vpop.f32.mrf.mxu1  ;;  %v8320_v16 = vpop.f32.mrf.mxu0  ;;  %8415 = vmatmul.mubr.bf16.gmra.mxu0 %v4667_v22  ;;  %v5916_v25 = vmax.f32 %v5262_v63, 0.0 }
 0x387   :  { %v5914_v31 = vmax.f32 %v5254_v61, 0.0  ;;  %v4177_v20 = vadd.f32 %v10995_v14, %v4176_v35  ;;  %v6203_v54 = vmax.f32 %v6202_v56, %v5913_v55  ;;  %v4527_v33 = vmax.f32 %v4185_v39, 0.0 }
 0x388   :  { %v11025_v46 = vsel %vm6447_vm8, %v6427_v5, %v10975_v0  ;;  %v8152_v38 = vpop.f32.mrf.mxu1  ;;  %v5266_v28 = vpop.f32.mrf.mxu0  ;;  %v5275_v10 = vadd.f32 %v11013_v47, %v8320_v16 }
 0x389   :  { %v4525_v8 = vmax.f32 %v4177_v20, 0.0  ;;  %v6204_v57 = vmax.f32 %v6203_v54, %v5914_v31  ;;  %v5267_v13 = vadd.f32 %v11013_v47, %v5266_v28  ;;  %v4669_v62 = vpack.c.bf16 %v4527_v33, %v4526_v49 }
 0x38a   :  { %v4189_v32 = vpop.f32.mrf.mxu1  ;;  %v8321_v60 = vpop.f32.mrf.mxu0  ;;  %v4198_v12 = vadd.f32 %v10995_v14, %v8152_v38  ;;  %v5919_v51 = vmax.f32 %v5275_v10, 0.0 }
 0x38b   :  { %v4668_v34 = vpack.c.bf16 %v4525_v8, %v4524_v4  ;;  %v6205_v0 = vmax.f32 %v6204_v57, %v5915_v21  ;;  %v4190_v7 = vadd.f32 %v10995_v14, %v4189_v32  ;;  %v5917_v11 = vmax.f32 %v5267_v13, 0.0 }
 0x38c   :  { %v8153_v58 = vpop.f32.mrf.mxu1  ;;  %v5269_v27 = vpop.f32.mrf.mxu0  ;;  %v5278_v42 = vadd.f32 %v11013_v47, %v8321_v60  ;;  %v4530_v1 = vmax.f32 %v4198_v12, 0.0 }
 0x38d   :  { %v4201_v48 = vadd.f32 %v10995_v14, %v8153_v58  ;;  %v5270_v23 = vadd.f32 %v11013_v47, %v5269_v27  ;;  %8418 = vmatprep.mubr.bf16.mxu0 %v4668_v34  ;;  %v6206_v9 = vmax.f32 %v6205_v0, %v5916_v25  ;;  %v4528_v17 = vmax.f32 %v4190_v7, 0.0 }
 0x38e   :  { %v4192_v37 = vpop.f32.mrf.mxu1  ;;  %v8324_v50 = vpop.f32.mrf.mxu0  ;;  %8419 = vmatmul.mubr.bf16.gmra.mxu0 %v4669_v62  ;;  %v5920_v22 = vmax.f32 %v5278_v42, 0.0 }
 0x38f   :  { %v5918_v29 = vmax.f32 %v5270_v23, 0.0  ;;  %v4193_v2 = vadd.f32 %v10995_v14, %v4192_v37  ;;  %v6207_v3 = vmax.f32 %v6206_v9, %v5917_v11  ;;  %v4531_v40 = vmax.f32 %v4201_v48, 0.0 }
 0x390   :  { %v8156_v26 = vpop.f32.mrf.mxu1  ;;  %v5282_v18 = vpop.f32.mrf.mxu0  ;;  %v5291_v36 = vadd.f32 %v11013_v47, %v8324_v50 }
 0x391   :  { %v4529_v43 = vmax.f32 %v4193_v2, 0.0  ;;  %v6208_v15 = vmax.f32 %v6207_v3, %v5918_v29  ;;  %v5283_v45 = vadd.f32 %v11013_v47, %v5282_v18  ;;  %v4671_v44 = vpack.c.bf16 %v4531_v40, %v4530_v1 }
 0x392   :  { %v4205_v52 = vpop.f32.mrf.mxu1  ;;  %v8325_v30 = vpop.f32.mrf.mxu0  ;;  %v4214_v55 = vadd.f32 %v10995_v14, %v8156_v26  ;;  %v5923_v4 = vmax.f32 %v5291_v36, 0.0 }
 0x393   :  { %v4670_v59 = vpack.c.bf16 %v4529_v43, %v4528_v17  ;;  %v6209_v24 = vmax.f32 %v6208_v15, %v5919_v51  ;;  %v4206_v39 = vadd.f32 %v10995_v14, %v4205_v52  ;;  %v5921_v16 = vmax.f32 %v5283_v45, 0.0 }
 0x394   :  { %v8157_v41 = vpop.f32.mrf.mxu1  ;;  %v5285_v6 = vpop.f32.mrf.mxu0  ;;  %v5294_v31 = vadd.f32 %v11013_v47, %v8325_v30  ;;  %v4534_v13 = vmax.f32 %v4214_v55, 0.0 }
 0x395   :  { %v4217_v61 = vadd.f32 %v10995_v14, %v8157_v41  ;;  %v5286_v5 = vadd.f32 %v11013_v47, %v5285_v6  ;;  %8422 = vmatprep.mubr.bf16.mxu0 %v4670_v59  ;;  %v6210_v53 = vmax.f32 %v6209_v24, %v5920_v22  ;;  %v4532_v8 = vmax.f32 %v4206_v39, 0.0 }
 0x396   :  { %v4208_v56 = vpop.f32.mrf.mxu1  ;;  %v8328_v35 = vpop.f32.mrf.mxu0  ;;  %8423 = vmatmul.mubr.bf16.gmra.mxu0 %v4671_v44  ;;  %v5924_v25 = vmax.f32 %v5294_v31, 0.0 }
 0x397   :  { %v5922_v20 = vmax.f32 %v5286_v5, 0.0  ;;  %v4209_v54 = vadd.f32 %v10995_v14, %v4208_v56  ;;  %v6211_v63 = vrot.slane %v6210_v53, 4  ;;  %v4535_v33 = vmax.f32 %v4217_v61, 0.0 }
 0x398   :  { %v8160_v38 = vpop.f32.mrf.mxu1  ;;  %v5298_v28 = vpop.f32.mrf.mxu0  ;;  %v5307_v7 = vadd.f32 %v11013_v47, %v8328_v35 }
 0x399   :  { %v6217_v21 = vmax.f32 %v5921_v16, %v5922_v20  ;;  %v4533_v49 = vmax.f32 %v4209_v54, 0.0  ;;  %v6212_v57 = vmax.f32 %v6210_v53, %v6211_v63  ;;  %v5299_v32 = vadd.f32 %v11013_v47, %v5298_v28 }
 0x39a   :  { %v4221_v60 = vpop.f32.mrf.mxu1  ;;  %v8329_v34 = vpop.f32.mrf.mxu0  ;;  %v4673_v27 = vpack.c.bf16 %v4535_v33, %v4534_v13  ;;  %v4230_v50 = vadd.f32 %v10995_v14, %v8160_v38  ;;  %v5927_v15 = vmax.f32 %v5307_v7, 0.0 }
 0x39b   :  { %v6218_v62 = vmax.f32 %v6217_v21, %v5923_v4  ;;  %v4672_v0 = vpack.c.bf16 %v4533_v49, %v4532_v8  ;;  %v6213_v58 = vrot.slane %v6212_v57, 2  ;;  %v5925_v10 = vmax.f32 %v5299_v32, 0.0 }
 0x39c   :  { %v8161_v48 = vpop.f32.mrf.mxu1  ;;  %v5301_v23 = vpop.f32.mrf.mxu0  ;;  %v4222_v11 = vadd.f32 %v10995_v14, %v4221_v60  ;;  %v5310_v18 = vadd.f32 %v11013_v47, %v8329_v34  ;;  %v4538_v45 = vmax.f32 %v4230_v50, 0.0 }
 0x39d   :  { %v6219_v12 = vmax.f32 %v6218_v62, %v5924_v25  ;;  %v4233_v9 = vadd.f32 %v10995_v14, %v8161_v48  ;;  %8426 = vmatprep.mubr.bf16.mxu0 %v4672_v0  ;;  %v6214_v37 = vmax.f32 %v6212_v57, %v6213_v58  ;;  %v5302_v29 = vadd.f32 %v11013_v47, %v5301_v23 }
 0x39e   :  { %v4224_v2 = vpop.f32.mrf.mxu1  ;;  %v8332_v3 = vpop.f32.mrf.mxu0  ;;  %8427 = vmatmul.mubr.bf16.gmra.mxu0 %v4673_v27  ;;  %v4536_v52 = vmax.f32 %v4222_v11, 0.0  ;;  %v5928_v39 = vmax.f32 %v5310_v18, 0.0 }
 0x39f   :  { %v6220_v42 = vmax.f32 %v6219_v12, %v5925_v10  ;;  %v4225_v40 = vadd.f32 %v10995_v14, %v4224_v2  ;;  %v6215_v26 = vrot.slane %v6214_v37, 1  ;;  %v4539_v17 = vmax.f32 %v4233_v9, 0.0 }
 0x3a0   :  { %v5926_v43 = vmax.f32 %v5302_v29, 0.0  ;;  %v8164_v51 = vpop.f32.mrf.mxu1  ;;  %v5314_v1 = vpop.f32.mrf.mxu0  ;;  %v5323_v56 = vadd.f32 %v11013_v47, %v8332_v3 }
 0x3a1   :  { %v4537_v30 = vmax.f32 %v4225_v40, 0.0  ;;  %v6216_v59 = vmax.f32 %v6214_v37, %v6215_v26  ;;  %v5315_v44 = vadd.f32 %v11013_v47, %v5314_v1  ;;  %v4675_v61 = vpack.c.bf16 %v4539_v17, %v4538_v45 }
 0x3a2   :  { %v6221_v22 = vmax.f32 %v6220_v42, %v5926_v43  ;;  %v4237_v24 = vpop.f32.mrf.mxu1  ;;  %v8333_v41 = vpop.f32.mrf.mxu0  ;;  %v4246_v54 = vadd.f32 %v10995_v14, %v8164_v51  ;;  %v5931_v62 = vmax.f32 %v5323_v56, 0.0  ;;  %v8495_v51 = vld [vmem:[%s11241_s3 + $0x48] sm:$0xff]  }
 0x3a3   :  { %v4674_v6 = vpack.c.bf16 %v4537_v30, %v4536_v52  ;;  %v6392_v36 = vpack.c.bf16 %v6216_v59, %v6216_v59  ;;  %v4238_v35 = vadd.f32 %v10995_v14, %v4237_v24  ;;  %v5929_v63 = vmax.f32 %v5315_v44, 0.0  ;;  %8463 = vmatpush3.bf16.msra.mxu1 %v8495_v51 }
 0x3a4   :  { %v6222_v5 = vmax.f32 %v6221_v22, %v5927_v15  ;;  %v8165_v53 = vpop.f32.mrf.mxu1  ;;  %v5317_v55 = vpop.f32.mrf.mxu0  ;;  %v5326_v49 = vadd.f32 %v11013_v47, %v8333_v41  ;;  %v4542_v0 = vmax.f32 %v4246_v54, 0.0  ;;  %8464 = vmatprep.subr.bf16.mxu1 %v8527_v19 }
 0x3a5   :  { %v4249_v16 = vadd.f32 %v10995_v14, %v8165_v53  ;;  %v5318_v31 = vadd.f32 %v11013_v47, %v5317_v55  ;;  %8430 = vmatprep.mubr.bf16.mxu0 %v4674_v6  ;;  %v6428_v20 = vunpack.c.l.b16 %v6392_v36  ;;  %v4540_v34 = vmax.f32 %v4238_v35, 0.0 }
 0x3a6   :  { %v6223_v33 = vmax.f32 %v6222_v5, %v5928_v39  ;;  %v4240_v38 = vpop.f32.mrf.mxu1  ;;  %v8336_v28 = vpop.f32.mrf.mxu0  ;;  %8431 = vmatmul.mubr.bf16.gmra.mxu0 %v4675_v61  ;;  %v5932_v10 = vmax.f32 %v5326_v49, 0.0 }
 0x3a7   :  { %v5930_v4 = vmax.f32 %v5318_v31, 0.0  ;;  %v4241_v8 = vadd.f32 %v10995_v14, %v4240_v38  ;;  %v4543_v57 = vmax.f32 %v4249_v16, 0.0  ;;  %v11062_v60 = vsel %vm6449_vm9, %v6428_v20, %v11025_v46 }
 0x3a8   :  { %v6224_v21 = vmax.f32 %v6223_v33, %v5929_v63  ;;  %v8168_v13 = vpop.f32.mrf.mxu1  ;;  %v5330_v32 = vpop.f32.mrf.mxu0  ;;  %v5339_v2 = vadd.f32 %v11013_v47, %v8336_v28 }
 0x3a9   :  { %v4541_v25 = vmax.f32 %v4241_v8, 0.0  ;;  %v5331_v27 = vadd.f32 %v11013_v47, %v5330_v32  ;;  %v4677_v12 = vpack.c.bf16 %v4543_v57, %v4542_v0  ;;  %v4262_v3 = vadd.f32 %v10995_v14, %v8168_v13 }
 0x3aa   :  { %v6225_v58 = vmax.f32 %v6224_v21, %v5930_v4  ;;  %v4253_v7 = vpop.f32.mrf.mxu1  ;;  %v8337_v48 = vpop.f32.mrf.mxu0  ;;  %v5935_v44 = vmax.f32 %v5339_v2, 0.0 }
 0x3ab   :  { %v4676_v23 = vpack.c.bf16 %v4541_v25, %v4540_v34  ;;  %v4254_v50 = vadd.f32 %v10995_v14, %v4253_v7  ;;  %v5933_v42 = vmax.f32 %v5331_v27, 0.0  ;;  %v5342_v15 = vadd.f32 %v11013_v47, %v8337_v48 }
 0x3ac   :  { %v6226_v11 = vmax.f32 %v6225_v58, %v5931_v62  ;;  %v8169_v9 = vpop.f32.mrf.mxu1  ;;  %v5333_v37 = vpop.f32.mrf.mxu0  ;;  %v4546_v24 = vmax.f32 %v4262_v3, 0.0 }
 0x3ad   :  { %v4265_v46 = vadd.f32 %v10995_v14, %v8169_v9  ;;  %v5334_v29 = vadd.f32 %v11013_v47, %v5333_v37  ;;  %8434 = vmatprep.mubr.bf16.mxu0 %v4676_v23  ;;  %v4544_v45 = vmax.f32 %v4254_v50, 0.0  ;;  %v5936_v5 = vmax.f32 %v5342_v15, 0.0 }
 0x3ae   :  { %v6227_v40 = vmax.f32 %v6226_v11, %v5932_v10  ;;  %v4256_v26 = vpop.f32.mrf.mxu1  ;;  %v8340_v18 = vpop.f32.mrf.mxu0  ;;  %8435 = vmatmul.mubr.bf16.gmra.mxu0 %v4677_v12 }
 0x3af   :  { %v5934_v17 = vmax.f32 %v5334_v29, 0.0  ;;  %v4257_v43 = vadd.f32 %v10995_v14, %v4256_v26  ;;  %v4547_v52 = vmax.f32 %v4265_v46, 0.0  ;;  %v5355_v16 = vadd.f32 %v11013_v47, %v8340_v18 }
 0x3b0   :  { %v6228_v1 = vmax.f32 %v6227_v40, %v5933_v42  ;;  %v8172_v30 = vpop.f32.mrf.mxu1  ;;  %v5346_v59 = vpop.f32.mrf.mxu0 }
 0x3b1   :  { %v4545_v22 = vmax.f32 %v4257_v43, 0.0  ;;  %v5347_v61 = vadd.f32 %v11013_v47, %v5346_v59  ;;  %v4679_v53 = vpack.c.bf16 %v4547_v52, %v4546_v24  ;;  %v4278_v33 = vadd.f32 %v10995_v14, %v8172_v30 }
 0x3b2   :  { %v6229_v41 = vmax.f32 %v6228_v1, %v5934_v17  ;;  %v4269_v6 = vpop.f32.mrf.mxu1  ;;  %v8341_v36 = vpop.f32.mrf.mxu0  ;;  %v5939_v34 = vmax.f32 %v5355_v16, 0.0 }
 0x3b3   :  { %v4678_v39 = vpack.c.bf16 %v4545_v22, %v4544_v45  ;;  %v4270_v31 = vadd.f32 %v10995_v14, %v4269_v6  ;;  %v5937_v4 = vmax.f32 %v5347_v61, 0.0  ;;  %v5358_v8 = vadd.f32 %v11013_v47, %v8341_v36 }
 0x3b4   :  { %v6230_v55 = vmax.f32 %v6229_v41, %v5935_v44  ;;  %v8173_v56 = vpop.f32.mrf.mxu1  ;;  %v5349_v35 = vpop.f32.mrf.mxu0  ;;  %v4550_v58 = vmax.f32 %v4278_v33, 0.0 }
 0x3b5   :  { %v4281_v20 = vadd.f32 %v10995_v14, %v8173_v56  ;;  %v5350_v54 = vadd.f32 %v11013_v47, %v5349_v35  ;;  %8438 = vmatprep.mubr.bf16.mxu0 %v4678_v39  ;;  %v4548_v25 = vmax.f32 %v4270_v31, 0.0  ;;  %v5940_v23 = vmax.f32 %v5358_v8, 0.0 }
 0x3b6   :  { %v11081_v63 = vmax.f32 %v6230_v55, %v5936_v5  ;;  %v4272_v38 = vpop.f32.mrf.mxu1  ;;  %v8344_v28 = vpop.f32.mrf.mxu0  ;;  %8439 = vmatmul.mubr.bf16.gmra.mxu0 %v4679_v53 }
 0x3b7   :  { %v5938_v21 = vmax.f32 %v5350_v54, 0.0  ;;  %v4273_v49 = vadd.f32 %v10995_v14, %v4272_v38  ;;  %v4551_v57 = vmax.f32 %v4281_v20, 0.0  ;;  %v5371_v3 = vadd.f32 %v11013_v47, %v8344_v28 }
 0x3b8   :  { %v8176_v13 = vpop.f32.mrf.mxu1  ;;  %v5362_v32 = vpop.f32.mrf.mxu0  ;;  %v6232_v33 = vrot.slane %v11081_v63, 4 }
 0x3b9   :  { %v6238_v62 = vmax.f32 %v5937_v4, %v5938_v21  ;;  %v4549_v0 = vmax.f32 %v4273_v49, 0.0  ;;  %v5363_v27 = vadd.f32 %v11013_v47, %v5362_v32  ;;  %v4681_v11 = vpack.c.bf16 %v4551_v57, %v4550_v58 }
 0x3ba   :  { %v4285_v7 = vpop.f32.mrf.mxu1  ;;  %v8345_v48 = vpop.f32.mrf.mxu0  ;;  %v4294_v42 = vadd.f32 %v10995_v14, %v8176_v13  ;;  %v5943_v45 = vmax.f32 %v5371_v3, 0.0  ;;  %v6233_v32 = vmax.f32 %v11081_v63, %v6232_v33 }
 0x3bb   :  { %v6239_v10 = vmax.f32 %v6238_v62, %v5939_v34  ;;  %v4680_v12 = vpack.c.bf16 %v4549_v0, %v4548_v25  ;;  %v5941_v50 = vmax.f32 %v5363_v27, 0.0  ;;  %v4286_v29 = vadd.f32 %v10995_v14, %v4285_v7 }
 0x3bc   :  { %v8177_v9 = vpop.f32.mrf.mxu1  ;;  %v5365_v37 = vpop.f32.mrf.mxu0  ;;  %v5374_v51 = vadd.f32 %v11013_v47, %v8345_v48  ;;  %v4554_v22 = vmax.f32 %v4294_v42, 0.0 }
 0x3bd   :  { %v6240_v46 = vmax.f32 %v6239_v10, %v5940_v23  ;;  %v4297_v2 = vadd.f32 %v10995_v14, %v8177_v9  ;;  %8442 = vmatprep.mubr.bf16.mxu0 %v4680_v12  ;;  %v5366_v40 = vadd.f32 %v11013_v47, %v5365_v37  ;;  %v4552_v30 = vmax.f32 %v4286_v29, 0.0 }
 0x3be   :  { %v4288_v26 = vpop.f32.mrf.mxu1  ;;  %v8348_v18 = vpop.f32.mrf.mxu0  ;;  %8443 = vmatmul.mubr.bf16.gmra.mxu0 %v4681_v11  ;;  %v5944_v36 = vmax.f32 %v5374_v51, 0.0  ;;  %v6234_v23 = vrot.slane %v6233_v32, 2 }
 0x3bf   :  { %v6241_v17 = vmax.f32 %v6240_v46, %v5941_v50  ;;  %v4289_v43 = vadd.f32 %v10995_v14, %v4288_v26  ;;  %v4555_v1 = vmax.f32 %v4297_v2, 0.0  ;;  %v5942_v15 = vmax.f32 %v5366_v40, 0.0 }
 0x3c0   :  { %v5378_v52 = vpop.f32.mrf.mxu0  ;;  %v5387_v53 = vadd.f32 %v11013_v47, %v8348_v18  ;;  %v6235_v2 = vmax.f32 %v6233_v32, %v6234_v23 }
 0x3c1   :  { %v4553_v59 = vmax.f32 %v4289_v43, 0.0  ;;  %v6242_v44 = vmax.f32 %v6241_v17, %v5942_v15  ;;  %v5379_v24 = vadd.f32 %v11013_v47, %v5378_v52  ;;  %v4683_v39 = vpack.c.bf16 %v4555_v1, %v4554_v22 }
 0x3c2   :  { %v8349_v41 = vpop.f32.mrf.mxu0  ;;  %v5947_v38 = vmax.f32 %v5387_v53, 0.0  ;;  %v6236_v52 = vrot.slane %v6235_v2, 1 }
 0x3c3   :  { %v4682_v6 = vpack.c.bf16 %v4553_v59, %v4552_v30  ;;  %v6243_v61 = vmax.f32 %v6242_v44, %v5943_v45  ;;  %v5945_v55 = vmax.f32 %v5379_v24, 0.0  ;;  %v5390_v20 = vadd.f32 %v11013_v47, %v8349_v41 }
 0x3c4   :  { %v5381_v5 = vpop.f32.mrf.mxu0 }
 0x3c5   :  { %v5382_v14 = vadd.f32 %v11013_v47, %v5381_v5  ;;  %8446 = vmatprep.mubr.bf16.mxu0 %v4682_v6  ;;  %v6244_v56 = vmax.f32 %v6243_v61, %v5944_v36  ;;  %v5948_v21 = vmax.f32 %v5390_v20, 0.0  ;;  %v6237_v61 = vmax.f32 %v6235_v2, %v6236_v52 }
 0x3c6   :  { %v8352_v35 = vpop.f32.mrf.mxu0  ;;  %8447 = vmatmul.mubr.bf16.gmra.mxu0 %v4683_v39 }
 0x3c7   :  { %v5946_v16 = vmax.f32 %v5382_v14, 0.0  ;;  %v6245_v31 = vmax.f32 %v6244_v56, %v5945_v55  ;;  %v5403_v34 = vadd.f32 %v11013_v47, %v8352_v35  ;;  %v6393_v33 = vpack.c.bf16 %v6237_v61, %v6237_v61 }
 0x3c8   :  { %v5394_v54 = vpop.f32.mrf.mxu0 }
 0x3c9   :  { %v6246_v28 = vmax.f32 %v6245_v31, %v5946_v16  ;;  %v5395_v4 = vadd.f32 %v11013_v47, %v5394_v54  ;;  %v5951_v10 = vmax.f32 %v5403_v34, 0.0 }
 0x3ca   :  { %v8353_v8 = vpop.f32.mrf.mxu0 }
 0x3cb   :  { %v6247_v49 = vmax.f32 %v6246_v28, %v5947_v38  ;;  %v5949_v25 = vmax.f32 %v5395_v4, 0.0  ;;  %v5406_v7 = vadd.f32 %v11013_v47, %v8353_v8 }
 0x3cc   :  { %v5397_v57 = vpop.f32.mrf.mxu0 }
 0x3cd   :  { %v5398_v13 = vadd.f32 %v11013_v47, %v5397_v57  ;;  %v6248_v62 = vmax.f32 %v6247_v49, %v5948_v21  ;;  %v5952_v37 = vmax.f32 %v5406_v7, 0.0 }
 0x3ce   :  { %v8356_v0 = vpop.f32.mrf.mxu0 }
 0x3cf   :  { %v5950_v58 = vmax.f32 %v5398_v13, 0.0  ;;  %v6249_v27 = vmax.f32 %v6248_v62, %v5949_v25  ;;  %v5419_v63 = vadd.f32 %v11013_v47, %v8356_v0  ;;  %v6429_v25 = vunpack.c.l.b16 %v6393_v33 }
 0x3d0   :  { %v5410_v48 = vpop.f32.mrf.mxu0 }
 0x3d1   :  { %v6250_v12 = vmax.f32 %v6249_v27, %v5950_v58  ;;  %v5411_v9 = vadd.f32 %v11013_v47, %v5410_v48  ;;  %v5955_v51 = vmax.f32 %v5419_v63, 0.0 }
 0x3d2   :  { %v8357_v11 = vpop.f32.mrf.mxu0 }
 0x3d3   :  { %v6251_v50 = vmax.f32 %v6250_v12, %v5951_v10  ;;  %v5953_v40 = vmax.f32 %v5411_v9, 0.0  ;;  %v5422_v26 = vadd.f32 %v11013_v47, %v8357_v11 }
 0x3d4   :  { %v5413_v46 = vpop.f32.mrf.mxu0 }
 0x3d5   :  { %v5414_v29 = vadd.f32 %v11013_v47, %v5413_v46  ;;  %v6252_v3 = vmax.f32 %v6251_v50, %v5952_v37  ;;  %v5956_v45 = vmax.f32 %v5422_v26, 0.0 }
 0x3d6   :  { %v8360_v42 = vpop.f32.mrf.mxu0 }
 0x3d7   :  { %v5954_v18 = vmax.f32 %v5414_v29, 0.0  ;;  %v6253_v17 = vrot.slane %v6252_v3, 4  ;;  %v5435_v41 = vadd.f32 %v11013_v47, %v8360_v42 }
 0x3d8   :  { %v5426_v43 = vpop.f32.mrf.mxu0 }
 0x3d9   :  { %v6259_v1 = vmax.f32 %v5953_v40, %v5954_v18  ;;  %v5427_v15 = vadd.f32 %v11013_v47, %v5426_v43  ;;  %v6254_v30 = vmax.f32 %v6252_v3, %v6253_v17  ;;  %v5959_v31 = vmax.f32 %v5435_v41, 0.0  ;;  %v8496_v17 = vld [vmem:[%s11241_s3 + $0x40] sm:$0xff]  }
 0x3da   :  { %v8361_v59 = vpop.f32.mrf.mxu0  ;;  %8465 = vmatpush3.bf16.msra.mxu1 %v8496_v17 }
 0x3db   :  { %v6260_v22 = vmax.f32 %v6259_v1, %v5955_v51  ;;  %v6255_v44 = vrot.slane %v6254_v30, 2  ;;  %v5957_v6 = vmax.f32 %v5427_v15, 0.0  ;;  %v5438_v55 = vadd.f32 %v11013_v47, %v8361_v59 }
 0x3dc   :  { %v5429_v24 = vpop.f32.mrf.mxu0 }
 0x3dd   :  { %v6261_v36 = vmax.f32 %v6260_v22, %v5956_v45  ;;  %v5430_v39 = vadd.f32 %v11013_v47, %v5429_v24  ;;  %v6256_v5 = vmax.f32 %v6254_v30, %v6255_v44  ;;  %v5960_v4 = vmax.f32 %v5438_v55, 0.0 }
 0x3de   :  { %v8364_v14 = vpop.f32.mrf.mxu0 }
 0x3df   :  { %v6262_v53 = vmax.f32 %v6261_v36, %v5957_v6  ;;  %v5958_v56 = vmax.f32 %v5430_v39, 0.0  ;;  %v6257_v35 = vrot.slane %v6256_v5, 1  ;;  %v5451_v57 = vadd.f32 %v11013_v47, %v8364_v14 }
 0x3e0   :  { %v5442_v16 = vpop.f32.mrf.mxu0 }
 0x3e1   :  { %v6263_v20 = vmax.f32 %v6262_v53, %v5958_v56  ;;  %v5443_v54 = vadd.f32 %v11013_v47, %v5442_v16  ;;  %v6258_v38 = vmax.f32 %v6256_v5, %v6257_v35  ;;  %v5963_v10 = vmax.f32 %v5451_v57, 0.0 }
 0x3e2   :  { %v8365_v28 = vpop.f32.mrf.mxu0 }
 0x3e3   :  { %v6264_v8 = vmax.f32 %v6263_v20, %v5959_v31  ;;  %v6394_v21 = vpack.c.bf16 %v6258_v38, %v6258_v38  ;;  %v5961_v13 = vmax.f32 %v5443_v54, 0.0  ;;  %v5454_v27 = vadd.f32 %v11013_v47, %v8365_v28 }
 0x3e4   :  { %v5445_v49 = vpop.f32.mrf.mxu0 }
 0x3e5   :  { %v6265_v32 = vmax.f32 %v6264_v8, %v5960_v4  ;;  %v5446_v34 = vadd.f32 %v11013_v47, %v5445_v49  ;;  %v6430_v62 = vunpack.c.l.b16 %v6394_v21  ;;  %v5964_v37 = vmax.f32 %v5454_v27, 0.0 }
 0x3e6   :  { %v8368_v0 = vpop.f32.mrf.mxu0 }
 0x3e7   :  { %v6266_v58 = vmax.f32 %v6265_v32, %v5961_v13  ;;  %v5962_v7 = vmax.f32 %v5446_v34, 0.0  ;;  %v11117_v48 = vsel %vm6437_vm3, %v6430_v62, %v6429_v25  ;;  %v5467_v63 = vadd.f32 %v11013_v47, %v8368_v0 }
 0x3e8   :  { %v5458_v23 = vpop.f32.mrf.mxu0 }
 0x3e9   :  { %v6267_v12 = vmax.f32 %v6266_v58, %v5962_v7  ;;  %v5459_v11 = vadd.f32 %v11013_v47, %v5458_v23  ;;  %v5967_v51 = vmax.f32 %v5467_v63, 0.0 }
 0x3ea   :  { %v8369_v9 = vpop.f32.mrf.mxu0 }
 0x3eb   :  { %v6268_v50 = vmax.f32 %v6267_v12, %v5963_v10  ;;  %v5965_v29 = vmax.f32 %v5459_v11, 0.0  ;;  %v5470_v26 = vadd.f32 %v11013_v47, %v8369_v9 }
 0x3ec   :  { %v5461_v46 = vpop.f32.mrf.mxu0 }
 0x3ed   :  { %v6269_v2 = vmax.f32 %v6268_v50, %v5964_v37  ;;  %v5462_v3 = vadd.f32 %v11013_v47, %v5461_v46  ;;  %v5968_v52 = vmax.f32 %v5470_v26, 0.0 }
 0x3ee   :  { %v8372_v42 = vpop.f32.mrf.mxu0 }
 0x3ef   :  { %v6270_v40 = vmax.f32 %v6269_v2, %v5965_v29  ;;  %v5966_v18 = vmax.f32 %v5462_v3, 0.0  ;;  %v5483_v44 = vadd.f32 %v11013_v47, %v8372_v42 }
 0x3f0   :  { %v5474_v43 = vpop.f32.mrf.mxu0 }
 0x3f1   :  { %v6271_v1 = vmax.f32 %v6270_v40, %v5966_v18  ;;  %v5475_v59 = vadd.f32 %v11013_v47, %v5474_v43  ;;  %v5971_v53 = vmax.f32 %v5483_v44, 0.0 }
 0x3f2   :  { %v8373_v15 = vpop.f32.mrf.mxu0 }
 0x3f3   :  { %v6272_v30 = vmax.f32 %v6271_v1, %v5967_v51  ;;  %v5969_v36 = vmax.f32 %v5475_v59, 0.0  ;;  %v5486_v39 = vadd.f32 %v11013_v47, %v8373_v15 }
 0x3f4   :  { %v5477_v45 = vpop.f32.mrf.mxu0 }
 0x3f5   :  { %v6273_v22 = vmax.f32 %v6272_v30, %v5968_v52  ;;  %v5478_v24 = vadd.f32 %v11013_v47, %v5477_v45  ;;  %v5972_v31 = vmax.f32 %v5486_v39, 0.0 }
 0x3f6   :  { %v8376_v41 = vpop.f32.mrf.mxu0 }
 0x3f7   :  { %v6274_v6 = vrot.slane %v6273_v22, 4  ;;  %v5970_v61 = vmax.f32 %v5478_v24, 0.0  ;;  %v5499_v54 = vadd.f32 %v11013_v47, %v8376_v41 }
 0x3f8   :  { %v5490_v5 = vpop.f32.mrf.mxu0 }
 0x3f9   :  { %v6275_v14 = vmax.f32 %v6273_v22, %v6274_v6  ;;  %v6280_v55 = vmax.f32 %v5969_v36, %v5970_v61  ;;  %v5491_v56 = vadd.f32 %v11013_v47, %v5490_v5  ;;  %v5975_v62 = vmax.f32 %v5499_v54, 0.0 }
 0x3fa   :  { %v8377_v35 = vpop.f32.mrf.mxu0 }
 0x3fb   :  { %v6276_v16 = vrot.slane %v6275_v14, 2  ;;  %v6281_v20 = vmax.f32 %v6280_v55, %v5971_v53  ;;  %v5973_v28 = vmax.f32 %v5491_v56, 0.0  ;;  %v5502_v13 = vadd.f32 %v11013_v47, %v8377_v35 }
 0x3fc   :  { %v5493_v33 = vpop.f32.mrf.mxu0 }
 0x3fd   :  { %v6277_v38 = vmax.f32 %v6275_v14, %v6276_v16  ;;  %v6282_v4 = vmax.f32 %v6281_v20, %v5972_v31  ;;  %v5494_v8 = vadd.f32 %v11013_v47, %v5493_v33  ;;  %v5976_v23 = vmax.f32 %v5502_v13, 0.0 }
 0x3fe   :  { %v8380_v21 = vpop.f32.mrf.mxu0 }
 0x3ff   :  { %v6278_v49 = vrot.slane %v6277_v38, 1  ;;  %v6283_v57 = vmax.f32 %v6282_v4, %v5973_v28  ;;  %v5974_v32 = vmax.f32 %v5494_v8, 0.0  ;;  %v5515_v12 = vadd.f32 %v11013_v47, %v8380_v21 }
 0x400   :  { %v5506_v34 = vpop.f32.mrf.mxu0 }
 0x401   :  { %v6279_v25 = vmax.f32 %v6277_v38, %v6278_v49  ;;  %v6284_v0 = vmax.f32 %v6283_v57, %v5974_v32  ;;  %v5507_v58 = vadd.f32 %v11013_v47, %v5506_v34  ;;  %v5979_v26 = vmax.f32 %v5515_v12, 0.0 }
 0x402   :  { %v8381_v27 = vpop.f32.mrf.mxu0 }
 0x403   :  { %v6395_v7 = vpack.c.bf16 %v6279_v25, %v6279_v25  ;;  %v6285_v10 = vmax.f32 %v6284_v0, %v5975_v62  ;;  %v5977_v37 = vmax.f32 %v5507_v58, 0.0  ;;  %v5518_v3 = vadd.f32 %v11013_v47, %v8381_v27 }
 0x404   :  { %v5509_v11 = vpop.f32.mrf.mxu0 }
 0x405   :  { %v6431_v9 = vunpack.c.l.b16 %v6395_v7  ;;  %v6286_v50 = vmax.f32 %v6285_v10, %v5976_v23  ;;  %v5510_v46 = vadd.f32 %v11013_v47, %v5509_v11  ;;  %v5980_v51 = vmax.f32 %v5518_v3, 0.0 }
 0x406   :  { %v8384_v63 = vpop.f32.mrf.mxu0 }
 0x407   :  { %v11139_v29 = vsel %vm6439_vm4, %v6431_v9, %v11117_v48  ;;  %v6287_v2 = vmax.f32 %v6286_v50, %v5977_v37  ;;  %v5978_v42 = vmax.f32 %v5510_v46, 0.0  ;;  %v5531_v52 = vadd.f32 %v11013_v47, %v8384_v63 }
 0x408   :  { %v5522_v40 = vpop.f32.mrf.mxu0 }
 0x409   :  { %v6288_v18 = vmax.f32 %v6287_v2, %v5978_v42  ;;  %v5523_v17 = vadd.f32 %v11013_v47, %v5522_v40  ;;  %v5983_v6 = vmax.f32 %v5531_v52, 0.0 }
 0x40a   :  { %v8385_v43 = vpop.f32.mrf.mxu0 }
 0x40b   :  { %v6289_v1 = vmax.f32 %v6288_v18, %v5979_v26  ;;  %v5981_v30 = vmax.f32 %v5523_v17, 0.0  ;;  %v5534_v44 = vadd.f32 %v11013_v47, %v8385_v43  ;;  %v11158_v26 = vld [vmem:[%s11242_s4 + $0x2] ss:$0 sm:$0xff] }
 0x40c   :  { %v5525_v15 = vpop.f32.mrf.mxu0 }
 0x40d   :  { %v6290_v59 = vmax.f32 %v6289_v1, %v5980_v51  ;;  %v5526_v48 = vadd.f32 %v11013_v47, %v5525_v15  ;;  %v5984_v61 = vmax.f32 %v5534_v44, 0.0 }
 0x40e   :  { %v8388_v45 = vpop.f32.mrf.mxu0 }
 0x40f   :  { %v6291_v22 = vmax.f32 %v6290_v59, %v5981_v30  ;;  %v5982_v24 = vmax.f32 %v5526_v48, 0.0  ;;  %v5547_v56 = vadd.f32 %v11013_v47, %v8388_v45 }
 0x410   :  { %v5538_v41 = vpop.f32.mrf.mxu0 }
 0x411   :  { %v6292_v36 = vmax.f32 %v6291_v22, %v5982_v24  ;;  %v5539_v14 = vadd.f32 %v11013_v47, %v5538_v41  ;;  %v5987_v4 = vmax.f32 %v5547_v56, 0.0 }
 0x412   :  { %v8389_v39 = vpop.f32.mrf.mxu0 }
 0x413   :  { %v6293_v5 = vmax.f32 %v6292_v36, %v5983_v6  ;;  %v5985_v20 = vmax.f32 %v5539_v14, 0.0  ;;  %v5550_v54 = vadd.f32 %v11013_v47, %v8389_v39 }
 0x414   :  { %v5541_v53 = vpop.f32.mrf.mxu0 }
 0x415   :  { %v6294_v55 = vmax.f32 %v6293_v5, %v5984_v61  ;;  %v5542_v35 = vadd.f32 %v11013_v47, %v5541_v53  ;;  %v5988_v13 = vmax.f32 %v5550_v54, 0.0 }
 0x416   :  { %v8392_v16 = vpop.f32.mrf.mxu0 }
 0x417   :  { %v6295_v31 = vrot.slane %v6294_v55, 4  ;;  %v5986_v33 = vmax.f32 %v5542_v35, 0.0  ;;  %v5563_v34 = vadd.f32 %v11013_v47, %v8392_v16 }
 0x418   :  { %v5554_v38 = vpop.f32.mrf.mxu0 }
 0x419   :  { %v6296_v28 = vmax.f32 %v6294_v55, %v6295_v31  ;;  %v6301_v8 = vmax.f32 %v5985_v20, %v5986_v33  ;;  %v5555_v21 = vadd.f32 %v11013_v47, %v5554_v38  ;;  %v5991_v50 = vmax.f32 %v5563_v34, 0.0 }
 0x41a   :  { %v8393_v49 = vpop.f32.mrf.mxu0 }
 0x41b   :  { %v6297_v57 = vrot.slane %v6296_v28, 2  ;;  %v6302_v32 = vmax.f32 %v6301_v8, %v5987_v4  ;;  %v5989_v0 = vmax.f32 %v5555_v21, 0.0  ;;  %v5566_v12 = vadd.f32 %v11013_v47, %v8393_v49 }
 0x41c   :  { %v5557_v25 = vpop.f32.mrf.mxu0 }
 0x41d   :  { %v6298_v62 = vmax.f32 %v6296_v28, %v6297_v57  ;;  %v6303_v58 = vmax.f32 %v6302_v32, %v5988_v13  ;;  %v5558_v27 = vadd.f32 %v11013_v47, %v5557_v25  ;;  %v5992_v42 = vmax.f32 %v5566_v12, 0.0 }
 0x41e   :  { %v8396_v7 = vpop.f32.mrf.mxu0 }
 0x41f   :  { %v6299_v23 = vrot.slane %v6298_v62, 1  ;;  %v6304_v10 = vmax.f32 %v6303_v58, %v5989_v0  ;;  %v5990_v11 = vmax.f32 %v5558_v27, 0.0  ;;  %v5579_v18 = vadd.f32 %v11158_v26, %v8396_v7 }
 0x420   :  { %v5570_v9 = vpop.f32.mrf.mxu0 }
 0x421   :  { %v6300_v37 = vmax.f32 %v6298_v62, %v6299_v23  ;;  %v6305_v46 = vmax.f32 %v6304_v10, %v5990_v11  ;;  %v5571_v63 = vadd.f32 %v11013_v47, %v5570_v9  ;;  %v5995_v22 = vmax.f32 %v5579_v18, 0.0 }
 0x422   :  { %v8397_v2 = vpop.f32.mrf.mxu0 }
 0x423   :  { %v6396_v3 = vpack.c.bf16 %v6300_v37, %v6300_v37  ;;  %v6306_v40 = vmax.f32 %v6305_v46, %v5991_v50  ;;  %v5993_v51 = vmax.f32 %v5571_v63, 0.0  ;;  %v5582_v59 = vadd.f32 %v11158_v26, %v8397_v2 }
 0x424   :  { %v5573_v17 = vpop.f32.mrf.mxu0 }
 0x425   :  { %v6432_v43 = vunpack.c.l.b16 %v6396_v3  ;;  %v6307_v1 = vmax.f32 %v6306_v40, %v5992_v42  ;;  %v5574_v15 = vadd.f32 %v11158_v26, %v5573_v17  ;;  %v5996_v6 = vmax.f32 %v5582_v59, 0.0 }
 0x426   :  { %v8400_v52 = vpop.f32.mrf.mxu0 }
 0x427   :  { %v11164_v47 = vsel %vm6441_vm5, %v6432_v43, %v11139_v29  ;;  %v6308_v30 = vmax.f32 %v6307_v1, %v5993_v51  ;;  %v5994_v48 = vmax.f32 %v5574_v15, 0.0  ;;  %v5595_v61 = vadd.f32 %v11158_v26, %v8400_v52 }
 0x428   :  { %v5586_v45 = vpop.f32.mrf.mxu0 }
 0x429   :  { %v6309_v44 = vmax.f32 %v6308_v30, %v5994_v48  ;;  %v5587_v24 = vadd.f32 %v11158_v26, %v5586_v45  ;;  %v5999_v16 = vmax.f32 %v5595_v61, 0.0 }
 0x42a   :  { %v8401_v41 = vpop.f32.mrf.mxu0 }
 0x42b   :  { %v6310_v36 = vmax.f32 %v6309_v44, %v5995_v22  ;;  %v5997_v29 = vmax.f32 %v5587_v24, 0.0  ;;  %v5598_v56 = vadd.f32 %v11158_v26, %v8401_v41 }
 0x42c   :  { %v5589_v39 = vpop.f32.mrf.mxu0 }
 0x42d   :  { %v6311_v5 = vmax.f32 %v6310_v36, %v5996_v6  ;;  %v5590_v14 = vadd.f32 %v11158_v26, %v5589_v39  ;;  %v6000_v54 = vmax.f32 %v5598_v56, 0.0 }
 0x42e   :  { %v8404_v53 = vpop.f32.mrf.mxu0 }
 0x42f   :  { %v6312_v55 = vmax.f32 %v6311_v5, %v5997_v29  ;;  %v5998_v19 = vmax.f32 %v5590_v14, 0.0  ;;  %v5611_v8 = vadd.f32 %v11158_v26, %v8404_v53 }
 0x430   :  { %v5602_v35 = vpop.f32.mrf.mxu0 }
 0x431   :  { %v6313_v31 = vmax.f32 %v6312_v55, %v5998_v19  ;;  %v5603_v38 = vadd.f32 %v11158_v26, %v5602_v35  ;;  %v6003_v0 = vmax.f32 %v5611_v8, 0.0 }
 0x432   :  { %v8405_v20 = vpop.f32.mrf.mxu0 }
 0x433   :  { %v6314_v33 = vmax.f32 %v6313_v31, %v5999_v16  ;;  %v6001_v13 = vmax.f32 %v5603_v38, 0.0  ;;  %v5614_v32 = vadd.f32 %v11158_v26, %v8405_v20 }
 0x434   :  { %v5605_v28 = vpop.f32.mrf.mxu0 }
 0x435   :  { %v6315_v4 = vmax.f32 %v6314_v33, %v6000_v54  ;;  %v5606_v21 = vadd.f32 %v11158_v26, %v5605_v28  ;;  %v6004_v10 = vmax.f32 %v5614_v32, 0.0 }
 0x436   :  { %v8408_v49 = vpop.f32.mrf.mxu0 }
 0x437   :  { %v6316_v57 = vrot.slane %v6315_v4, 4  ;;  %v6002_v34 = vmax.f32 %v5606_v21, 0.0  ;;  %v5627_v11 = vadd.f32 %v11158_v26, %v8408_v49 }
 0x438   :  { %v5618_v25 = vpop.f32.mrf.mxu0 }
 0x439   :  { %v6317_v62 = vmax.f32 %v6315_v4, %v6316_v57  ;;  %v6322_v58 = vmax.f32 %v6001_v13, %v6002_v34  ;;  %v5619_v27 = vadd.f32 %v11158_v26, %v5618_v25  ;;  %v6007_v51 = vmax.f32 %v5627_v11, 0.0 }
 0x43a   :  { %v8409_v7 = vpop.f32.mrf.mxu0 }
 0x43b   :  { %v6318_v23 = vrot.slane %v6317_v62, 2  ;;  %v6323_v12 = vmax.f32 %v6322_v58, %v6003_v0  ;;  %v6005_v50 = vmax.f32 %v5619_v27, 0.0  ;;  %v5630_v40 = vadd.f32 %v11158_v26, %v8409_v7 }
 0x43c   :  { %v5621_v9 = vpop.f32.mrf.mxu0 }
 0x43d   :  { %v6319_v37 = vmax.f32 %v6317_v62, %v6318_v23  ;;  %v6324_v46 = vmax.f32 %v6323_v12, %v6004_v10  ;;  %v5622_v63 = vadd.f32 %v11158_v26, %v5621_v9  ;;  %v6008_v59 = vmax.f32 %v5630_v40, 0.0 }
 0x43e   :  { %v8412_v2 = vpop.f32.mrf.mxu0 }
 0x43f   :  { %v6320_v3 = vrot.slane %v6319_v37, 1  ;;  %v6325_v42 = vmax.f32 %v6324_v46, %v6005_v50  ;;  %v6006_v18 = vmax.f32 %v5622_v63, 0.0  ;;  %v5643_v45 = vadd.f32 %v11158_v26, %v8412_v2 }
 0x440   :  { %v5634_v17 = vpop.f32.mrf.mxu0 }
 0x441   :  { %v6321_v43 = vmax.f32 %v6319_v37, %v6320_v3  ;;  %v6326_v1 = vmax.f32 %v6325_v42, %v6006_v18  ;;  %v5635_v15 = vadd.f32 %v11158_v26, %v5634_v17  ;;  %v6011_v53 = vmax.f32 %v5643_v45, 0.0 }
 0x442   :  { %v8413_v52 = vpop.f32.mrf.mxu0 }
 0x443   :  { %v6397_v30 = vpack.c.bf16 %v6321_v43, %v6321_v43  ;;  %v6327_v48 = vmax.f32 %v6326_v1, %v6007_v51  ;;  %v6009_v24 = vmax.f32 %v5635_v15, 0.0  ;;  %v5646_v29 = vadd.f32 %v11158_v26, %v8413_v52 }
 0x444   :  { %v5637_v22 = vpop.f32.mrf.mxu0 }
 0x445   :  { %v6433_v44 = vunpack.c.l.b16 %v6397_v30  ;;  %v6328_v41 = vmax.f32 %v6327_v48, %v6008_v59  ;;  %v5638_v6 = vadd.f32 %v11158_v26, %v5637_v22  ;;  %v6012_v35 = vmax.f32 %v5646_v29, 0.0 }
 0x446   :  { %v8416_v36 = vpop.f32.mrf.mxu0 }
 0x447   :  { %v11185_v39 = vsel %vm6443_vm6, %v6433_v44, %v11164_v47  ;;  %v6329_v61 = vmax.f32 %v6328_v41, %v6009_v24  ;;  %v6010_v5 = vmax.f32 %v5638_v6, 0.0  ;;  %v5659_v20 = vadd.f32 %v11158_v26, %v8416_v36 }
 0x448   :  { %v5650_v14 = vpop.f32.mrf.mxu0 }
 0x449   :  { %v6330_v55 = vmax.f32 %v6329_v61, %v6010_v5  ;;  %v5651_v56 = vadd.f32 %v11158_v26, %v5650_v14  ;;  %v6015_v49 = vmax.f32 %v5659_v20, 0.0 }
 0x44a   :  { %v8417_v19 = vpop.f32.mrf.mxu0 }
 0x44b   :  { %v6331_v16 = vmax.f32 %v6330_v55, %v6011_v53  ;;  %v6013_v54 = vmax.f32 %v5651_v56, 0.0  ;;  %v5662_v4 = vadd.f32 %v11158_v26, %v8417_v19 }
 0x44c   :  { %v5653_v31 = vpop.f32.mrf.mxu0 }
 0x44d   :  { %v6332_v33 = vmax.f32 %v6331_v16, %v6012_v35  ;;  %v5654_v47 = vadd.f32 %v11158_v26, %v5653_v31  ;;  %v6016_v32 = vmax.f32 %v5662_v4, 0.0 }
 0x44e   :  { %v8420_v38 = vpop.f32.mrf.mxu0 }
 0x44f   :  { %v6333_v28 = vmax.f32 %v6332_v33, %v6013_v54  ;;  %v6014_v8 = vmax.f32 %v5654_v47, 0.0  ;;  %v5675_v58 = vadd.f32 %v11158_v26, %v8420_v38 }
 0x450   :  { %v5666_v21 = vpop.f32.mrf.mxu0 }
 0x451   :  { %v6334_v57 = vmax.f32 %v6333_v28, %v6014_v8  ;;  %v5667_v25 = vadd.f32 %v11158_v26, %v5666_v21  ;;  %v6019_v50 = vmax.f32 %v5675_v58, 0.0 }
 0x452   :  { %v8421_v13 = vpop.f32.mrf.mxu0 }
 0x453   :  { %v6335_v34 = vmax.f32 %v6334_v57, %v6015_v49  ;;  %v6017_v10 = vmax.f32 %v5667_v25, 0.0  ;;  %v5678_v12 = vadd.f32 %v11158_v26, %v8421_v13 }
 0x454   :  { %v5669_v62 = vpop.f32.mrf.mxu0 }
 0x455   :  { %v6336_v0 = vmax.f32 %v6335_v34, %v6016_v32  ;;  %v5670_v27 = vadd.f32 %v11158_v26, %v5669_v62  ;;  %v6020_v42 = vmax.f32 %v5678_v12, 0.0 }
 0x456   :  { %v8424_v7 = vpop.f32.mrf.mxu0 }
 0x457   :  { %v6337_v23 = vrot.slane %v6336_v0, 4  ;;  %v6018_v11 = vmax.f32 %v5670_v27, 0.0  ;;  %v5691_v18 = vadd.f32 %v11158_v26, %v8424_v7 }
 0x458   :  { %v5682_v9 = vpop.f32.mrf.mxu0 }
 0x459   :  { %v6338_v37 = vmax.f32 %v6336_v0, %v6337_v23  ;;  %v6343_v46 = vmax.f32 %v6017_v10, %v6018_v11  ;;  %v5683_v63 = vadd.f32 %v11158_v26, %v5682_v9  ;;  %v6023_v24 = vmax.f32 %v5691_v18, 0.0 }
 0x45a   :  { %v8425_v2 = vpop.f32.mrf.mxu0 }
 0x45b   :  { %v6339_v3 = vrot.slane %v6338_v37, 2  ;;  %v6344_v40 = vmax.f32 %v6343_v46, %v6019_v50  ;;  %v6021_v51 = vmax.f32 %v5683_v63, 0.0  ;;  %v5694_v48 = vadd.f32 %v11158_v26, %v8425_v2 }
 0x45c   :  { %v5685_v17 = vpop.f32.mrf.mxu0 }
 0x45d   :  { %v6340_v43 = vmax.f32 %v6338_v37, %v6339_v3  ;;  %v6345_v1 = vmax.f32 %v6344_v40, %v6020_v42  ;;  %v5686_v15 = vadd.f32 %v11158_v26, %v5685_v17  ;;  %v6024_v29 = vmax.f32 %v5694_v48, 0.0 }
 0x45e   :  { %v8428_v52 = vpop.f32.mrf.mxu0 }
 0x45f   :  { %v6341_v30 = vrot.slane %v6340_v43, 1  ;;  %v6346_v59 = vmax.f32 %v6345_v1, %v6021_v51  ;;  %v6022_v45 = vmax.f32 %v5686_v15, 0.0  ;;  %v5707_v54 = vadd.f32 %v11158_v26, %v8428_v52 }
 0x460   :  { %v5698_v22 = vpop.f32.mrf.mxu0 }
 0x461   :  { %v6342_v44 = vmax.f32 %v6340_v43, %v6341_v30  ;;  %v6347_v41 = vmax.f32 %v6346_v59, %v6022_v45  ;;  %v5699_v6 = vadd.f32 %v11158_v26, %v5698_v22  ;;  %v6027_v28 = vmax.f32 %v5707_v54, 0.0 }
 0x462   :  { %v8429_v36 = vpop.f32.mrf.mxu0 }
 0x463   :  { %v6398_v61 = vpack.c.bf16 %v6342_v44, %v6342_v44  ;;  %v6348_v5 = vmax.f32 %v6347_v41, %v6023_v24  ;;  %v6025_v55 = vmax.f32 %v5699_v6, 0.0  ;;  %v5710_v4 = vadd.f32 %v11158_v26, %v8429_v36 }
 0x464   :  { %v5701_v14 = vpop.f32.mrf.mxu0 }
 0x465   :  { %v6434_v53 = vunpack.c.l.b16 %v6398_v61  ;;  %v6349_v56 = vmax.f32 %v6348_v5, %v6024_v29  ;;  %v5702_v19 = vadd.f32 %v11158_v26, %v5701_v14  ;;  %v6028_v57 = vmax.f32 %v5710_v4, 0.0 }
 0x466   :  { %v8432_v35 = vpop.f32.mrf.mxu0 }
 0x467   :  { %v11204_v16 = vsel %vm6445_vm7, %v6434_v53, %v11185_v39  ;;  %v6350_v31 = vmax.f32 %v6349_v56, %v6025_v55  ;;  %v6026_v20 = vmax.f32 %v5702_v19, 0.0  ;;  %v5723_v50 = vadd.f32 %v11158_v26, %v8432_v35 }
 0x468   :  { %v5714_v33 = vpop.f32.mrf.mxu0 }
 0x469   :  { %v6351_v47 = vmax.f32 %v6350_v31, %v6026_v20  ;;  %v5715_v13 = vadd.f32 %v11158_v26, %v5714_v33  ;;  %v6031_v43 = vmax.f32 %v5723_v50, 0.0 }
 0x46a   :  { %v8433_v38 = vpop.f32.mrf.mxu0 }
 0x46b   :  { %v6352_v21 = vmax.f32 %v6351_v47, %v6027_v28  ;;  %v6029_v0 = vmax.f32 %v5715_v13, 0.0  ;;  %v5726_v51 = vadd.f32 %v11158_v26, %v8433_v38 }
 0x46c   :  { %v5717_v8 = vpop.f32.mrf.mxu0 }
 0x46d   :  { %v6353_v34 = vmax.f32 %v6352_v21, %v6028_v57  ;;  %v5718_v39 = vadd.f32 %v11158_v26, %v5717_v8  ;;  %v6032_v41 = vmax.f32 %v5726_v51, 0.0 }
 0x46e   :  { %v8436_v49 = vpop.f32.mrf.mxu0 }
 0x46f   :  { %v5739_v27 = vadd.f32 %v11158_v26, %v8436_v49  ;;  %v6354_v23 = vmax.f32 %v6353_v34, %v6029_v0  ;;  %v6030_v10 = vmax.f32 %v5718_v39, 0.0 }
 0x470   :  { %v5730_v32 = vpop.f32.mrf.mxu0 }
 0x471   :  { %v5731_v62 = vadd.f32 %v11158_v26, %v5730_v32  ;;  %v6035_v63 = vmax.f32 %v5739_v27, 0.0  ;;  %v6355_v42 = vmax.f32 %v6354_v23, %v6030_v10 }
 0x472   :  { %v8437_v25 = vpop.f32.mrf.mxu0 }
 0x473   :  { %v6033_v11 = vmax.f32 %v5731_v62, 0.0  ;;  %v5742_v9 = vadd.f32 %v11158_v26, %v8437_v25  ;;  %v6356_v48 = vmax.f32 %v6355_v42, %v6031_v43 }
 0x474   :  { %v5733_v58 = vpop.f32.mrf.mxu0 }
 0x475   :  { %v5734_v7 = vadd.f32 %v11158_v26, %v5733_v58  ;;  %v6036_v18 = vmax.f32 %v5742_v9, 0.0  ;;  %v6357_v5 = vmax.f32 %v6356_v48, %v6032_v41  ;;  %v6985_v48 = vld [vmem:[%s11242_s4 + $0x3] ss:$0 sm:$0xff] }
 0x476   :  { %v8440_v12 = vpop.f32.mrf.mxu0 }
 0x477   :  { %v6034_v37 = vmax.f32 %v5734_v7, 0.0  ;;  %v5755_v15 = vadd.f32 %v11158_v26, %v8440_v12  ;;  %v6358_v54 = vrot.slane %v6357_v5, 4 }
 0x478   :  { %v5746_v46 = vpop.f32.mrf.mxu0 }
 0x479   :  { %v6364_v2 = vmax.f32 %v6033_v11, %v6034_v37  ;;  %v5747_v3 = vadd.f32 %v11158_v26, %v5746_v46  ;;  %v6039_v36 = vmax.f32 %v5755_v15, 0.0  ;;  %v6359_v57 = vmax.f32 %v6357_v5, %v6358_v54 }
 0x47a   :  { %v8441_v40 = vpop.f32.mrf.mxu0 }
 0x47b   :  { %v6365_v17 = vmax.f32 %v6364_v2, %v6035_v63  ;;  %v6037_v52 = vmax.f32 %v5747_v3, 0.0  ;;  %v5758_v44 = vadd.f32 %v11158_v26, %v8441_v40  ;;  %v6360_v27 = vrot.slane %v6359_v57, 2 }
 0x47c   :  { %v5749_v1 = vpop.f32.mrf.mxu0 }
 0x47d   :  { %v6366_v30 = vmax.f32 %v6365_v17, %v6036_v18  ;;  %v5750_v59 = vadd.f32 %v11158_v26, %v5749_v1  ;;  %v6040_v53 = vmax.f32 %v5758_v44, 0.0  ;;  %v6361_v9 = vmax.f32 %v6359_v57, %v6360_v27 }
 0x47e   :  { %v8444_v45 = vpop.f32.mrf.mxu0 }
 0x47f   :  { %v6367_v22 = vmax.f32 %v6366_v30, %v6037_v52  ;;  %v6038_v24 = vmax.f32 %v5750_v59, 0.0  ;;  %v5771_v19 = vadd.f32 %v11158_v26, %v8444_v45  ;;  %v6362_v63 = vrot.slane %v6361_v9, 1 }
 0x480   :  { %v5762_v6 = vpop.f32.mrf.mxu0 }
 0x481   :  { %v6368_v61 = vmax.f32 %v6367_v22, %v6038_v24  ;;  %v5763_v29 = vadd.f32 %v11158_v26, %v5762_v6  ;;  %v6043_v8 = vmax.f32 %v5771_v19, 0.0  ;;  %v6363_v42 = vmax.f32 %v6361_v9, %v6362_v63 }
 0x482   :  { %v8445_v14 = vpop.f32.mrf.mxu0 }
 0x483   :  { %v6369_v55 = vmax.f32 %v6368_v61, %v6039_v36  ;;  %v6041_v35 = vmax.f32 %v5763_v29, 0.0  ;;  %v5774_v38 = vadd.f32 %v11158_v26, %v8445_v14  ;;  %v6399_v17 = vpack.c.bf16 %v6363_v42, %v6363_v42 }
 0x484   :  { %v5765_v56 = vpop.f32.mrf.mxu0 }
 0x485   :  { %v6370_v31 = vmax.f32 %v6369_v55, %v6040_v53  ;;  %v5766_v20 = vadd.f32 %v11158_v26, %v5765_v56  ;;  %v6044_v32 = vmax.f32 %v5774_v38, 0.0  ;;  %v6435_v1 = vunpack.c.l.b16 %v6399_v17 }
 0x486   :  { %v8448_v33 = vpop.f32.mrf.mxu0 }
 0x487   :  { %v6371_v47 = vmax.f32 %v6370_v31, %v6041_v35  ;;  %v6042_v28 = vmax.f32 %v5766_v20, 0.0  ;;  %v5787_v25 = vadd.f32 %v11158_v26, %v8448_v33 }
 0x488   :  { %v5778_v4 = vpop.f32.mrf.mxu0 }
 0x489   :  { %v6372_v21 = vmax.f32 %v6371_v47, %v6042_v28  ;;  %v5779_v49 = vadd.f32 %v11158_v26, %v5778_v4  ;;  %v6047_v12 = vmax.f32 %v5787_v25, 0.0 }
 0x48a   :  { %v8449_v13 = vpop.f32.mrf.mxu0 }
 0x48b   :  { %v6373_v34 = vmax.f32 %v6372_v21, %v6043_v8  ;;  %v6045_v62 = vmax.f32 %v5779_v49, 0.0  ;;  %v5790_v23 = vadd.f32 %v11158_v26, %v8449_v13 }
 0x48c   :  { %v5781_v39 = vpop.f32.mrf.mxu0 }
 0x48d   :  { %v6374_v0 = vmax.f32 %v6373_v34, %v6044_v32  ;;  %v5782_v58 = vadd.f32 %v11158_v26, %v5781_v39  ;;  %v6048_v37 = vmax.f32 %v5790_v23, 0.0  ;;  %v6456_v26 = vsel %vm6447_vm8, %v6435_v1, %v11204_v16 }
 0x48f   :  { %v6375_v7 = vmax.f32 %v6374_v0, %v6045_v62  ;;  %v6046_v10 = vmax.f32 %v5782_v58, 0.0 }
 0x491   :  { %v6376_v11 = vmax.f32 %v6375_v7, %v6046_v10 }
 0x493   :  { %v6377_v50 = vmax.f32 %v6376_v11, %v6047_v12 }
 0x495   :  { %v6378_v46 = vmax.f32 %v6377_v50, %v6048_v37 }
 0x497   :  { %v6379_v2 = vrot.slane %v6378_v46, 4 }
 0x499   :  { %v6380_v3 = vmax.f32 %v6378_v46, %v6379_v2 }
 0x49b   :  { %v6381_v40 = vrot.slane %v6380_v3, 2 }
 0x49d   :  { %v6382_v18 = vmax.f32 %v6380_v3, %v6381_v40 }
 0x49f   :  { %v6383_v43 = vrot.slane %v6382_v18, 1 }
 0x4a1   :  { %v6384_v51 = vmax.f32 %v6382_v18, %v6383_v43 }
 0x4a3   :  { %v6400_v15 = vpack.c.bf16 %v6384_v51, %v6384_v51 }
 0x4a5   :  { %v6436_v52 = vunpack.c.l.b16 %v6400_v15 }
 0x4a7   :  { %v6457_v30 = vsel %vm6449_vm9, %v6436_v52, %v6456_v26 }
 0x4a8   :  { %v6458_v59 = vpack.c.b16 %v6457_v30, %v11062_v60 }
 0x4aa   :  { %8467 = vmatmul.mubr.bf16.vlgmr.msra.gmra.mxu1 %v6458_v59 }
 0x56a   :  { %v6542_v45 = vpop.f32.mrf.mxu1 }
 0x56b   :  { %v6543_v22 = vadd.f32 %v6985_v48, %v6542_v45 }
 0x56c   :  { %v8468_v44 = vpop.f32.mrf.mxu1 }
 0x56d   :  { %v6549_v24 = vmax.f32 %v6543_v22, 0.0 }
 0x56e   :  { %v6545_v41 = vpop.f32.mrf.mxu1 }
 0x56f   :  { %6551 = vst [vmem:[#allocation2] sm:$0xff] %v6549_v24  ;;  %v6546_v6 = vadd.f32 %v6985_v48, %v6545_v41 }
 0x570   :  { %v8469_v36 = vpop.f32.mrf.mxu1 }
 0x571   :  { %v6550_v16 = vmax.f32 %v6546_v6, 0.0 }
 0x573   :  { %6552 = vst [vmem:[#allocation2 + $0x8] sm:$0xff] %v6550_v16 }
 0x574   :  { %8516 = shalt.err (!%p8513_p4)
}
 0x575   :  { %s8530_s4 = smov 128   ;;  %s8531_s2 = smov 8  }
 0x576   :  { %6564 = dma.vmem_to_hbm [thread:$0]  %s6559_s6, 256, %s11243_s5, [#allocation3], %s8530_s4, %s8530_s4, %s8531_s2  }
 0x577   :  { %8525 = dma.done.wait [#allocation3], 256  }
 0x578   :  { %8526 = vsyncadd [#allocation3], 4294967040 }
 0x579   :  { %6568 = vsyncpa [#allocation3], 1 }

</bundles_post_ra>
